<compile_context>
chip_gen: v6e
topology: v6e:2x2x1
jax: 0.10.0
libtpu: 0.0.40
codegen_flags: <defaults>
</compile_context>

<pallas_src>
import math
import functools

import jax
import jax.numpy as jnp
from jax.experimental import pallas as pl
from jax.experimental.pallas import tpu as pltpu


# ----------------------------- Pallas kernel ---------------------------------
def decoder_layer_kernel(
    x_ref, vsrc_ref, ksrc_ref,                       # (nb*L, E) bf16 each
    wqkv1_ref, wo1_ref, bo1_ref, g1_ref, b1_ref,     # self-attn + norm1
    wq2_ref, wk2_ref, wv2_ref, wo2_ref, bo2_ref,     # cross-attn
    g2_ref, b2_ref,                                  # norm2
    w1_ref, bb1_ref, w2_ref, bb2_ref,                # FFN
    g3_ref, b3_ref,                                  # norm3
    o_ref,                                           # (nb*L, E) f32
    *, nb, seq_len, heads, head_dim, eps,
):
    f32, bf16 = jnp.float32, jnp.bfloat16
    E = heads * head_dim

    def layernorm(h, g_ref, b_ref):  # fp32 statistics (v5e has no bf16 VPU/EUP)
        mu = jnp.mean(h, axis=-1, keepdims=True)
        var = jnp.mean(jnp.square(h - mu), axis=-1, keepdims=True)
        return (h - mu) * jax.lax.rsqrt(var + eps) * g_ref[...] + b_ref[...]

    def mha_proj(q, k, v, wo_ref, bo_ref):
        # q/k/v: (nb*L, E) bf16, per-head projected, 1/sqrt(D) already folded into q.
        # Output projection folded into the head loop: every head contributes a
        # lane-dense (L, E) block via (p_h @ v_h) @ Wo[hD:(h+1)D, :], summed in f32.
        outs = []
        for b in range(nb):                                  # static unrolled
            rows = slice(b * seq_len, (b + 1) * seq_len)
            acc = None
            for h in range(heads):                           # static unrolled
                cols = slice(h * head_dim, (h + 1) * head_dim)
                # contract on D directly -> no transposed copy of k
                s = jax.lax.dot_general(q[rows, cols], k[rows, cols],
                                        (((1,), (1,)), ((), ())),
                                        preferred_element_type=f32)       # (L, L)
                s = s - jnp.max(s, axis=-1, keepdims=True)
                p = jnp.exp(s)
                p = p * pl.reciprocal(jnp.sum(p, axis=-1, keepdims=True), approx=True)
                pv = jnp.dot(p.astype(bf16), v[rows, cols],
                             preferred_element_type=f32)                  # (L, D)
                ho = jnp.dot(pv.astype(bf16), wo_ref[cols, :],
                             preferred_element_type=f32)                  # (L, E)
                acc = ho if acc is None else acc + ho
            outs.append(acc)
        a = outs[0] if nb == 1 else jnp.concatenate(outs, axis=0)         # (nb*L, E)
        return a + bo_ref[...]

    x = x_ref[...]                                   # (nb*L, E) bf16 (pre-cast in wrapper)

    # ---- self-attention: fused block-diagonal QKV, one (E, 3E) bf16 matmul ----
    qkv = jnp.dot(x, wqkv1_ref[...], preferred_element_type=f32).astype(bf16)
    a1 = mha_proj(qkv[:, :E], qkv[:, E:2 * E], qkv[:, 2 * E:], wo1_ref, bo1_ref)
    n1 = layernorm(a1 + x, g1_ref, b1_ref)           # dropout == identity (eval)

    # ---- cross-attention: Q from `value`, K from `key`, V from norm1 output ----
    # TODO(synk): on v6e/v7x the q2/k2 pair could be fused into one block-diagonal
    # (2E, 2E) matmul to fill the 256-deep MXU; kept separate (v5e-neutral form).
    q2 = jnp.dot(vsrc_ref[...], wq2_ref[...], preferred_element_type=f32)
    k2 = jnp.dot(ksrc_ref[...], wk2_ref[...], preferred_element_type=f32)
    v2 = jnp.dot(n1.astype(bf16), wv2_ref[...], preferred_element_type=f32)
    a2 = mha_proj(q2.astype(bf16), k2.astype(bf16), v2.astype(bf16), wo2_ref, bo2_ref)
    n2 = layernorm(a2 + n1, g2_ref, b2_ref)

    # ---- feed-forward: Linear -> ReLU -> Linear ----
    f = jnp.dot(n2.astype(bf16), w1_ref[...], preferred_element_type=f32) + bb1_ref[...]
    f = jnp.maximum(f, 0.0)
    f = jnp.dot(f.astype(bf16), w2_ref[...], preferred_element_type=f32) + bb2_ref[...]
    o_ref[...] = layernorm(f + n2, g3_ref, b3_ref)


# --------------------- weight preparation (hoisted, runs once) -----------------
_WEIGHT_NAMES = (
    "wqkv1", "wo1", "bo1", "g1", "b1",
    "wq2", "wk2", "wv2", "wo2", "bo2", "g2", "b2",
    "w1", "bb1", "w2", "bb2", "g3", "b3",
)


def _weight_shapes(E, ff):
    bf, f32 = jnp.bfloat16, jnp.float32
    return (
        ((E, 3 * E), bf), ((E, E), bf), ((1, E), f32), ((1, E), f32), ((1, E), f32),
        ((E, E), bf), ((E, E), bf), ((E, E), bf), ((E, E), bf),
        ((1, E), f32), ((1, E), f32), ((1, E), f32),
        ((E, ff), bf), ((1, ff), f32), ((ff, E), bf), ((1, E), f32),
        ((1, E), f32), ((1, E), f32),
    )


def prepare_params(p, *, heads):
    """Per-head (D,D) Linear applied to every head == block-diagonal (E,E) matmul.
    Done once here (not per call): kron, QKV fusion, 1/sqrt(D) folding, bf16 cast."""
    D = p["Wq1"].shape[0]
    eyeH = jnp.eye(heads, dtype=jnp.float32)
    scale = 1.0 / math.sqrt(D)
    bd = lambda w: jnp.kron(eyeH, w.T)           # x @ bd == per-head x_h @ W.T
    row = lambda v: v.reshape(1, -1).astype(jnp.float32)
    bf = jnp.bfloat16
    return {
        "wqkv1": jnp.concatenate(
            [bd(p["Wq1"]) * scale, bd(p["Wk1"]), bd(p["Wv1"])], axis=1).astype(bf),
        "wo1": p["Wo1"].T.astype(bf), "bo1": row(p["bo1"]),
        "g1": row(p["g1"]), "b1": row(p["b1"]),
        "wq2": (bd(p["Wq2"]) * scale).astype(bf),
        "wk2": bd(p["Wk2"]).astype(bf),
        "wv2": bd(p["Wv2"]).astype(bf),
        "wo2": p["Wo2"].T.astype(bf), "bo2": row(p["bo2"]),
        "g2": row(p["g2"]), "b2": row(p["b2"]),
        "w1": p["W1"].T.astype(bf), "bb1": row(p["bb1"]),
        "w2": p["W2"].T.astype(bf), "bb2": row(p["bb2"]),
        "g3": row(p["g3"]), "b3": row(p["b3"]),
    }


# ------------------------------- call builder ----------------------------------
def _pick_batch_block(N, L, target_rows=128, max_rows=1024):
    """Smallest batch block nb (divisor of N) such that nb*L reaches the target MXU M;
    caps VMEM growth at max_rows rows.  (At tiny N*L this packs the whole batch; for a
    v7x 2-TC split one would instead keep >= 2 grid steps — negligible at these sizes.)"""
    nb = 1
    for cand in range(1, N + 1):
        if N % cand:
            continue
        if cand * L > max_rows and cand > 1:
            break
        nb = cand
        if cand * L >= target_rows:
            break
    return nb


def _vmem_estimate_bytes(block_rows, seq_len, E, ff):
    bf, f4 = 2, 4
    weights = (3 * E * E + 5 * E * E + 2 * E * ff) * bf + (9 * E + ff) * f4
    streams = 3 * block_rows * E * bf * 2 + block_rows * E * f4 * 2   # double-buffered io
    acts = block_rows * (3 * E + 6 * E + ff) * f4 + 2 * seq_len * seq_len * f4
    return weights + streams + acts


@functools.lru_cache(maxsize=None)
def _build_decoder_call(num_rows, block_rows, L, E, ff, heads, use_buffered, vmem_limit):
    D = E // heads
    nb = block_rows // L
    kernel = functools.partial(decoder_layer_kernel, nb=nb, seq_len=L,
                               heads=heads, head_dim=D, eps=1e-5)
    seq_spec = pl.BlockSpec((block_rows, E), lambda n: (n, 0))
    wmode = pl.Buffered(1) if use_buffered else None

    def wspec(shape):
        if wmode is None:
            return pl.BlockSpec(shape, lambda n: (0, 0))
        # Grid-invariant weights only need one VMEM buffer (halves their residency;
        # matters most against v7x's 64 MiB VMEM).
        return pl.BlockSpec(shape, lambda n: (0, 0), pipeline_mode=wmode)

    return pl.pallas_call(
        kernel,
        out_shape=jax.ShapeDtypeStruct((num_rows, E), jnp.float32),
        grid=(num_rows // block_rows,),
        in_specs=[seq_spec, seq_spec, seq_spec]
        + [wspec(s) for s, _ in _weight_shapes(E, ff)],
        out_specs=seq_spec,
        compiler_params=pltpu.CompilerParams(
            dimension_semantics=("parallel",),
            vmem_limit_bytes=vmem_limit,
        ),
    )


@functools.lru_cache(maxsize=None)
def _use_buffered_weights(num_rows, block_rows, L, E, ff, heads, vmem_limit):
    """One-time capability probe: lower + compile (never execute) the real kernel with
    pl.Buffered(1) weights.  Keeps the hot path free of try/except around execution."""
    try:
        call = _build_decoder_call(num_rows, block_rows, L, E, ff, heads, True, vmem_limit)
        seq = jax.ShapeDtypeStruct((num_rows, E), jnp.bfloat16)
        wargs = [jax.ShapeDtypeStruct(s, d) for s, d in _weight_shapes(E, ff)]
        jax.jit(call).lower(seq, seq, seq, *wargs).compile()
        return True
    except Exception:
        return False


# ------------------------------- wrapper --------------------------------------
def transformer_decoder_layer(x, value, key, prep, *, heads):
    """x, value, key: (N, L, E) float32. Returns (N, L, E) float32 (eval, masks=None)."""
    N, L, E = x.shape
    assert value.shape == x.shape and key.shape == x.shape
    ff = prep["w1"].shape[1]

    nb = _pick_batch_block(N, L)
    block_rows = nb * L
    num_rows = N * L
    vmem_limit = int(min(64 * 1024 * 1024,
                         max(32 * 1024 * 1024,
                             2 * _vmem_estimate_bytes(block_rows, L, E, ff))))

    buffered = _use_buffered_weights(num_rows, block_rows, L, E, ff, heads, vmem_limit)
    call = _build_decoder_call(num_rows, block_rows, L, E, ff, heads, buffered, vmem_limit)

    weights = [prep[name] for name in _WEIGHT_NAMES]
    # Pre-cast the three streamed sequences to bf16 (halves their HBM->VMEM DMA) and
    # flatten batch*seq so every projection/FFN matmul sees M = nb*L rows.
    to2d = lambda a: a.reshape(num_rows, E).astype(jnp.bfloat16)
    out = call(to2d(x), to2d(value), to2d(key), *weights)   # no host sync here
    return out.reshape(N, L, E)


# --------------------------- pure-JAX reference --------------------------------
def reference_forward(x, value, key, p, *, heads):
    def attn_block(values, keys, query, Wv, Wk, Wq, Wo, bo):
        N, vlen, E = values.shape
        klen, qlen = keys.shape[1], query.shape[1]
        D = E // heads
        v = values.reshape(N, vlen, heads, D) @ Wv.T
        k = keys.reshape(N, klen, heads, D) @ Wk.T
        q = query.reshape(N, qlen, heads, D) @ Wq.T
        energy = jnp.einsum("nqhd,nkhd->nhqk", q, k) / math.sqrt(D)
        a = jax.nn.softmax(energy, axis=3)
        out = jnp.einsum("nhql,nlhd->nqhd", a, v).reshape(N, qlen, E)
        return out @ Wo.T + bo

    def ln(h, g, b):
        mu = h.mean(-1, keepdims=True)
        var = ((h - mu) ** 2).mean(-1, keepdims=True)
        return (h - mu) / jnp.sqrt(var + 1e-5) * g + b

    a1 = attn_block(x, x, x, p["Wv1"], p["Wk1"], p["Wq1"], p["Wo1"], p["bo1"])
    q = ln(a1 + x, p["g1"], p["b1"])
    a2 = attn_block(q, key, value, p["Wv2"], p["Wk2"], p["Wq2"], p["Wo2"], p["bo2"])
    x2 = ln(a2 + q, p["g2"], p["b2"])
    f = jnp.maximum(x2 @ p["W1"].T + p["bb1"], 0.0) @ p["W2"].T + p["bb2"]
    return ln(f + x2, p["g3"], p["b3"])


# --------------------------------- main ----------------------------------------
if __name__ == "__main__":
    # Small shapes consistent with the module (embed divisible by heads, ff = 4*E).
    N, L, E, heads = 2, 16, 128, 4
    D = E // heads
    FF = 4 * E

    root = jax.random.PRNGKey(0)
    ks = jax.random.split(root, 24)
    s = 0.05
    nrm = lambda i, shape: jax.random.normal(ks[i], shape, jnp.float32) * s

    params = {
        "Wq1": nrm(0, (D, D)), "Wk1": nrm(1, (D, D)), "Wv1": nrm(2, (D, D)),
        "Wo1": nrm(3, (E, E)), "bo1": nrm(4, (E,)),
        "g1": 1.0 + nrm(5, (E,)), "b1": nrm(6, (E,)),
        "Wq2": nrm(7, (D, D)), "Wk2": nrm(8, (D, D)), "Wv2": nrm(9, (D, D)),
        "Wo2": nrm(10, (E, E)), "bo2": nrm(11, (E,)),
        "g2": 1.0 + nrm(12, (E,)), "b2": nrm(13, (E,)),
        "W1": nrm(14, (FF, E)), "bb1": nrm(15, (FF,)),
        "W2": nrm(16, (E, FF)), "bb2": nrm(17, (E,)),
        "g3": 1.0 + nrm(18, (E,)), "b3": nrm(19, (E,)),
    }
    x = jax.random.normal(ks[20], (N, L, E), jnp.float32)
    value = jax.random.normal(ks[21], (N, L, E), jnp.float32)
    key_t = jax.random.normal(ks[22], (N, L, E), jnp.float32)

    prep = prepare_params(params, heads=heads)          # hoisted out of the call path

    # Build/jit once and cache; the host sync lives here, not in the wrapper.
    layer = jax.jit(functools.partial(transformer_decoder_layer, heads=heads))
    out = jax.block_until_ready(layer(x, value, key_t, prep))

    ref = reference_forward(x, value, key_t, params, heads=heads)
    assert out.shape == (N, L, E)
    err = float(jnp.max(jnp.abs(out - ref)))
    # bf16 inputs + bf16 matmuls with f32 accumulation + approx softmax reciprocal
    # -> loosened (but still tight) tolerance vs. the f32 reference.
    assert jnp.allclose(out, ref, atol=4e-2, rtol=4e-2), f"max abs err {err}"
    print("KERNEL_OK")
</pallas_src>

<mosaic_0001>
module attributes {stable_mosaic.version = 11 : i64} {
  func.func @decoder_layer_kernel(%arg0: i32, %arg1: memref<32x128xbf16, #tpu.memory_space<vmem>>, %arg2: memref<32x128xbf16, #tpu.memory_space<vmem>>, %arg3: memref<32x128xbf16, #tpu.memory_space<vmem>>, %arg4: memref<128x384xbf16, #tpu.memory_space<vmem>>, %arg5: memref<128x128xbf16, #tpu.memory_space<vmem>>, %arg6: memref<1x128xf32, #tpu.memory_space<vmem>>, %arg7: memref<1x128xf32, #tpu.memory_space<vmem>>, %arg8: memref<1x128xf32, #tpu.memory_space<vmem>>, %arg9: memref<128x128xbf16, #tpu.memory_space<vmem>>, %arg10: memref<128x128xbf16, #tpu.memory_space<vmem>>, %arg11: memref<128x128xbf16, #tpu.memory_space<vmem>>, %arg12: memref<128x128xbf16, #tpu.memory_space<vmem>>, %arg13: memref<1x128xf32, #tpu.memory_space<vmem>>, %arg14: memref<1x128xf32, #tpu.memory_space<vmem>>, %arg15: memref<1x128xf32, #tpu.memory_space<vmem>>, %arg16: memref<128x512xbf16, #tpu.memory_space<vmem>>, %arg17: memref<1x512xf32, #tpu.memory_space<vmem>>, %arg18: memref<512x128xbf16, #tpu.memory_space<vmem>>, %arg19: memref<1x128xf32, #tpu.memory_space<vmem>>, %arg20: memref<1x128xf32, #tpu.memory_space<vmem>>, %arg21: memref<1x128xf32, #tpu.memory_space<vmem>>, %arg22: memref<32x128xf32, #tpu.memory_space<vmem>>) attributes {dimension_semantics = [#tpu.dimension_semantics<parallel>], iteration_bounds = array<i64: 1>, scalar_prefetch = 0 : i64, scratch_operands = 0 : i64, tpu.core_type = #tpu.core_type<tc>, window_params = [{transform_indices = @transform_0, window_bounds = array<i64: 32, 128>}, {transform_indices = @transform_1, window_bounds = array<i64: 32, 128>}, {transform_indices = @transform_2, window_bounds = array<i64: 32, 128>}, {pipeline_mode = #tpu.pipeline_mode<synchronous>, transform_indices = @transform_3, window_bounds = array<i64: 128, 384>}, {pipeline_mode = #tpu.pipeline_mode<synchronous>, transform_indices = @transform_4, window_bounds = array<i64: 128, 128>}, {pipeline_mode = #tpu.pipeline_mode<synchronous>, transform_indices = @transform_5, window_bounds = array<i64: 1, 128>}, {pipeline_mode = #tpu.pipeline_mode<synchronous>, transform_indices = @transform_6, window_bounds = array<i64: 1, 128>}, {pipeline_mode = #tpu.pipeline_mode<synchronous>, transform_indices = @transform_7, window_bounds = array<i64: 1, 128>}, {pipeline_mode = #tpu.pipeline_mode<synchronous>, transform_indices = @transform_8, window_bounds = array<i64: 128, 128>}, {pipeline_mode = #tpu.pipeline_mode<synchronous>, transform_indices = @transform_9, window_bounds = array<i64: 128, 128>}, {pipeline_mode = #tpu.pipeline_mode<synchronous>, transform_indices = @transform_10, window_bounds = array<i64: 128, 128>}, {pipeline_mode = #tpu.pipeline_mode<synchronous>, transform_indices = @transform_11, window_bounds = array<i64: 128, 128>}, {pipeline_mode = #tpu.pipeline_mode<synchronous>, transform_indices = @transform_12, window_bounds = array<i64: 1, 128>}, {pipeline_mode = #tpu.pipeline_mode<synchronous>, transform_indices = @transform_13, window_bounds = array<i64: 1, 128>}, {pipeline_mode = #tpu.pipeline_mode<synchronous>, transform_indices = @transform_14, window_bounds = array<i64: 1, 128>}, {pipeline_mode = #tpu.pipeline_mode<synchronous>, transform_indices = @transform_15, window_bounds = array<i64: 128, 512>}, {pipeline_mode = #tpu.pipeline_mode<synchronous>, transform_indices = @transform_16, window_bounds = array<i64: 1, 512>}, {pipeline_mode = #tpu.pipeline_mode<synchronous>, transform_indices = @transform_17, window_bounds = array<i64: 512, 128>}, {pipeline_mode = #tpu.pipeline_mode<synchronous>, transform_indices = @transform_18, window_bounds = array<i64: 1, 128>}, {pipeline_mode = #tpu.pipeline_mode<synchronous>, transform_indices = @transform_19, window_bounds = array<i64: 1, 128>}, {pipeline_mode = #tpu.pipeline_mode<synchronous>, transform_indices = @transform_20, window_bounds = array<i64: 1, 128>}, {transform_indices = @transform_21, window_bounds = array<i64: 32, 128>}]} {
    %c0 = arith.constant 0 : index
    %c0_0 = arith.constant 0 : index
    %0 = vector.load %arg1[%c0, %c0_0] : memref<32x128xbf16, #tpu.memory_space<vmem>>, vector<32x128xbf16>
    %c0_1 = arith.constant 0 : index
    %c0_2 = arith.constant 0 : index
    %1 = vector.load %arg4[%c0_1, %c0_2] : memref<128x384xbf16, #tpu.memory_space<vmem>>, vector<128x384xbf16>
    %cst = arith.constant dense<0.000000e+00> : vector<32x384xf32>
    %2 = tpu.matmul %0, %1, %cst {dimension_numbers = #tpu.dot_dimension_numbers<[1], [0], [0], [1], [0, 0, 1, 1], [], []>} : vector<32x128xbf16>, vector<128x384xbf16>, vector<32x384xf32> -> vector<32x384xf32>
    %3 = arith.truncf %2 : vector<32x384xf32> to vector<32x384xbf16>
    %4 = vector.extract_strided_slice %3 {offsets = [0, 0], sizes = [32, 128], strides = [1, 1]} : vector<32x384xbf16> to vector<32x128xbf16>
    %5 = vector.extract_strided_slice %3 {offsets = [0, 128], sizes = [32, 128], strides = [1, 1]} : vector<32x384xbf16> to vector<32x128xbf16>
    %6 = vector.extract_strided_slice %3 {offsets = [0, 256], sizes = [32, 128], strides = [1, 1]} : vector<32x384xbf16> to vector<32x128xbf16>
    %7 = vector.extract_strided_slice %4 {offsets = [0, 0], sizes = [16, 32], strides = [1, 1]} : vector<32x128xbf16> to vector<16x32xbf16>
    %8 = vector.extract_strided_slice %5 {offsets = [0, 0], sizes = [16, 32], strides = [1, 1]} : vector<32x128xbf16> to vector<16x32xbf16>
    %cst_3 = arith.constant dense<0.000000e+00> : vector<16x16xf32>
    %9 = tpu.matmul %7, %8, %cst_3 {dimension_numbers = #tpu.dot_dimension_numbers<[1], [1], [0], [0], [0, 0, 1, 0], [], []>} : vector<16x32xbf16>, vector<16x32xbf16>, vector<16x16xf32> -> vector<16x16xf32>
    %cst_4 = arith.constant dense<0xFF800000> : vector<16xf32>
    %10 = vector.multi_reduction <maximumf>, %9, %cst_4 [1] : vector<16x16xf32> to vector<16xf32>
    %11 = vector.shape_cast %10 : vector<16xf32> to vector<16x1xf32>
    %12 = vector.broadcast %11 : vector<16x1xf32> to vector<16x16xf32>
    %13 = arith.subf %9, %12 : vector<16x16xf32>
    %14 = math.exp %13 : vector<16x16xf32>
    %cst_5 = arith.constant dense<0.000000e+00> : vector<16xf32>
    %15 = vector.multi_reduction <add>, %14, %cst_5 [1] : vector<16x16xf32> to vector<16xf32>
    %16 = vector.shape_cast %15 : vector<16xf32> to vector<16x1xf32>
    %17 = tpu.reciprocal %16 {approx = true} : vector<16x1xf32> -> vector<16x1xf32>
    %18 = vector.broadcast %17 : vector<16x1xf32> to vector<16x16xf32>
    %19 = arith.mulf %14, %18 : vector<16x16xf32>
    %20 = arith.truncf %19 : vector<16x16xf32> to vector<16x16xbf16>
    %21 = vector.extract_strided_slice %6 {offsets = [0, 0], sizes = [16, 32], strides = [1, 1]} : vector<32x128xbf16> to vector<16x32xbf16>
    %cst_6 = arith.constant dense<0.000000e+00> : vector<16x32xf32>
    %22 = tpu.matmul %20, %21, %cst_6 {dimension_numbers = #tpu.dot_dimension_numbers<[1], [0], [0], [1], [0, 0, 1, 1], [], []>} : vector<16x16xbf16>, vector<16x32xbf16>, vector<16x32xf32> -> vector<16x32xf32>
    %23 = arith.truncf %22 : vector<16x32xf32> to vector<16x32xbf16>
    %c0_7 = arith.constant 0 : index
    %c0_8 = arith.constant 0 : index
    %24 = vector.load %arg5[%c0_7, %c0_8] : memref<128x128xbf16, #tpu.memory_space<vmem>>, vector<32x128xbf16>
    %cst_9 = arith.constant dense<0.000000e+00> : vector<16x128xf32>
    %25 = tpu.matmul %23, %24, %cst_9 {dimension_numbers = #tpu.dot_dimension_numbers<[1], [0], [0], [1], [0, 0, 1, 1], [], []>} : vector<16x32xbf16>, vector<32x128xbf16>, vector<16x128xf32> -> vector<16x128xf32>
    %26 = vector.extract_strided_slice %4 {offsets = [0, 32], sizes = [16, 32], strides = [1, 1]} : vector<32x128xbf16> to vector<16x32xbf16>
    %27 = vector.extract_strided_slice %5 {offsets = [0, 32], sizes = [16, 32], strides = [1, 1]} : vector<32x128xbf16> to vector<16x32xbf16>
    %cst_10 = arith.constant dense<0.000000e+00> : vector<16x16xf32>
    %28 = tpu.matmul %26, %27, %cst_10 {dimension_numbers = #tpu.dot_dimension_numbers<[1], [1], [0], [0], [0, 0, 1, 0], [], []>} : vector<16x32xbf16>, vector<16x32xbf16>, vector<16x16xf32> -> vector<16x16xf32>
    %cst_11 = arith.constant dense<0xFF800000> : vector<16xf32>
    %29 = vector.multi_reduction <maximumf>, %28, %cst_11 [1] : vector<16x16xf32> to vector<16xf32>
    %30 = vector.shape_cast %29 : vector<16xf32> to vector<16x1xf32>
    %31 = vector.broadcast %30 : vector<16x1xf32> to vector<16x16xf32>
    %32 = arith.subf %28, %31 : vector<16x16xf32>
    %33 = math.exp %32 : vector<16x16xf32>
    %cst_12 = arith.constant dense<0.000000e+00> : vector<16xf32>
    %34 = vector.multi_reduction <add>, %33, %cst_12 [1] : vector<16x16xf32> to vector<16xf32>
    %35 = vector.shape_cast %34 : vector<16xf32> to vector<16x1xf32>
    %36 = tpu.reciprocal %35 {approx = true} : vector<16x1xf32> -> vector<16x1xf32>
    %37 = vector.broadcast %36 : vector<16x1xf32> to vector<16x16xf32>
    %38 = arith.mulf %33, %37 : vector<16x16xf32>
    %39 = arith.truncf %38 : vector<16x16xf32> to vector<16x16xbf16>
    %40 = vector.extract_strided_slice %6 {offsets = [0, 32], sizes = [16, 32], strides = [1, 1]} : vector<32x128xbf16> to vector<16x32xbf16>
    %cst_13 = arith.constant dense<0.000000e+00> : vector<16x32xf32>
    %41 = tpu.matmul %39, %40, %cst_13 {dimension_numbers = #tpu.dot_dimension_numbers<[1], [0], [0], [1], [0, 0, 1, 1], [], []>} : vector<16x16xbf16>, vector<16x32xbf16>, vector<16x32xf32> -> vector<16x32xf32>
    %42 = arith.truncf %41 : vector<16x32xf32> to vector<16x32xbf16>
    %c32 = arith.constant 32 : index
    %c0_14 = arith.constant 0 : index
    %43 = vector.load %arg5[%c32, %c0_14] : memref<128x128xbf16, #tpu.memory_space<vmem>>, vector<32x128xbf16>
    %cst_15 = arith.constant dense<0.000000e+00> : vector<16x128xf32>
    %44 = tpu.matmul %42, %43, %cst_15 {dimension_numbers = #tpu.dot_dimension_numbers<[1], [0], [0], [1], [0, 0, 1, 1], [], []>} : vector<16x32xbf16>, vector<32x128xbf16>, vector<16x128xf32> -> vector<16x128xf32>
    %45 = arith.addf %25, %44 : vector<16x128xf32>
    %46 = vector.extract_strided_slice %4 {offsets = [0, 64], sizes = [16, 32], strides = [1, 1]} : vector<32x128xbf16> to vector<16x32xbf16>
    %47 = vector.extract_strided_slice %5 {offsets = [0, 64], sizes = [16, 32], strides = [1, 1]} : vector<32x128xbf16> to vector<16x32xbf16>
    %cst_16 = arith.constant dense<0.000000e+00> : vector<16x16xf32>
    %48 = tpu.matmul %46, %47, %cst_16 {dimension_numbers = #tpu.dot_dimension_numbers<[1], [1], [0], [0], [0, 0, 1, 0], [], []>} : vector<16x32xbf16>, vector<16x32xbf16>, vector<16x16xf32> -> vector<16x16xf32>
    %cst_17 = arith.constant dense<0xFF800000> : vector<16xf32>
    %49 = vector.multi_reduction <maximumf>, %48, %cst_17 [1] : vector<16x16xf32> to vector<16xf32>
    %50 = vector.shape_cast %49 : vector<16xf32> to vector<16x1xf32>
    %51 = vector.broadcast %50 : vector<16x1xf32> to vector<16x16xf32>
    %52 = arith.subf %48, %51 : vector<16x16xf32>
    %53 = math.exp %52 : vector<16x16xf32>
    %cst_18 = arith.constant dense<0.000000e+00> : vector<16xf32>
    %54 = vector.multi_reduction <add>, %53, %cst_18 [1] : vector<16x16xf32> to vector<16xf32>
    %55 = vector.shape_cast %54 : vector<16xf32> to vector<16x1xf32>
    %56 = tpu.reciprocal %55 {approx = true} : vector<16x1xf32> -> vector<16x1xf32>
    %57 = vector.broadcast %56 : vector<16x1xf32> to vector<16x16xf32>
    %58 = arith.mulf %53, %57 : vector<16x16xf32>
    %59 = arith.truncf %58 : vector<16x16xf32> to vector<16x16xbf16>
    %60 = vector.extract_strided_slice %6 {offsets = [0, 64], sizes = [16, 32], strides = [1, 1]} : vector<32x128xbf16> to vector<16x32xbf16>
    %cst_19 = arith.constant dense<0.000000e+00> : vector<16x32xf32>
    %61 = tpu.matmul %59, %60, %cst_19 {dimension_numbers = #tpu.dot_dimension_numbers<[1], [0], [0], [1], [0, 0, 1, 1], [], []>} : vector<16x16xbf16>, vector<16x32xbf16>, vector<16x32xf32> -> vector<16x32xf32>
    %62 = arith.truncf %61 : vector<16x32xf32> to vector<16x32xbf16>
    %c64 = arith.constant 64 : index
    %c0_20 = arith.constant 0 : index
    %63 = vector.load %arg5[%c64, %c0_20] : memref<128x128xbf16, #tpu.memory_space<vmem>>, vector<32x128xbf16>
    %cst_21 = arith.constant dense<0.000000e+00> : vector<16x128xf32>
    %64 = tpu.matmul %62, %63, %cst_21 {dimension_numbers = #tpu.dot_dimension_numbers<[1], [0], [0], [1], [0, 0, 1, 1], [], []>} : vector<16x32xbf16>, vector<32x128xbf16>, vector<16x128xf32> -> vector<16x128xf32>
    %65 = arith.addf %45, %64 : vector<16x128xf32>
    %66 = vector.extract_strided_slice %4 {offsets = [0, 96], sizes = [16, 32], strides = [1, 1]} : vector<32x128xbf16> to vector<16x32xbf16>
    %67 = vector.extract_strided_slice %5 {offsets = [0, 96], sizes = [16, 32], strides = [1, 1]} : vector<32x128xbf16> to vector<16x32xbf16>
    %cst_22 = arith.constant dense<0.000000e+00> : vector<16x16xf32>
    %68 = tpu.matmul %66, %67, %cst_22 {dimension_numbers = #tpu.dot_dimension_numbers<[1], [1], [0], [0], [0, 0, 1, 0], [], []>} : vector<16x32xbf16>, vector<16x32xbf16>, vector<16x16xf32> -> vector<16x16xf32>
    %cst_23 = arith.constant dense<0xFF800000> : vector<16xf32>
    %69 = vector.multi_reduction <maximumf>, %68, %cst_23 [1] : vector<16x16xf32> to vector<16xf32>
    %70 = vector.shape_cast %69 : vector<16xf32> to vector<16x1xf32>
    %71 = vector.broadcast %70 : vector<16x1xf32> to vector<16x16xf32>
    %72 = arith.subf %68, %71 : vector<16x16xf32>
    %73 = math.exp %72 : vector<16x16xf32>
    %cst_24 = arith.constant dense<0.000000e+00> : vector<16xf32>
    %74 = vector.multi_reduction <add>, %73, %cst_24 [1] : vector<16x16xf32> to vector<16xf32>
    %75 = vector.shape_cast %74 : vector<16xf32> to vector<16x1xf32>
    %76 = tpu.reciprocal %75 {approx = true} : vector<16x1xf32> -> vector<16x1xf32>
    %77 = vector.broadcast %76 : vector<16x1xf32> to vector<16x16xf32>
    %78 = arith.mulf %73, %77 : vector<16x16xf32>
    %79 = arith.truncf %78 : vector<16x16xf32> to vector<16x16xbf16>
    %80 = vector.extract_strided_slice %6 {offsets = [0, 96], sizes = [16, 32], strides = [1, 1]} : vector<32x128xbf16> to vector<16x32xbf16>
    %cst_25 = arith.constant dense<0.000000e+00> : vector<16x32xf32>
    %81 = tpu.matmul %79, %80, %cst_25 {dimension_numbers = #tpu.dot_dimension_numbers<[1], [0], [0], [1], [0, 0, 1, 1], [], []>} : vector<16x16xbf16>, vector<16x32xbf16>, vector<16x32xf32> -> vector<16x32xf32>
    %82 = arith.truncf %81 : vector<16x32xf32> to vector<16x32xbf16>
    %c96 = arith.constant 96 : index
    %c0_26 = arith.constant 0 : index
    %83 = vector.load %arg5[%c96, %c0_26] : memref<128x128xbf16, #tpu.memory_space<vmem>>, vector<32x128xbf16>
    %cst_27 = arith.constant dense<0.000000e+00> : vector<16x128xf32>
    %84 = tpu.matmul %82, %83, %cst_27 {dimension_numbers = #tpu.dot_dimension_numbers<[1], [0], [0], [1], [0, 0, 1, 1], [], []>} : vector<16x32xbf16>, vector<32x128xbf16>, vector<16x128xf32> -> vector<16x128xf32>
    %85 = arith.addf %65, %84 : vector<16x128xf32>
    %86 = vector.extract_strided_slice %4 {offsets = [16, 0], sizes = [16, 32], strides = [1, 1]} : vector<32x128xbf16> to vector<16x32xbf16>
    %87 = vector.extract_strided_slice %5 {offsets = [16, 0], sizes = [16, 32], strides = [1, 1]} : vector<32x128xbf16> to vector<16x32xbf16>
    %cst_28 = arith.constant dense<0.000000e+00> : vector<16x16xf32>
    %88 = tpu.matmul %86, %87, %cst_28 {dimension_numbers = #tpu.dot_dimension_numbers<[1], [1], [0], [0], [0, 0, 1, 0], [], []>} : vector<16x32xbf16>, vector<16x32xbf16>, vector<16x16xf32> -> vector<16x16xf32>
    %cst_29 = arith.constant dense<0xFF800000> : vector<16xf32>
    %89 = vector.multi_reduction <maximumf>, %88, %cst_29 [1] : vector<16x16xf32> to vector<16xf32>
    %90 = vector.shape_cast %89 : vector<16xf32> to vector<16x1xf32>
    %91 = vector.broadcast %90 : vector<16x1xf32> to vector<16x16xf32>
    %92 = arith.subf %88, %91 : vector<16x16xf32>
    %93 = math.exp %92 : vector<16x16xf32>
    %cst_30 = arith.constant dense<0.000000e+00> : vector<16xf32>
    %94 = vector.multi_reduction <add>, %93, %cst_30 [1] : vector<16x16xf32> to vector<16xf32>
    %95 = vector.shape_cast %94 : vector<16xf32> to vector<16x1xf32>
    %96 = tpu.reciprocal %95 {approx = true} : vector<16x1xf32> -> vector<16x1xf32>
    %97 = vector.broadcast %96 : vector<16x1xf32> to vector<16x16xf32>
    %98 = arith.mulf %93, %97 : vector<16x16xf32>
    %99 = arith.truncf %98 : vector<16x16xf32> to vector<16x16xbf16>
    %100 = vector.extract_strided_slice %6 {offsets = [16, 0], sizes = [16, 32], strides = [1, 1]} : vector<32x128xbf16> to vector<16x32xbf16>
    %cst_31 = arith.constant dense<0.000000e+00> : vector<16x32xf32>
    %101 = tpu.matmul %99, %100, %cst_31 {dimension_numbers = #tpu.dot_dimension_numbers<[1], [0], [0], [1], [0, 0, 1, 1], [], []>} : vector<16x16xbf16>, vector<16x32xbf16>, vector<16x32xf32> -> vector<16x32xf32>
    %102 = arith.truncf %101 : vector<16x32xf32> to vector<16x32xbf16>
    %c0_32 = arith.constant 0 : index
    %c0_33 = arith.constant 0 : index
    %103 = vector.load %arg5[%c0_32, %c0_33] : memref<128x128xbf16, #tpu.memory_space<vmem>>, vector<32x128xbf16>
    %cst_34 = arith.constant dense<0.000000e+00> : vector<16x128xf32>
    %104 = tpu.matmul %102, %103, %cst_34 {dimension_numbers = #tpu.dot_dimension_numbers<[1], [0], [0], [1], [0, 0, 1, 1], [], []>} : vector<16x32xbf16>, vector<32x128xbf16>, vector<16x128xf32> -> vector<16x128xf32>
    %105 = vector.extract_strided_slice %4 {offsets = [16, 32], sizes = [16, 32], strides = [1, 1]} : vector<32x128xbf16> to vector<16x32xbf16>
    %106 = vector.extract_strided_slice %5 {offsets = [16, 32], sizes = [16, 32], strides = [1, 1]} : vector<32x128xbf16> to vector<16x32xbf16>
    %cst_35 = arith.constant dense<0.000000e+00> : vector<16x16xf32>
    %107 = tpu.matmul %105, %106, %cst_35 {dimension_numbers = #tpu.dot_dimension_numbers<[1], [1], [0], [0], [0, 0, 1, 0], [], []>} : vector<16x32xbf16>, vector<16x32xbf16>, vector<16x16xf32> -> vector<16x16xf32>
    %cst_36 = arith.constant dense<0xFF800000> : vector<16xf32>
    %108 = vector.multi_reduction <maximumf>, %107, %cst_36 [1] : vector<16x16xf32> to vector<16xf32>
    %109 = vector.shape_cast %108 : vector<16xf32> to vector<16x1xf32>
    %110 = vector.broadcast %109 : vector<16x1xf32> to vector<16x16xf32>
    %111 = arith.subf %107, %110 : vector<16x16xf32>
    %112 = math.exp %111 : vector<16x16xf32>
    %cst_37 = arith.constant dense<0.000000e+00> : vector<16xf32>
    %113 = vector.multi_reduction <add>, %112, %cst_37 [1] : vector<16x16xf32> to vector<16xf32>
    %114 = vector.shape_cast %113 : vector<16xf32> to vector<16x1xf32>
    %115 = tpu.reciprocal %114 {approx = true} : vector<16x1xf32> -> vector<16x1xf32>
    %116 = vector.broadcast %115 : vector<16x1xf32> to vector<16x16xf32>
    %117 = arith.mulf %112, %116 : vector<16x16xf32>
    %118 = arith.truncf %117 : vector<16x16xf32> to vector<16x16xbf16>
    %119 = vector.extract_strided_slice %6 {offsets = [16, 32], sizes = [16, 32], strides = [1, 1]} : vector<32x128xbf16> to vector<16x32xbf16>
    %cst_38 = arith.constant dense<0.000000e+00> : vector<16x32xf32>
    %120 = tpu.matmul %118, %119, %cst_38 {dimension_numbers = #tpu.dot_dimension_numbers<[1], [0], [0], [1], [0, 0, 1, 1], [], []>} : vector<16x16xbf16>, vector<16x32xbf16>, vector<16x32xf32> -> vector<16x32xf32>
    %121 = arith.truncf %120 : vector<16x32xf32> to vector<16x32xbf16>
    %c32_39 = arith.constant 32 : index
    %c0_40 = arith.constant 0 : index
    %122 = vector.load %arg5[%c32_39, %c0_40] : memref<128x128xbf16, #tpu.memory_space<vmem>>, vector<32x128xbf16>
    %cst_41 = arith.constant dense<0.000000e+00> : vector<16x128xf32>
    %123 = tpu.matmul %121, %122, %cst_41 {dimension_numbers = #tpu.dot_dimension_numbers<[1], [0], [0], [1], [0, 0, 1, 1], [], []>} : vector<16x32xbf16>, vector<32x128xbf16>, vector<16x128xf32> -> vector<16x128xf32>
    %124 = arith.addf %104, %123 : vector<16x128xf32>
    %125 = vector.extract_strided_slice %4 {offsets = [16, 64], sizes = [16, 32], strides = [1, 1]} : vector<32x128xbf16> to vector<16x32xbf16>
    %126 = vector.extract_strided_slice %5 {offsets = [16, 64], sizes = [16, 32], strides = [1, 1]} : vector<32x128xbf16> to vector<16x32xbf16>
    %cst_42 = arith.constant dense<0.000000e+00> : vector<16x16xf32>
    %127 = tpu.matmul %125, %126, %cst_42 {dimension_numbers = #tpu.dot_dimension_numbers<[1], [1], [0], [0], [0, 0, 1, 0], [], []>} : vector<16x32xbf16>, vector<16x32xbf16>, vector<16x16xf32> -> vector<16x16xf32>
    %cst_43 = arith.constant dense<0xFF800000> : vector<16xf32>
    %128 = vector.multi_reduction <maximumf>, %127, %cst_43 [1] : vector<16x16xf32> to vector<16xf32>
    %129 = vector.shape_cast %128 : vector<16xf32> to vector<16x1xf32>
    %130 = vector.broadcast %129 : vector<16x1xf32> to vector<16x16xf32>
    %131 = arith.subf %127, %130 : vector<16x16xf32>
    %132 = math.exp %131 : vector<16x16xf32>
    %cst_44 = arith.constant dense<0.000000e+00> : vector<16xf32>
    %133 = vector.multi_reduction <add>, %132, %cst_44 [1] : vector<16x16xf32> to vector<16xf32>
    %134 = vector.shape_cast %133 : vector<16xf32> to vector<16x1xf32>
    %135 = tpu.reciprocal %134 {approx = true} : vector<16x1xf32> -> vector<16x1xf32>
    %136 = vector.broadcast %135 : vector<16x1xf32> to vector<16x16xf32>
    %137 = arith.mulf %132, %136 : vector<16x16xf32>
    %138 = arith.truncf %137 : vector<16x16xf32> to vector<16x16xbf16>
    %139 = vector.extract_strided_slice %6 {offsets = [16, 64], sizes = [16, 32], strides = [1, 1]} : vector<32x128xbf16> to vector<16x32xbf16>
    %cst_45 = arith.constant dense<0.000000e+00> : vector<16x32xf32>
    %140 = tpu.matmul %138, %139, %cst_45 {dimension_numbers = #tpu.dot_dimension_numbers<[1], [0], [0], [1], [0, 0, 1, 1], [], []>} : vector<16x16xbf16>, vector<16x32xbf16>, vector<16x32xf32> -> vector<16x32xf32>
    %141 = arith.truncf %140 : vector<16x32xf32> to vector<16x32xbf16>
    %c64_46 = arith.constant 64 : index
    %c0_47 = arith.constant 0 : index
    %142 = vector.load %arg5[%c64_46, %c0_47] : memref<128x128xbf16, #tpu.memory_space<vmem>>, vector<32x128xbf16>
    %cst_48 = arith.constant dense<0.000000e+00> : vector<16x128xf32>
    %143 = tpu.matmul %141, %142, %cst_48 {dimension_numbers = #tpu.dot_dimension_numbers<[1], [0], [0], [1], [0, 0, 1, 1], [], []>} : vector<16x32xbf16>, vector<32x128xbf16>, vector<16x128xf32> -> vector<16x128xf32>
    %144 = arith.addf %124, %143 : vector<16x128xf32>
    %145 = vector.extract_strided_slice %4 {offsets = [16, 96], sizes = [16, 32], strides = [1, 1]} : vector<32x128xbf16> to vector<16x32xbf16>
    %146 = vector.extract_strided_slice %5 {offsets = [16, 96], sizes = [16, 32], strides = [1, 1]} : vector<32x128xbf16> to vector<16x32xbf16>
    %cst_49 = arith.constant dense<0.000000e+00> : vector<16x16xf32>
    %147 = tpu.matmul %145, %146, %cst_49 {dimension_numbers = #tpu.dot_dimension_numbers<[1], [1], [0], [0], [0, 0, 1, 0], [], []>} : vector<16x32xbf16>, vector<16x32xbf16>, vector<16x16xf32> -> vector<16x16xf32>
    %cst_50 = arith.constant dense<0xFF800000> : vector<16xf32>
    %148 = vector.multi_reduction <maximumf>, %147, %cst_50 [1] : vector<16x16xf32> to vector<16xf32>
    %149 = vector.shape_cast %148 : vector<16xf32> to vector<16x1xf32>
    %150 = vector.broadcast %149 : vector<16x1xf32> to vector<16x16xf32>
    %151 = arith.subf %147, %150 : vector<16x16xf32>
    %152 = math.exp %151 : vector<16x16xf32>
    %cst_51 = arith.constant dense<0.000000e+00> : vector<16xf32>
    %153 = vector.multi_reduction <add>, %152, %cst_51 [1] : vector<16x16xf32> to vector<16xf32>
    %154 = vector.shape_cast %153 : vector<16xf32> to vector<16x1xf32>
    %155 = tpu.reciprocal %154 {approx = true} : vector<16x1xf32> -> vector<16x1xf32>
    %156 = vector.broadcast %155 : vector<16x1xf32> to vector<16x16xf32>
    %157 = arith.mulf %152, %156 : vector<16x16xf32>
    %158 = arith.truncf %157 : vector<16x16xf32> to vector<16x16xbf16>
    %159 = vector.extract_strided_slice %6 {offsets = [16, 96], sizes = [16, 32], strides = [1, 1]} : vector<32x128xbf16> to vector<16x32xbf16>
    %cst_52 = arith.constant dense<0.000000e+00> : vector<16x32xf32>
    %160 = tpu.matmul %158, %159, %cst_52 {dimension_numbers = #tpu.dot_dimension_numbers<[1], [0], [0], [1], [0, 0, 1, 1], [], []>} : vector<16x16xbf16>, vector<16x32xbf16>, vector<16x32xf32> -> vector<16x32xf32>
    %161 = arith.truncf %160 : vector<16x32xf32> to vector<16x32xbf16>
    %c96_53 = arith.constant 96 : index
    %c0_54 = arith.constant 0 : index
    %162 = vector.load %arg5[%c96_53, %c0_54] : memref<128x128xbf16, #tpu.memory_space<vmem>>, vector<32x128xbf16>
    %cst_55 = arith.constant dense<0.000000e+00> : vector<16x128xf32>
    %163 = tpu.matmul %161, %162, %cst_55 {dimension_numbers = #tpu.dot_dimension_numbers<[1], [0], [0], [1], [0, 0, 1, 1], [], []>} : vector<16x32xbf16>, vector<32x128xbf16>, vector<16x128xf32> -> vector<16x128xf32>
    %164 = arith.addf %144, %163 : vector<16x128xf32>
    %165 = tpu.concatenate %85, %164 in 0 : vector<16x128xf32>, vector<16x128xf32> -> vector<32x128xf32>
    %c0_56 = arith.constant 0 : index
    %c0_57 = arith.constant 0 : index
    %166 = vector.load %arg6[%c0_56, %c0_57] : memref<1x128xf32, #tpu.memory_space<vmem>>, vector<1x128xf32>
    %167 = vector.broadcast %166 : vector<1x128xf32> to vector<32x128xf32>
    %168 = arith.addf %165, %167 : vector<32x128xf32>
    %169 = arith.extf %0 : vector<32x128xbf16> to vector<32x128xf32>
    %170 = arith.addf %168, %169 : vector<32x128xf32>
    %cst_58 = arith.constant dense<0.000000e+00> : vector<32xf32>
    %171 = vector.multi_reduction <add>, %170, %cst_58 [1] : vector<32x128xf32> to vector<32xf32>
    %172 = vector.shape_cast %171 : vector<32xf32> to vector<32x1xf32>
    %cst_59 = arith.constant 1.280000e+02 : f32
    %173 = vector.broadcast %cst_59 : f32 to vector<32x1xf32>
    %174 = arith.divf %172, %173 : vector<32x1xf32>
    %175 = vector.broadcast %174 : vector<32x1xf32> to vector<32x128xf32>
    %176 = arith.subf %170, %175 : vector<32x128xf32>
    %177 = arith.mulf %176, %176 : vector<32x128xf32>
    %cst_60 = arith.constant dense<0.000000e+00> : vector<32xf32>
    %178 = vector.multi_reduction <add>, %177, %cst_60 [1] : vector<32x128xf32> to vector<32xf32>
    %179 = vector.shape_cast %178 : vector<32xf32> to vector<32x1xf32>
    %cst_61 = arith.constant 1.280000e+02 : f32
    %180 = vector.broadcast %cst_61 : f32 to vector<32x1xf32>
    %181 = arith.divf %179, %180 : vector<32x1xf32>
    %182 = vector.broadcast %174 : vector<32x1xf32> to vector<32x128xf32>
    %183 = arith.subf %170, %182 : vector<32x128xf32>
    %cst_62 = arith.constant 9.99999974E-6 : f32
    %184 = vector.broadcast %cst_62 : f32 to vector<32x1xf32>
    %185 = arith.addf %181, %184 : vector<32x1xf32>
    %186 = math.rsqrt %185 : vector<32x1xf32>
    %187 = vector.broadcast %186 : vector<32x1xf32> to vector<32x128xf32>
    %188 = arith.mulf %183, %187 : vector<32x128xf32>
    %c0_63 = arith.constant 0 : index
    %c0_64 = arith.constant 0 : index
    %189 = vector.load %arg7[%c0_63, %c0_64] : memref<1x128xf32, #tpu.memory_space<vmem>>, vector<1x128xf32>
    %190 = vector.broadcast %189 : vector<1x128xf32> to vector<32x128xf32>
    %191 = arith.mulf %188, %190 : vector<32x128xf32>
    %c0_65 = arith.constant 0 : index
    %c0_66 = arith.constant 0 : index
    %192 = vector.load %arg8[%c0_65, %c0_66] : memref<1x128xf32, #tpu.memory_space<vmem>>, vector<1x128xf32>
    %193 = vector.broadcast %192 : vector<1x128xf32> to vector<32x128xf32>
    %194 = arith.addf %191, %193 : vector<32x128xf32>
    %c0_67 = arith.constant 0 : index
    %c0_68 = arith.constant 0 : index
    %195 = vector.load %arg2[%c0_67, %c0_68] : memref<32x128xbf16, #tpu.memory_space<vmem>>, vector<32x128xbf16>
    %c0_69 = arith.constant 0 : index
    %c0_70 = arith.constant 0 : index
    %196 = vector.load %arg9[%c0_69, %c0_70] : memref<128x128xbf16, #tpu.memory_space<vmem>>, vector<128x128xbf16>
    %cst_71 = arith.constant dense<0.000000e+00> : vector<32x128xf32>
    %197 = tpu.matmul %195, %196, %cst_71 {dimension_numbers = #tpu.dot_dimension_numbers<[1], [0], [0], [1], [0, 0, 1, 1], [], []>} : vector<32x128xbf16>, vector<128x128xbf16>, vector<32x128xf32> -> vector<32x128xf32>
    %c0_72 = arith.constant 0 : index
    %c0_73 = arith.constant 0 : index
    %198 = vector.load %arg3[%c0_72, %c0_73] : memref<32x128xbf16, #tpu.memory_space<vmem>>, vector<32x128xbf16>
    %c0_74 = arith.constant 0 : index
    %c0_75 = arith.constant 0 : index
    %199 = vector.load %arg10[%c0_74, %c0_75] : memref<128x128xbf16, #tpu.memory_space<vmem>>, vector<128x128xbf16>
    %cst_76 = arith.constant dense<0.000000e+00> : vector<32x128xf32>
    %200 = tpu.matmul %198, %199, %cst_76 {dimension_numbers = #tpu.dot_dimension_numbers<[1], [0], [0], [1], [0, 0, 1, 1], [], []>} : vector<32x128xbf16>, vector<128x128xbf16>, vector<32x128xf32> -> vector<32x128xf32>
    %201 = arith.truncf %194 : vector<32x128xf32> to vector<32x128xbf16>
    %c0_77 = arith.constant 0 : index
    %c0_78 = arith.constant 0 : index
    %202 = vector.load %arg11[%c0_77, %c0_78] : memref<128x128xbf16, #tpu.memory_space<vmem>>, vector<128x128xbf16>
    %cst_79 = arith.constant dense<0.000000e+00> : vector<32x128xf32>
    %203 = tpu.matmul %201, %202, %cst_79 {dimension_numbers = #tpu.dot_dimension_numbers<[1], [0], [0], [1], [0, 0, 1, 1], [], []>} : vector<32x128xbf16>, vector<128x128xbf16>, vector<32x128xf32> -> vector<32x128xf32>
    %204 = arith.truncf %197 : vector<32x128xf32> to vector<32x128xbf16>
    %205 = arith.truncf %200 : vector<32x128xf32> to vector<32x128xbf16>
    %206 = arith.truncf %203 : vector<32x128xf32> to vector<32x128xbf16>
    %207 = vector.extract_strided_slice %204 {offsets = [0, 0], sizes = [16, 32], strides = [1, 1]} : vector<32x128xbf16> to vector<16x32xbf16>
    %208 = vector.extract_strided_slice %205 {offsets = [0, 0], sizes = [16, 32], strides = [1, 1]} : vector<32x128xbf16> to vector<16x32xbf16>
    %cst_80 = arith.constant dense<0.000000e+00> : vector<16x16xf32>
    %209 = tpu.matmul %207, %208, %cst_80 {dimension_numbers = #tpu.dot_dimension_numbers<[1], [1], [0], [0], [0, 0, 1, 0], [], []>} : vector<16x32xbf16>, vector<16x32xbf16>, vector<16x16xf32> -> vector<16x16xf32>
    %cst_81 = arith.constant dense<0xFF800000> : vector<16xf32>
    %210 = vector.multi_reduction <maximumf>, %209, %cst_81 [1] : vector<16x16xf32> to vector<16xf32>
    %211 = vector.shape_cast %210 : vector<16xf32> to vector<16x1xf32>
    %212 = vector.broadcast %211 : vector<16x1xf32> to vector<16x16xf32>
    %213 = arith.subf %209, %212 : vector<16x16xf32>
    %214 = math.exp %213 : vector<16x16xf32>
    %cst_82 = arith.constant dense<0.000000e+00> : vector<16xf32>
    %215 = vector.multi_reduction <add>, %214, %cst_82 [1] : vector<16x16xf32> to vector<16xf32>
    %216 = vector.shape_cast %215 : vector<16xf32> to vector<16x1xf32>
    %217 = tpu.reciprocal %216 {approx = true} : vector<16x1xf32> -> vector<16x1xf32>
    %218 = vector.broadcast %217 : vector<16x1xf32> to vector<16x16xf32>
    %219 = arith.mulf %214, %218 : vector<16x16xf32>
    %220 = arith.truncf %219 : vector<16x16xf32> to vector<16x16xbf16>
    %221 = vector.extract_strided_slice %206 {offsets = [0, 0], sizes = [16, 32], strides = [1, 1]} : vector<32x128xbf16> to vector<16x32xbf16>
    %cst_83 = arith.constant dense<0.000000e+00> : vector<16x32xf32>
    %222 = tpu.matmul %220, %221, %cst_83 {dimension_numbers = #tpu.dot_dimension_numbers<[1], [0], [0], [1], [0, 0, 1, 1], [], []>} : vector<16x16xbf16>, vector<16x32xbf16>, vector<16x32xf32> -> vector<16x32xf32>
    %223 = arith.truncf %222 : vector<16x32xf32> to vector<16x32xbf16>
    %c0_84 = arith.constant 0 : index
    %c0_85 = arith.constant 0 : index
    %224 = vector.load %arg12[%c0_84, %c0_85] : memref<128x128xbf16, #tpu.memory_space<vmem>>, vector<32x128xbf16>
    %cst_86 = arith.constant dense<0.000000e+00> : vector<16x128xf32>
    %225 = tpu.matmul %223, %224, %cst_86 {dimension_numbers = #tpu.dot_dimension_numbers<[1], [0], [0], [1], [0, 0, 1, 1], [], []>} : vector<16x32xbf16>, vector<32x128xbf16>, vector<16x128xf32> -> vector<16x128xf32>
    %226 = vector.extract_strided_slice %204 {offsets = [0, 32], sizes = [16, 32], strides = [1, 1]} : vector<32x128xbf16> to vector<16x32xbf16>
    %227 = vector.extract_strided_slice %205 {offsets = [0, 32], sizes = [16, 32], strides = [1, 1]} : vector<32x128xbf16> to vector<16x32xbf16>
    %cst_87 = arith.constant dense<0.000000e+00> : vector<16x16xf32>
    %228 = tpu.matmul %226, %227, %cst_87 {dimension_numbers = #tpu.dot_dimension_numbers<[1], [1], [0], [0], [0, 0, 1, 0], [], []>} : vector<16x32xbf16>, vector<16x32xbf16>, vector<16x16xf32> -> vector<16x16xf32>
    %cst_88 = arith.constant dense<0xFF800000> : vector<16xf32>
    %229 = vector.multi_reduction <maximumf>, %228, %cst_88 [1] : vector<16x16xf32> to vector<16xf32>
    %230 = vector.shape_cast %229 : vector<16xf32> to vector<16x1xf32>
    %231 = vector.broadcast %230 : vector<16x1xf32> to vector<16x16xf32>
    %232 = arith.subf %228, %231 : vector<16x16xf32>
    %233 = math.exp %232 : vector<16x16xf32>
    %cst_89 = arith.constant dense<0.000000e+00> : vector<16xf32>
    %234 = vector.multi_reduction <add>, %233, %cst_89 [1] : vector<16x16xf32> to vector<16xf32>
    %235 = vector.shape_cast %234 : vector<16xf32> to vector<16x1xf32>
    %236 = tpu.reciprocal %235 {approx = true} : vector<16x1xf32> -> vector<16x1xf32>
    %237 = vector.broadcast %236 : vector<16x1xf32> to vector<16x16xf32>
    %238 = arith.mulf %233, %237 : vector<16x16xf32>
    %239 = arith.truncf %238 : vector<16x16xf32> to vector<16x16xbf16>
    %240 = vector.extract_strided_slice %206 {offsets = [0, 32], sizes = [16, 32], strides = [1, 1]} : vector<32x128xbf16> to vector<16x32xbf16>
    %cst_90 = arith.constant dense<0.000000e+00> : vector<16x32xf32>
    %241 = tpu.matmul %239, %240, %cst_90 {dimension_numbers = #tpu.dot_dimension_numbers<[1], [0], [0], [1], [0, 0, 1, 1], [], []>} : vector<16x16xbf16>, vector<16x32xbf16>, vector<16x32xf32> -> vector<16x32xf32>
    %242 = arith.truncf %241 : vector<16x32xf32> to vector<16x32xbf16>
    %c32_91 = arith.constant 32 : index
    %c0_92 = arith.constant 0 : index
    %243 = vector.load %arg12[%c32_91, %c0_92] : memref<128x128xbf16, #tpu.memory_space<vmem>>, vector<32x128xbf16>
    %cst_93 = arith.constant dense<0.000000e+00> : vector<16x128xf32>
    %244 = tpu.matmul %242, %243, %cst_93 {dimension_numbers = #tpu.dot_dimension_numbers<[1], [0], [0], [1], [0, 0, 1, 1], [], []>} : vector<16x32xbf16>, vector<32x128xbf16>, vector<16x128xf32> -> vector<16x128xf32>
    %245 = arith.addf %225, %244 : vector<16x128xf32>
    %246 = vector.extract_strided_slice %204 {offsets = [0, 64], sizes = [16, 32], strides = [1, 1]} : vector<32x128xbf16> to vector<16x32xbf16>
    %247 = vector.extract_strided_slice %205 {offsets = [0, 64], sizes = [16, 32], strides = [1, 1]} : vector<32x128xbf16> to vector<16x32xbf16>
    %cst_94 = arith.constant dense<0.000000e+00> : vector<16x16xf32>
    %248 = tpu.matmul %246, %247, %cst_94 {dimension_numbers = #tpu.dot_dimension_numbers<[1], [1], [0], [0], [0, 0, 1, 0], [], []>} : vector<16x32xbf16>, vector<16x32xbf16>, vector<16x16xf32> -> vector<16x16xf32>
    %cst_95 = arith.constant dense<0xFF800000> : vector<16xf32>
    %249 = vector.multi_reduction <maximumf>, %248, %cst_95 [1] : vector<16x16xf32> to vector<16xf32>
    %250 = vector.shape_cast %249 : vector<16xf32> to vector<16x1xf32>
    %251 = vector.broadcast %250 : vector<16x1xf32> to vector<16x16xf32>
    %252 = arith.subf %248, %251 : vector<16x16xf32>
    %253 = math.exp %252 : vector<16x16xf32>
    %cst_96 = arith.constant dense<0.000000e+00> : vector<16xf32>
    %254 = vector.multi_reduction <add>, %253, %cst_96 [1] : vector<16x16xf32> to vector<16xf32>
    %255 = vector.shape_cast %254 : vector<16xf32> to vector<16x1xf32>
    %256 = tpu.reciprocal %255 {approx = true} : vector<16x1xf32> -> vector<16x1xf32>
    %257 = vector.broadcast %256 : vector<16x1xf32> to vector<16x16xf32>
    %258 = arith.mulf %253, %257 : vector<16x16xf32>
    %259 = arith.truncf %258 : vector<16x16xf32> to vector<16x16xbf16>
    %260 = vector.extract_strided_slice %206 {offsets = [0, 64], sizes = [16, 32], strides = [1, 1]} : vector<32x128xbf16> to vector<16x32xbf16>
    %cst_97 = arith.constant dense<0.000000e+00> : vector<16x32xf32>
    %261 = tpu.matmul %259, %260, %cst_97 {dimension_numbers = #tpu.dot_dimension_numbers<[1], [0], [0], [1], [0, 0, 1, 1], [], []>} : vector<16x16xbf16>, vector<16x32xbf16>, vector<16x32xf32> -> vector<16x32xf32>
    %262 = arith.truncf %261 : vector<16x32xf32> to vector<16x32xbf16>
    %c64_98 = arith.constant 64 : index
    %c0_99 = arith.constant 0 : index
    %263 = vector.load %arg12[%c64_98, %c0_99] : memref<128x128xbf16, #tpu.memory_space<vmem>>, vector<32x128xbf16>
    %cst_100 = arith.constant dense<0.000000e+00> : vector<16x128xf32>
    %264 = tpu.matmul %262, %263, %cst_100 {dimension_numbers = #tpu.dot_dimension_numbers<[1], [0], [0], [1], [0, 0, 1, 1], [], []>} : vector<16x32xbf16>, vector<32x128xbf16>, vector<16x128xf32> -> vector<16x128xf32>
    %265 = arith.addf %245, %264 : vector<16x128xf32>
    %266 = vector.extract_strided_slice %204 {offsets = [0, 96], sizes = [16, 32], strides = [1, 1]} : vector<32x128xbf16> to vector<16x32xbf16>
    %267 = vector.extract_strided_slice %205 {offsets = [0, 96], sizes = [16, 32], strides = [1, 1]} : vector<32x128xbf16> to vector<16x32xbf16>
    %cst_101 = arith.constant dense<0.000000e+00> : vector<16x16xf32>
    %268 = tpu.matmul %266, %267, %cst_101 {dimension_numbers = #tpu.dot_dimension_numbers<[1], [1], [0], [0], [0, 0, 1, 0], [], []>} : vector<16x32xbf16>, vector<16x32xbf16>, vector<16x16xf32> -> vector<16x16xf32>
    %cst_102 = arith.constant dense<0xFF800000> : vector<16xf32>
    %269 = vector.multi_reduction <maximumf>, %268, %cst_102 [1] : vector<16x16xf32> to vector<16xf32>
    %270 = vector.shape_cast %269 : vector<16xf32> to vector<16x1xf32>
    %271 = vector.broadcast %270 : vector<16x1xf32> to vector<16x16xf32>
    %272 = arith.subf %268, %271 : vector<16x16xf32>
    %273 = math.exp %272 : vector<16x16xf32>
    %cst_103 = arith.constant dense<0.000000e+00> : vector<16xf32>
    %274 = vector.multi_reduction <add>, %273, %cst_103 [1] : vector<16x16xf32> to vector<16xf32>
    %275 = vector.shape_cast %274 : vector<16xf32> to vector<16x1xf32>
    %276 = tpu.reciprocal %275 {approx = true} : vector<16x1xf32> -> vector<16x1xf32>
    %277 = vector.broadcast %276 : vector<16x1xf32> to vector<16x16xf32>
    %278 = arith.mulf %273, %277 : vector<16x16xf32>
    %279 = arith.truncf %278 : vector<16x16xf32> to vector<16x16xbf16>
    %280 = vector.extract_strided_slice %206 {offsets = [0, 96], sizes = [16, 32], strides = [1, 1]} : vector<32x128xbf16> to vector<16x32xbf16>
    %cst_104 = arith.constant dense<0.000000e+00> : vector<16x32xf32>
    %281 = tpu.matmul %279, %280, %cst_104 {dimension_numbers = #tpu.dot_dimension_numbers<[1], [0], [0], [1], [0, 0, 1, 1], [], []>} : vector<16x16xbf16>, vector<16x32xbf16>, vector<16x32xf32> -> vector<16x32xf32>
    %282 = arith.truncf %281 : vector<16x32xf32> to vector<16x32xbf16>
    %c96_105 = arith.constant 96 : index
    %c0_106 = arith.constant 0 : index
    %283 = vector.load %arg12[%c96_105, %c0_106] : memref<128x128xbf16, #tpu.memory_space<vmem>>, vector<32x128xbf16>
    %cst_107 = arith.constant dense<0.000000e+00> : vector<16x128xf32>
    %284 = tpu.matmul %282, %283, %cst_107 {dimension_numbers = #tpu.dot_dimension_numbers<[1], [0], [0], [1], [0, 0, 1, 1], [], []>} : vector<16x32xbf16>, vector<32x128xbf16>, vector<16x128xf32> -> vector<16x128xf32>
    %285 = arith.addf %265, %284 : vector<16x128xf32>
    %286 = vector.extract_strided_slice %204 {offsets = [16, 0], sizes = [16, 32], strides = [1, 1]} : vector<32x128xbf16> to vector<16x32xbf16>
    %287 = vector.extract_strided_slice %205 {offsets = [16, 0], sizes = [16, 32], strides = [1, 1]} : vector<32x128xbf16> to vector<16x32xbf16>
    %cst_108 = arith.constant dense<0.000000e+00> : vector<16x16xf32>
    %288 = tpu.matmul %286, %287, %cst_108 {dimension_numbers = #tpu.dot_dimension_numbers<[1], [1], [0], [0], [0, 0, 1, 0], [], []>} : vector<16x32xbf16>, vector<16x32xbf16>, vector<16x16xf32> -> vector<16x16xf32>
    %cst_109 = arith.constant dense<0xFF800000> : vector<16xf32>
    %289 = vector.multi_reduction <maximumf>, %288, %cst_109 [1] : vector<16x16xf32> to vector<16xf32>
    %290 = vector.shape_cast %289 : vector<16xf32> to vector<16x1xf32>
    %291 = vector.broadcast %290 : vector<16x1xf32> to vector<16x16xf32>
    %292 = arith.subf %288, %291 : vector<16x16xf32>
    %293 = math.exp %292 : vector<16x16xf32>
    %cst_110 = arith.constant dense<0.000000e+00> : vector<16xf32>
    %294 = vector.multi_reduction <add>, %293, %cst_110 [1] : vector<16x16xf32> to vector<16xf32>
    %295 = vector.shape_cast %294 : vector<16xf32> to vector<16x1xf32>
    %296 = tpu.reciprocal %295 {approx = true} : vector<16x1xf32> -> vector<16x1xf32>
    %297 = vector.broadcast %296 : vector<16x1xf32> to vector<16x16xf32>
    %298 = arith.mulf %293, %297 : vector<16x16xf32>
    %299 = arith.truncf %298 : vector<16x16xf32> to vector<16x16xbf16>
    %300 = vector.extract_strided_slice %206 {offsets = [16, 0], sizes = [16, 32], strides = [1, 1]} : vector<32x128xbf16> to vector<16x32xbf16>
    %cst_111 = arith.constant dense<0.000000e+00> : vector<16x32xf32>
    %301 = tpu.matmul %299, %300, %cst_111 {dimension_numbers = #tpu.dot_dimension_numbers<[1], [0], [0], [1], [0, 0, 1, 1], [], []>} : vector<16x16xbf16>, vector<16x32xbf16>, vector<16x32xf32> -> vector<16x32xf32>
    %302 = arith.truncf %301 : vector<16x32xf32> to vector<16x32xbf16>
    %c0_112 = arith.constant 0 : index
    %c0_113 = arith.constant 0 : index
    %303 = vector.load %arg12[%c0_112, %c0_113] : memref<128x128xbf16, #tpu.memory_space<vmem>>, vector<32x128xbf16>
    %cst_114 = arith.constant dense<0.000000e+00> : vector<16x128xf32>
    %304 = tpu.matmul %302, %303, %cst_114 {dimension_numbers = #tpu.dot_dimension_numbers<[1], [0], [0], [1], [0, 0, 1, 1], [], []>} : vector<16x32xbf16>, vector<32x128xbf16>, vector<16x128xf32> -> vector<16x128xf32>
    %305 = vector.extract_strided_slice %204 {offsets = [16, 32], sizes = [16, 32], strides = [1, 1]} : vector<32x128xbf16> to vector<16x32xbf16>
    %306 = vector.extract_strided_slice %205 {offsets = [16, 32], sizes = [16, 32], strides = [1, 1]} : vector<32x128xbf16> to vector<16x32xbf16>
    %cst_115 = arith.constant dense<0.000000e+00> : vector<16x16xf32>
    %307 = tpu.matmul %305, %306, %cst_115 {dimension_numbers = #tpu.dot_dimension_numbers<[1], [1], [0], [0], [0, 0, 1, 0], [], []>} : vector<16x32xbf16>, vector<16x32xbf16>, vector<16x16xf32> -> vector<16x16xf32>
    %cst_116 = arith.constant dense<0xFF800000> : vector<16xf32>
    %308 = vector.multi_reduction <maximumf>, %307, %cst_116 [1] : vector<16x16xf32> to vector<16xf32>
    %309 = vector.shape_cast %308 : vector<16xf32> to vector<16x1xf32>
    %310 = vector.broadcast %309 : vector<16x1xf32> to vector<16x16xf32>
    %311 = arith.subf %307, %310 : vector<16x16xf32>
    %312 = math.exp %311 : vector<16x16xf32>
    %cst_117 = arith.constant dense<0.000000e+00> : vector<16xf32>
    %313 = vector.multi_reduction <add>, %312, %cst_117 [1] : vector<16x16xf32> to vector<16xf32>
    %314 = vector.shape_cast %313 : vector<16xf32> to vector<16x1xf32>
    %315 = tpu.reciprocal %314 {approx = true} : vector<16x1xf32> -> vector<16x1xf32>
    %316 = vector.broadcast %315 : vector<16x1xf32> to vector<16x16xf32>
    %317 = arith.mulf %312, %316 : vector<16x16xf32>
    %318 = arith.truncf %317 : vector<16x16xf32> to vector<16x16xbf16>
    %319 = vector.extract_strided_slice %206 {offsets = [16, 32], sizes = [16, 32], strides = [1, 1]} : vector<32x128xbf16> to vector<16x32xbf16>
    %cst_118 = arith.constant dense<0.000000e+00> : vector<16x32xf32>
    %320 = tpu.matmul %318, %319, %cst_118 {dimension_numbers = #tpu.dot_dimension_numbers<[1], [0], [0], [1], [0, 0, 1, 1], [], []>} : vector<16x16xbf16>, vector<16x32xbf16>, vector<16x32xf32> -> vector<16x32xf32>
    %321 = arith.truncf %320 : vector<16x32xf32> to vector<16x32xbf16>
    %c32_119 = arith.constant 32 : index
    %c0_120 = arith.constant 0 : index
    %322 = vector.load %arg12[%c32_119, %c0_120] : memref<128x128xbf16, #tpu.memory_space<vmem>>, vector<32x128xbf16>
    %cst_121 = arith.constant dense<0.000000e+00> : vector<16x128xf32>
    %323 = tpu.matmul %321, %322, %cst_121 {dimension_numbers = #tpu.dot_dimension_numbers<[1], [0], [0], [1], [0, 0, 1, 1], [], []>} : vector<16x32xbf16>, vector<32x128xbf16>, vector<16x128xf32> -> vector<16x128xf32>
    %324 = arith.addf %304, %323 : vector<16x128xf32>
    %325 = vector.extract_strided_slice %204 {offsets = [16, 64], sizes = [16, 32], strides = [1, 1]} : vector<32x128xbf16> to vector<16x32xbf16>
    %326 = vector.extract_strided_slice %205 {offsets = [16, 64], sizes = [16, 32], strides = [1, 1]} : vector<32x128xbf16> to vector<16x32xbf16>
    %cst_122 = arith.constant dense<0.000000e+00> : vector<16x16xf32>
    %327 = tpu.matmul %325, %326, %cst_122 {dimension_numbers = #tpu.dot_dimension_numbers<[1], [1], [0], [0], [0, 0, 1, 0], [], []>} : vector<16x32xbf16>, vector<16x32xbf16>, vector<16x16xf32> -> vector<16x16xf32>
    %cst_123 = arith.constant dense<0xFF800000> : vector<16xf32>
    %328 = vector.multi_reduction <maximumf>, %327, %cst_123 [1] : vector<16x16xf32> to vector<16xf32>
    %329 = vector.shape_cast %328 : vector<16xf32> to vector<16x1xf32>
    %330 = vector.broadcast %329 : vector<16x1xf32> to vector<16x16xf32>
    %331 = arith.subf %327, %330 : vector<16x16xf32>
    %332 = math.exp %331 : vector<16x16xf32>
    %cst_124 = arith.constant dense<0.000000e+00> : vector<16xf32>
    %333 = vector.multi_reduction <add>, %332, %cst_124 [1] : vector<16x16xf32> to vector<16xf32>
    %334 = vector.shape_cast %333 : vector<16xf32> to vector<16x1xf32>
    %335 = tpu.reciprocal %334 {approx = true} : vector<16x1xf32> -> vector<16x1xf32>
    %336 = vector.broadcast %335 : vector<16x1xf32> to vector<16x16xf32>
    %337 = arith.mulf %332, %336 : vector<16x16xf32>
    %338 = arith.truncf %337 : vector<16x16xf32> to vector<16x16xbf16>
    %339 = vector.extract_strided_slice %206 {offsets = [16, 64], sizes = [16, 32], strides = [1, 1]} : vector<32x128xbf16> to vector<16x32xbf16>
    %cst_125 = arith.constant dense<0.000000e+00> : vector<16x32xf32>
    %340 = tpu.matmul %338, %339, %cst_125 {dimension_numbers = #tpu.dot_dimension_numbers<[1], [0], [0], [1], [0, 0, 1, 1], [], []>} : vector<16x16xbf16>, vector<16x32xbf16>, vector<16x32xf32> -> vector<16x32xf32>
    %341 = arith.truncf %340 : vector<16x32xf32> to vector<16x32xbf16>
    %c64_126 = arith.constant 64 : index
    %c0_127 = arith.constant 0 : index
    %342 = vector.load %arg12[%c64_126, %c0_127] : memref<128x128xbf16, #tpu.memory_space<vmem>>, vector<32x128xbf16>
    %cst_128 = arith.constant dense<0.000000e+00> : vector<16x128xf32>
    %343 = tpu.matmul %341, %342, %cst_128 {dimension_numbers = #tpu.dot_dimension_numbers<[1], [0], [0], [1], [0, 0, 1, 1], [], []>} : vector<16x32xbf16>, vector<32x128xbf16>, vector<16x128xf32> -> vector<16x128xf32>
    %344 = arith.addf %324, %343 : vector<16x128xf32>
    %345 = vector.extract_strided_slice %204 {offsets = [16, 96], sizes = [16, 32], strides = [1, 1]} : vector<32x128xbf16> to vector<16x32xbf16>
    %346 = vector.extract_strided_slice %205 {offsets = [16, 96], sizes = [16, 32], strides = [1, 1]} : vector<32x128xbf16> to vector<16x32xbf16>
    %cst_129 = arith.constant dense<0.000000e+00> : vector<16x16xf32>
    %347 = tpu.matmul %345, %346, %cst_129 {dimension_numbers = #tpu.dot_dimension_numbers<[1], [1], [0], [0], [0, 0, 1, 0], [], []>} : vector<16x32xbf16>, vector<16x32xbf16>, vector<16x16xf32> -> vector<16x16xf32>
    %cst_130 = arith.constant dense<0xFF800000> : vector<16xf32>
    %348 = vector.multi_reduction <maximumf>, %347, %cst_130 [1] : vector<16x16xf32> to vector<16xf32>
    %349 = vector.shape_cast %348 : vector<16xf32> to vector<16x1xf32>
    %350 = vector.broadcast %349 : vector<16x1xf32> to vector<16x16xf32>
    %351 = arith.subf %347, %350 : vector<16x16xf32>
    %352 = math.exp %351 : vector<16x16xf32>
    %cst_131 = arith.constant dense<0.000000e+00> : vector<16xf32>
    %353 = vector.multi_reduction <add>, %352, %cst_131 [1] : vector<16x16xf32> to vector<16xf32>
    %354 = vector.shape_cast %353 : vector<16xf32> to vector<16x1xf32>
    %355 = tpu.reciprocal %354 {approx = true} : vector<16x1xf32> -> vector<16x1xf32>
    %356 = vector.broadcast %355 : vector<16x1xf32> to vector<16x16xf32>
    %357 = arith.mulf %352, %356 : vector<16x16xf32>
    %358 = arith.truncf %357 : vector<16x16xf32> to vector<16x16xbf16>
    %359 = vector.extract_strided_slice %206 {offsets = [16, 96], sizes = [16, 32], strides = [1, 1]} : vector<32x128xbf16> to vector<16x32xbf16>
    %cst_132 = arith.constant dense<0.000000e+00> : vector<16x32xf32>
    %360 = tpu.matmul %358, %359, %cst_132 {dimension_numbers = #tpu.dot_dimension_numbers<[1], [0], [0], [1], [0, 0, 1, 1], [], []>} : vector<16x16xbf16>, vector<16x32xbf16>, vector<16x32xf32> -> vector<16x32xf32>
    %361 = arith.truncf %360 : vector<16x32xf32> to vector<16x32xbf16>
    %c96_133 = arith.constant 96 : index
    %c0_134 = arith.constant 0 : index
    %362 = vector.load %arg12[%c96_133, %c0_134] : memref<128x128xbf16, #tpu.memory_space<vmem>>, vector<32x128xbf16>
    %cst_135 = arith.constant dense<0.000000e+00> : vector<16x128xf32>
    %363 = tpu.matmul %361, %362, %cst_135 {dimension_numbers = #tpu.dot_dimension_numbers<[1], [0], [0], [1], [0, 0, 1, 1], [], []>} : vector<16x32xbf16>, vector<32x128xbf16>, vector<16x128xf32> -> vector<16x128xf32>
    %364 = arith.addf %344, %363 : vector<16x128xf32>
    %365 = tpu.concatenate %285, %364 in 0 : vector<16x128xf32>, vector<16x128xf32> -> vector<32x128xf32>
    %c0_136 = arith.constant 0 : index
    %c0_137 = arith.constant 0 : index
    %366 = vector.load %arg13[%c0_136, %c0_137] : memref<1x128xf32, #tpu.memory_space<vmem>>, vector<1x128xf32>
    %367 = vector.broadcast %366 : vector<1x128xf32> to vector<32x128xf32>
    %368 = arith.addf %365, %367 : vector<32x128xf32>
    %369 = arith.addf %368, %194 : vector<32x128xf32>
    %cst_138 = arith.constant dense<0.000000e+00> : vector<32xf32>
    %370 = vector.multi_reduction <add>, %369, %cst_138 [1] : vector<32x128xf32> to vector<32xf32>
    %371 = vector.shape_cast %370 : vector<32xf32> to vector<32x1xf32>
    %cst_139 = arith.constant 1.280000e+02 : f32
    %372 = vector.broadcast %cst_139 : f32 to vector<32x1xf32>
    %373 = arith.divf %371, %372 : vector<32x1xf32>
    %374 = vector.broadcast %373 : vector<32x1xf32> to vector<32x128xf32>
    %375 = arith.subf %369, %374 : vector<32x128xf32>
    %376 = arith.mulf %375, %375 : vector<32x128xf32>
    %cst_140 = arith.constant dense<0.000000e+00> : vector<32xf32>
    %377 = vector.multi_reduction <add>, %376, %cst_140 [1] : vector<32x128xf32> to vector<32xf32>
    %378 = vector.shape_cast %377 : vector<32xf32> to vector<32x1xf32>
    %cst_141 = arith.constant 1.280000e+02 : f32
    %379 = vector.broadcast %cst_141 : f32 to vector<32x1xf32>
    %380 = arith.divf %378, %379 : vector<32x1xf32>
    %381 = vector.broadcast %373 : vector<32x1xf32> to vector<32x128xf32>
    %382 = arith.subf %369, %381 : vector<32x128xf32>
    %cst_142 = arith.constant 9.99999974E-6 : f32
    %383 = vector.broadcast %cst_142 : f32 to vector<32x1xf32>
    %384 = arith.addf %380, %383 : vector<32x1xf32>
    %385 = math.rsqrt %384 : vector<32x1xf32>
    %386 = vector.broadcast %385 : vector<32x1xf32> to vector<32x128xf32>
    %387 = arith.mulf %382, %386 : vector<32x128xf32>
    %c0_143 = arith.constant 0 : index
    %c0_144 = arith.constant 0 : index
    %388 = vector.load %arg14[%c0_143, %c0_144] : memref<1x128xf32, #tpu.memory_space<vmem>>, vector<1x128xf32>
    %389 = vector.broadcast %388 : vector<1x128xf32> to vector<32x128xf32>
    %390 = arith.mulf %387, %389 : vector<32x128xf32>
    %c0_145 = arith.constant 0 : index
    %c0_146 = arith.constant 0 : index
    %391 = vector.load %arg15[%c0_145, %c0_146] : memref<1x128xf32, #tpu.memory_space<vmem>>, vector<1x128xf32>
    %392 = vector.broadcast %391 : vector<1x128xf32> to vector<32x128xf32>
    %393 = arith.addf %390, %392 : vector<32x128xf32>
    %394 = arith.truncf %393 : vector<32x128xf32> to vector<32x128xbf16>
    %c0_147 = arith.constant 0 : index
    %c0_148 = arith.constant 0 : index
    %395 = vector.load %arg16[%c0_147, %c0_148] : memref<128x512xbf16, #tpu.memory_space<vmem>>, vector<128x512xbf16>
    %cst_149 = arith.constant dense<0.000000e+00> : vector<32x512xf32>
    %396 = tpu.matmul %394, %395, %cst_149 {dimension_numbers = #tpu.dot_dimension_numbers<[1], [0], [0], [1], [0, 0, 1, 1], [], []>} : vector<32x128xbf16>, vector<128x512xbf16>, vector<32x512xf32> -> vector<32x512xf32>
    %c0_150 = arith.constant 0 : index
    %c0_151 = arith.constant 0 : index
    %397 = vector.load %arg17[%c0_150, %c0_151] : memref<1x512xf32, #tpu.memory_space<vmem>>, vector<1x512xf32>
    %398 = vector.broadcast %397 : vector<1x512xf32> to vector<32x512xf32>
    %399 = arith.addf %396, %398 : vector<32x512xf32>
    %cst_152 = arith.constant 0.000000e+00 : f32
    %400 = vector.broadcast %cst_152 : f32 to vector<32x512xf32>
    %401 = arith.maximumf %399, %400 : vector<32x512xf32>
    %402 = arith.truncf %401 : vector<32x512xf32> to vector<32x512xbf16>
    %c0_153 = arith.constant 0 : index
    %c0_154 = arith.constant 0 : index
    %403 = vector.load %arg18[%c0_153, %c0_154] : memref<512x128xbf16, #tpu.memory_space<vmem>>, vector<512x128xbf16>
    %cst_155 = arith.constant dense<0.000000e+00> : vector<32x128xf32>
    %404 = tpu.matmul %402, %403, %cst_155 {dimension_numbers = #tpu.dot_dimension_numbers<[1], [0], [0], [1], [0, 0, 1, 1], [], []>} : vector<32x512xbf16>, vector<512x128xbf16>, vector<32x128xf32> -> vector<32x128xf32>
    %c0_156 = arith.constant 0 : index
    %c0_157 = arith.constant 0 : index
    %405 = vector.load %arg19[%c0_156, %c0_157] : memref<1x128xf32, #tpu.memory_space<vmem>>, vector<1x128xf32>
    %406 = vector.broadcast %405 : vector<1x128xf32> to vector<32x128xf32>
    %407 = arith.addf %404, %406 : vector<32x128xf32>
    %408 = arith.addf %407, %393 : vector<32x128xf32>
    %cst_158 = arith.constant dense<0.000000e+00> : vector<32xf32>
    %409 = vector.multi_reduction <add>, %408, %cst_158 [1] : vector<32x128xf32> to vector<32xf32>
    %410 = vector.shape_cast %409 : vector<32xf32> to vector<32x1xf32>
    %cst_159 = arith.constant 1.280000e+02 : f32
    %411 = vector.broadcast %cst_159 : f32 to vector<32x1xf32>
    %412 = arith.divf %410, %411 : vector<32x1xf32>
    %413 = vector.broadcast %412 : vector<32x1xf32> to vector<32x128xf32>
    %414 = arith.subf %408, %413 : vector<32x128xf32>
    %415 = arith.mulf %414, %414 : vector<32x128xf32>
    %cst_160 = arith.constant dense<0.000000e+00> : vector<32xf32>
    %416 = vector.multi_reduction <add>, %415, %cst_160 [1] : vector<32x128xf32> to vector<32xf32>
    %417 = vector.shape_cast %416 : vector<32xf32> to vector<32x1xf32>
    %cst_161 = arith.constant 1.280000e+02 : f32
    %418 = vector.broadcast %cst_161 : f32 to vector<32x1xf32>
    %419 = arith.divf %417, %418 : vector<32x1xf32>
    %420 = vector.broadcast %412 : vector<32x1xf32> to vector<32x128xf32>
    %421 = arith.subf %408, %420 : vector<32x128xf32>
    %cst_162 = arith.constant 9.99999974E-6 : f32
    %422 = vector.broadcast %cst_162 : f32 to vector<32x1xf32>
    %423 = arith.addf %419, %422 : vector<32x1xf32>
    %424 = math.rsqrt %423 : vector<32x1xf32>
    %425 = vector.broadcast %424 : vector<32x1xf32> to vector<32x128xf32>
    %426 = arith.mulf %421, %425 : vector<32x128xf32>
    %c0_163 = arith.constant 0 : index
    %c0_164 = arith.constant 0 : index
    %427 = vector.load %arg20[%c0_163, %c0_164] : memref<1x128xf32, #tpu.memory_space<vmem>>, vector<1x128xf32>
    %428 = vector.broadcast %427 : vector<1x128xf32> to vector<32x128xf32>
    %429 = arith.mulf %426, %428 : vector<32x128xf32>
    %c0_165 = arith.constant 0 : index
    %c0_166 = arith.constant 0 : index
    %430 = vector.load %arg21[%c0_165, %c0_166] : memref<1x128xf32, #tpu.memory_space<vmem>>, vector<1x128xf32>
    %431 = vector.broadcast %430 : vector<1x128xf32> to vector<32x128xf32>
    %432 = arith.addf %429, %431 : vector<32x128xf32>
    %c0_167 = arith.constant 0 : index
    %c0_168 = arith.constant 0 : index
    %433 = vector.load %arg22[%c0_167, %c0_168] : memref<32x128xf32, #tpu.memory_space<vmem>>, vector<32x128xf32>
    tpu.vector_store %arg22[%c0_167, %c0_168], %432 {strides = array<i32>} : memref<32x128xf32, #tpu.memory_space<vmem>>, vector<32x128xf32>,
    return
  }
  func.func @transform_0(%arg0: i32) -> (i32, i32) {
    %c0_i32 = arith.constant 0 : i32
    %c0_i32_0 = arith.constant 0 : i32
    return %arg0, %c0_i32 : i32, i32
  }
  func.func @transform_1(%arg0: i32) -> (i32, i32) {
    %c0_i32 = arith.constant 0 : i32
    %c0_i32_0 = arith.constant 0 : i32
    return %arg0, %c0_i32 : i32, i32
  }
  func.func @transform_2(%arg0: i32) -> (i32, i32) {
    %c0_i32 = arith.constant 0 : i32
    %c0_i32_0 = arith.constant 0 : i32
    return %arg0, %c0_i32 : i32, i32
  }
  func.func @transform_3(%arg0: i32) -> (i32, i32) {
    %c0_i32 = arith.constant 0 : i32
    %c0_i32_0 = arith.constant 0 : i32
    %c0_i32_1 = arith.constant 0 : i32
    return %c0_i32, %c0_i32_0 : i32, i32
  }
  func.func @transform_4(%arg0: i32) -> (i32, i32) {
    %c0_i32 = arith.constant 0 : i32
    %c0_i32_0 = arith.constant 0 : i32
    %c0_i32_1 = arith.constant 0 : i32
    return %c0_i32, %c0_i32_0 : i32, i32
  }
  func.func @transform_5(%arg0: i32) -> (i32, i32) {
    %c0_i32 = arith.constant 0 : i32
    %c0_i32_0 = arith.constant 0 : i32
    %c0_i32_1 = arith.constant 0 : i32
    return %c0_i32, %c0_i32_0 : i32, i32
  }
  func.func @transform_6(%arg0: i32) -> (i32, i32) {
    %c0_i32 = arith.constant 0 : i32
    %c0_i32_0 = arith.constant 0 : i32
    %c0_i32_1 = arith.constant 0 : i32
    return %c0_i32, %c0_i32_0 : i32, i32
  }
  func.func @transform_7(%arg0: i32) -> (i32, i32) {
    %c0_i32 = arith.constant 0 : i32
    %c0_i32_0 = arith.constant 0 : i32
    %c0_i32_1 = arith.constant 0 : i32
    return %c0_i32, %c0_i32_0 : i32, i32
  }
  func.func @transform_8(%arg0: i32) -> (i32, i32) {
    %c0_i32 = arith.constant 0 : i32
    %c0_i32_0 = arith.constant 0 : i32
    %c0_i32_1 = arith.constant 0 : i32
    return %c0_i32, %c0_i32_0 : i32, i32
  }
  func.func @transform_9(%arg0: i32) -> (i32, i32) {
    %c0_i32 = arith.constant 0 : i32
    %c0_i32_0 = arith.constant 0 : i32
    %c0_i32_1 = arith.constant 0 : i32
    return %c0_i32, %c0_i32_0 : i32, i32
  }
  func.func @transform_10(%arg0: i32) -> (i32, i32) {
    %c0_i32 = arith.constant 0 : i32
    %c0_i32_0 = arith.constant 0 : i32
    %c0_i32_1 = arith.constant 0 : i32
    return %c0_i32, %c0_i32_0 : i32, i32
  }
  func.func @transform_11(%arg0: i32) -> (i32, i32) {
    %c0_i32 = arith.constant 0 : i32
    %c0_i32_0 = arith.constant 0 : i32
    %c0_i32_1 = arith.constant 0 : i32
    return %c0_i32, %c0_i32_0 : i32, i32
  }
  func.func @transform_12(%arg0: i32) -> (i32, i32) {
    %c0_i32 = arith.constant 0 : i32
    %c0_i32_0 = arith.constant 0 : i32
    %c0_i32_1 = arith.constant 0 : i32
    return %c0_i32, %c0_i32_0 : i32, i32
  }
  func.func @transform_13(%arg0: i32) -> (i32, i32) {
    %c0_i32 = arith.constant 0 : i32
    %c0_i32_0 = arith.constant 0 : i32
    %c0_i32_1 = arith.constant 0 : i32
    return %c0_i32, %c0_i32_0 : i32, i32
  }
  func.func @transform_14(%arg0: i32) -> (i32, i32) {
    %c0_i32 = arith.constant 0 : i32
    %c0_i32_0 = arith.constant 0 : i32
    %c0_i32_1 = arith.constant 0 : i32
    return %c0_i32, %c0_i32_0 : i32, i32
  }
  func.func @transform_15(%arg0: i32) -> (i32, i32) {
    %c0_i32 = arith.constant 0 : i32
    %c0_i32_0 = arith.constant 0 : i32
    %c0_i32_1 = arith.constant 0 : i32
    return %c0_i32, %c0_i32_0 : i32, i32
  }
  func.func @transform_16(%arg0: i32) -> (i32, i32) {
    %c0_i32 = arith.constant 0 : i32
    %c0_i32_0 = arith.constant 0 : i32
    %c0_i32_1 = arith.constant 0 : i32
    return %c0_i32, %c0_i32_0 : i32, i32
  }
  func.func @transform_17(%arg0: i32) -> (i32, i32) {
    %c0_i32 = arith.constant 0 : i32
    %c0_i32_0 = arith.constant 0 : i32
    %c0_i32_1 = arith.constant 0 : i32
    return %c0_i32, %c0_i32_0 : i32, i32
  }
  func.func @transform_18(%arg0: i32) -> (i32, i32) {
    %c0_i32 = arith.constant 0 : i32
    %c0_i32_0 = arith.constant 0 : i32
    %c0_i32_1 = arith.constant 0 : i32
    return %c0_i32, %c0_i32_0 : i32, i32
  }
  func.func @transform_19(%arg0: i32) -> (i32, i32) {
    %c0_i32 = arith.constant 0 : i32
    %c0_i32_0 = arith.constant 0 : i32
    %c0_i32_1 = arith.constant 0 : i32
    return %c0_i32, %c0_i32_0 : i32, i32
  }
  func.func @transform_20(%arg0: i32) -> (i32, i32) {
    %c0_i32 = arith.constant 0 : i32
    %c0_i32_0 = arith.constant 0 : i32
    %c0_i32_1 = arith.constant 0 : i32
    return %c0_i32, %c0_i32_0 : i32, i32
  }
  func.func @transform_21(%arg0: i32) -> (i32, i32) {
    %c0_i32 = arith.constant 0 : i32
    %c0_i32_0 = arith.constant 0 : i32
    return %arg0, %c0_i32 : i32, i32
  }
}

</mosaic_0001>

<bundles_post_ra>
// kernel: transformer_decoder_layer.1
= control target key start
LH: loop header
LB: loop body
LE: loop exit
PB: predicated region body
PF: predicated region fallthrough
CT: control target
= control target key end

     0   :  { %s6751_s0 = inlined_call_operand.vmem [shape: bf16[32,128], index: 0, kind: input, shape index: {}]   ;;  %s6752_s1 = inlined_call_operand.vmem [shape: bf16[32,128], index: 1, kind: input, shape index: {}]   ;;  %s6753_s2 = inlined_call_operand.vmem [shape: bf16[32,128], index: 2, kind: input, shape index: {}]   ;;  %s6754_s3 = inlined_call_operand.hbm [shape: bf16[128,384], index: 3, kind: input, shape index: {}]   ;;  %s6755_s4 = inlined_call_operand.vmem [shape: bf16[128,128], index: 4, kind: input, shape index: {}]   ;;  %s6756_s5 = inlined_call_operand.vmem [shape: f32[1,128], index: 5, kind: input, shape index: {}]   ;;  %s6757_s6 = inlined_call_operand.vmem [shape: f32[1,128], index: 6, kind: input, shape index: {}]   ;;  %s6758_s7 = inlined_call_operand.vmem [shape: f32[1,128], index: 7, kind: input, shape index: {}]   ;;  %s6759_s8 = inlined_call_operand.vmem [shape: bf16[128,128], index: 8, kind: input, shape index: {}]   ;;  %s6760_s9 = inlined_call_operand.hbm [shape: bf16[128,128], index: 9, kind: input, shape index: {}]   ;;  %s6761_s10 = inlined_call_operand.hbm [shape: bf16[128,128], index: 10, kind: input, shape index: {}]   ;;  %s6762_s11 = inlined_call_operand.hbm [shape: bf16[128,128], index: 11, kind: input, shape index: {}]   ;;  %s6763_s12 = inlined_call_operand.vmem [shape: f32[1,128], index: 12, kind: input, shape index: {}]   ;;  %s6764_s13 = inlined_call_operand.vmem [shape: f32[1,128], index: 13, kind: input, shape index: {}]   ;;  %s6765_s14 = inlined_call_operand.vmem [shape: f32[1,128], index: 14, kind: input, shape index: {}]   ;;  %s6766_s15 = inlined_call_operand.hbm [shape: bf16[128,512], index: 15, kind: input, shape index: {}]   ;;  %s6767_s16 = inlined_call_operand.vmem [shape: f32[1,512], index: 16, kind: input, shape index: {}]   ;;  %s6768_s17 = inlined_call_operand.hbm [shape: bf16[512,128], index: 17, kind: input, shape index: {}]   ;;  %s6769_s18 = inlined_call_operand.vmem [shape: f32[1,128], index: 18, kind: input, shape index: {}]   ;;  %s6770_s19 = inlined_call_operand.vmem [shape: f32[1,128], index: 19, kind: input, shape index: {}]   ;;  %s6771_s20 = inlined_call_operand.vmem [shape: f32[1,128], index: 20, kind: input, shape index: {}]   ;;  %s6772_s21 = inlined_call_operand.hbm [shape: f32[32,128], index: 21, kind: output, shape index: {}]  }
   0x1   :  { %6777 = sst [smem:[#allocation19_spill]] %s6751_s0 }
   0x2   :  { %6778 = sst [smem:[#allocation20_spill]] %s6752_s1 }
   0x3   :  { %6779 = sst [smem:[#allocation21_spill]] %s6753_s2 }
   0x4   :  { %6780 = sst [smem:[#allocation22_spill]] %s6754_s3 }
   0x5   :  { %6781 = sst [smem:[#allocation23_spill]] %s6755_s4 }
   0x6   :  { %6782 = sst [smem:[#allocation24_spill]] %s6756_s5 }
   0x7   :  { %26 = vsyncpa [#allocation3], 0 }
   0x8   :  { %27 = vsyncpa [#allocation6], 0 }
   0x9   :  { %28 = vsyncpa [#allocation9], 0 }
   0xa   :  { %29 = vsyncpa [#allocation12], 0 }
   0xb   :  { %30 = vsyncpa [#allocation4], 0  ;;  %s5852_s2 = smov [#allocation5]  }
   0xc   :  { %s64_s25 = sshll.u32 %s5852_s2, 4  ;;  %s65_s25 = int_to_ptr.vmem [resolvable:$true] %s64_s25 }
   0xd   :  { %s5710_s26 = scalar_lea.vmem %s65_s25, 1024  ;;  %p5715_p1 = scmp.lt.s32.totalorder %s65_s25, %s65_s25 }
   0xe   :  { %p5711_p0 = scmp.ne.s32.totalorder %s65_s25, %s5710_s26  ;;  %p5716_p2 = scmp.lt.s32.totalorder %s5710_s26, %s5710_s26 }
  0x10   :  { %p5717_p3 = por %p5716_p2, %p5715_p1 }
  0x12   :  { %p5718_p4 = pnand %p5717_p3, %p5711_p0 }
  0x14   :  { %5721 = shalt.err (!%p5718_p4)
}
  0x15   :  { %s5853_s27 = smov 64   ;;  %s5854_s3 = smov 4  }
  0x16   :  { %70 = dma.hbm_to_vmem [thread:$0]  %s6760_s9, 1024, %s65_s25, [#allocation6], %s5853_s27, %s5853_s27, %s5854_s3  }
  0x17   :  { %s5855_s0 = smov [#allocation8]   ;;  %s5856_s30 = smov [#allocation2]  }
  0x18   :  { %s88_s4 = sshll.u32 %s5855_s0, 4  ;;  %s42_s5 = sshll.u32 %s5856_s30, 4  ;;  %s89_s4 = int_to_ptr.vmem [resolvable:$true] %s88_s4  ;;  %s43_s5 = int_to_ptr.vmem [resolvable:$true] %s42_s5 }
  0x19   :  { %s5730_s22 = scalar_lea.vmem %s89_s4, 1024  ;;  %p5735_p6 = scmp.lt.s32.totalorder %s89_s4, %s89_s4 }
  0x1a   :  { %p5731_p5 = scmp.ne.s32.totalorder %s89_s4, %s5730_s22  ;;  %p5736_p7 = scmp.lt.s32.totalorder %s5730_s22, %s5730_s22 }
  0x1c   :  { %p5737_p8 = por %p5736_p7, %p5735_p6 }
  0x1e   :  { %p5738_p9 = pnand %p5737_p8, %p5731_p5 }
  0x20   :  { %5741 = shalt.err (!%p5738_p9)
}
  0x21   :  { %94 = dma.hbm_to_vmem [thread:$0]  %s6762_s11, 1024, %s89_s4, [#allocation9], %s5853_s27, %s5853_s27, %s5854_s3  }
  0x22   :  { %s5750_s9 = scalar_lea.vmem %s43_s5, 3072  ;;  %p5755_p11 = scmp.lt.s32.totalorder %s43_s5, %s43_s5 }
  0x23   :  { %p5751_p10 = scmp.ne.s32.totalorder %s43_s5, %s5750_s9  ;;  %p5756_p12 = scmp.lt.s32.totalorder %s5750_s9, %s5750_s9 }
  0x25   :  { %p5757_p13 = por %p5756_p12, %p5755_p11 }
  0x27   :  { %p5758_p0 = pnand %p5757_p13, %p5751_p10 }
  0x29   :  { %5761 = shalt.err (!%p5758_p0)
}
  0x2a   :  { %s5857_s24 = smov 192   ;;  %s5858_s2 = smov 12  }
  0x2b   :  { %s6783_s28 = sld [smem:[#allocation22_spill]]  ;;  %s5859_s29 = smov [#allocation7]  }
  0x2c   :  { %s76_s0 = sshll.u32 %s5859_s29, 4  ;;  %s5860_s30 = smov [#allocation10]   ;;  %s77_s0 = int_to_ptr.vmem [resolvable:$true] %s76_s0 }
  0x2d   :  { %s106_s22 = sshll.u32 %s5860_s30, 4  ;;  %s5770_s11 = scalar_lea.vmem %s77_s0, 1024  ;;  %s107_s22 = int_to_ptr.vmem [resolvable:$true] %s106_s22 }
  0x2e   :  { %p5771_p1 = scmp.ne.s32.totalorder %s77_s0, %s5770_s11  ;;  %p5775_p2 = scmp.lt.s32.totalorder %s77_s0, %s77_s0 }
  0x2f   :  { %p5776_p3 = scmp.lt.s32.totalorder %s5770_s11, %s5770_s11 }
  0x31   :  { %48 = dma.hbm_to_vmem [thread:$0]  %s6783_s28, 3072, %s43_s5, [#allocation3], %s5857_s24, %s5857_s24, %s5858_s2  }
  0x32   :  { %p5777_p4 = por %p5776_p3, %p5775_p2 }
  0x34   :  { %p5778_p5 = pnand %p5777_p4, %p5771_p1 }
  0x36   :  { %5781 = shalt.err (!%p5778_p5)
}
  0x37   :  { %82 = dma.hbm_to_vmem [thread:$0]  %s6761_s10, 1024, %s77_s0, [#allocation6], %s5853_s27, %s5853_s27, %s5854_s3  }
  0x38   :  { %s5790_s5 = scalar_lea.vmem %s107_s22, 4096  ;;  %p5795_p7 = scmp.lt.s32.totalorder %s107_s22, %s107_s22 }
  0x39   :  { %p5791_p6 = scmp.ne.s32.totalorder %s107_s22, %s5790_s5  ;;  %p5796_p8 = scmp.lt.s32.totalorder %s5790_s5, %s5790_s5 }
  0x3b   :  { %p5797_p9 = por %p5796_p8, %p5795_p7 }
  0x3d   :  { %p5798_p10 = pnand %p5797_p9, %p5791_p6 }
  0x3f   :  { %5801 = shalt.err (!%p5798_p10)
}
  0x40   :  { %s5861_s1 = smov 256   ;;  %s5862_s9 = smov 16  }
  0x41   :  { %112 = dma.hbm_to_vmem [thread:$0]  %s6766_s15, 4096, %s107_s22, [#allocation9], %s5861_s1, %s5861_s1, %s5862_s9  }
  0x42   :  { %s5863_s25 = smov [#allocation11]  }
  0x43   :  { %s120_s26 = sshll.u32 %s5863_s25, 4  ;;  %s121_s26 = int_to_ptr.vmem [resolvable:$true] %s120_s26 }
  0x44   :  { %s5810_s28 = scalar_lea.vmem %s121_s26, 4096  ;;  %p5815_p12 = scmp.lt.s32.totalorder %s121_s26, %s121_s26 }
  0x45   :  { %p5811_p11 = scmp.ne.s32.totalorder %s121_s26, %s5810_s28  ;;  %p5816_p13 = scmp.lt.s32.totalorder %s5810_s28, %s5810_s28 }
  0x47   :  { %p5817_p0 = por %p5816_p13, %p5815_p12 }
  0x49   :  { %p5818_p1 = pnand %p5817_p0, %p5811_p11 }
  0x4b   :  { %5821 = shalt.err (!%p5818_p1)
}
  0x4c   :  { %126 = dma.hbm_to_vmem [thread:$0]  %s6768_s17, 4096, %s121_s26, [#allocation12], %s5853_s27, %s5853_s27, %s5854_s3  }
  0x4d   :  { %5842 = dma.done.wait [#allocation3], 3072  }
  0x4e   :  { %5843 = vsyncadd [#allocation3], 4294964224 }
  0x4f   :  { %5844 = dma.done.wait [#allocation6], 2048  }
  0x50   :  { %5845 = vsyncadd [#allocation6], 4294965248 }
  0x51   :  { %5846 = dma.done.wait [#allocation9], 5120  }
  0x52   :  { %5847 = vsyncadd [#allocation9], 4294962176 }
  0x53   :  { %5848 = dma.done.wait [#allocation12], 4096  }
  0x54   :  { %5849 = vsyncadd [#allocation12], 4294963200  ;;  %v5864_v0 = vmov 0   ;;  %v5388_v1 = vld [vmem:[#allocation2 + $0xac] ss:$12 sps:$4 sm:$0xff]   ;;  %s6784_s3 = sld [smem:[#allocation19_spill]] }
  0x55   :  { %360 = vmatprep.mubr.bf16.mxu0 %v5864_v0  ;;  %v5390_v2 = vld [vmem:[#allocation2 + $0xa8] ss:$12 sps:$4 sm:$0xff]   ;;  %328 = vmatprep.subr.bf16.mxu0 %v5388_v1  ;;  %v5393_v4 = vld [vmem:[#allocation2 + $0x90] ss:$12 sps:$4 sm:$0xff]   ;;  %v5396_v6 = vld [vmem:[#allocation2 + $0x78] ss:$12 sps:$4 sm:$0xff]  }
  0x56   :  { %v5391_v3 = vld [vmem:[#allocation2 + $0x94] ss:$12 sps:$4 sm:$0xff]   ;;  %329 = vmatpush1.bf16.msra.mxu0 %v5390_v2  ;;  %v5394_v5 = vld [vmem:[#allocation2 + $0x7c] ss:$12 sps:$4 sm:$0xff]   ;;  %v5397_v7 = vld [vmem:[#allocation2 + $0x64] ss:$12 sps:$4 sm:$0xff]  }
  0x57   :  { %330 = vmatprep.subr.bf16.mxu0 %v5391_v3  ;;  %v5399_v8 = vld [vmem:[#allocation2 + $0x60] ss:$12 sps:$4 sm:$0xff]   ;;  %v5413_v11 = vld [vmem:[#allocation2 + $0xb0] ss:$12 sps:$4 sm:$0xff]   ;;  %v5414_v12 = vld [vmem:[#allocation2 + $0x98] ss:$12 sps:$4 sm:$0xff]  }
  0x58   :  { %v5400_v9 = vld [vmem:[#allocation2 + $0x4c] ss:$12 sps:$4 sm:$0xff]   ;;  %4968 = vmatprep.subr.bf16.mxu1 %v5413_v11  ;;  %v5402_v13 = vld [vmem:[#allocation2 + $0x48] ss:$12 sps:$4 sm:$0xff]   ;;  %v5405_v16 = vld [vmem:[#allocation2 + $0x30] ss:$12 sps:$4 sm:$0xff]  }
  0x59   :  { %4969 = vmatpush3.bf16.msra.mxu1 %v5413_v11  ;;  %v5415_v14 = vld [vmem:[#allocation2 + $0x80] ss:$12 sps:$4 sm:$0xff]   ;;  %v5416_v17 = vld [vmem:[#allocation2 + $0x68] ss:$12 sps:$4 sm:$0xff]   ;;  %v5408_v19 = vld [vmem:[#allocation2 + $0x18] ss:$12 sps:$4 sm:$0xff]  }
  0x5a   :  { %331 = vmatpush1.bf16.msra.mxu0 %v5393_v4  ;;  %v152_v10 = vld [vmem:[%s6784_s3] sm:$0xff]   ;;  %4970 = vmatprep.subr.bf16.mxu1 %v5414_v12  ;;  %v5406_v18 = vld [vmem:[#allocation2 + $0x1c] ss:$12 sps:$4 sm:$0xff]   ;;  %v5865_v27 = vmov 0.0   ;;  %vm5866_vm0 = vmmov 0   ;;  %vm436_vm1 = vcmask 261120  }
  0x5b   :  { %332 = vmatprep.subr.bf16.mxu0 %v5394_v5  ;;  %4984 = vmatprep.mubr.bf16.mxu1 %v152_v10  ;;  %v5403_v15 = vld [vmem:[#allocation2 + $0x34] ss:$12 sps:$4 sm:$0xff]   ;;  %v5417_v20 = vld [vmem:[#allocation2 + $0x50] ss:$12 sps:$4 sm:$0xff]   ;;  %v5418_v23 = vld [vmem:[#allocation2 + $0x38] ss:$12 sps:$4 sm:$0xff]  }
  0x5c   :  { %v5409_v21 = vld [vmem:[#allocation2 + $0x4] ss:$12 sps:$4 sm:$0xff]   ;;  %v5411_v22 = vld [vmem:[#allocation2] ss:$12 sps:$4 sm:$0xff]   ;;  %v5420_v25 = vld [vmem:[#allocation2 + $0x8] ss:$12 sps:$4 sm:$0xff]  }
  0x5d   :  { %4971 = vmatpush3.bf16.msra.mxu1 %v5414_v12  ;;  %v5419_v24 = vld [vmem:[#allocation2 + $0x20] ss:$12 sps:$4 sm:$0xff]   ;;  %s5867_s22 = smov 96   ;;  %vm484_vm2 = vcmask 130048   ;;  %s6785_s23 = sld [smem:[#allocation23_spill]] }
  0x5e   :  { %333 = vmatpush1.bf16.msra.mxu0 %v5396_v6  ;;  %4972 = vmatprep.subr.bf16.mxu1 %v5415_v14  ;;  %v154_v26 = vld [vmem:[%s6784_s3 + $0x8] sm:$0xff]   ;;  %s5868_s26 = smov 32   ;;  %s6786_s5 = sld [smem:[#allocation24_spill]] }
  0x5f   :  { %334 = vmatprep.subr.bf16.mxu0 %v5397_v7  ;;  %s6787_s25 = sld [smem:[#allocation20_spill]] }
  0x60   :  { %s6788_s17 = sld [smem:[#allocation21_spill]] }
  0x61   :  { %4973 = vmatpush3.bf16.msra.mxu1 %v5415_v14 }
  0x62   :  { %335 = vmatpush1.bf16.msra.mxu0 %v5399_v8  ;;  %4974 = vmatprep.subr.bf16.mxu1 %v5416_v17 }
  0x63   :  { %336 = vmatprep.subr.bf16.mxu0 %v5400_v9 }
  0x65   :  { %4975 = vmatpush3.bf16.msra.mxu1 %v5416_v17 }
  0x66   :  { %337 = vmatpush1.bf16.msra.mxu0 %v5402_v13  ;;  %4976 = vmatprep.subr.bf16.mxu1 %v5417_v20 }
  0x67   :  { %338 = vmatprep.subr.bf16.mxu0 %v5403_v15 }
  0x69   :  { %4977 = vmatpush3.bf16.msra.mxu1 %v5417_v20 }
  0x6a   :  { %339 = vmatpush1.bf16.msra.mxu0 %v5405_v16  ;;  %4978 = vmatprep.subr.bf16.mxu1 %v5418_v23 }
  0x6b   :  { %340 = vmatprep.subr.bf16.mxu0 %v5406_v18 }
  0x6d   :  { %4979 = vmatpush3.bf16.msra.mxu1 %v5418_v23 }
  0x6e   :  { %341 = vmatpush1.bf16.msra.mxu0 %v5408_v19  ;;  %4980 = vmatprep.subr.bf16.mxu1 %v5419_v24 }
  0x6f   :  { %342 = vmatprep.subr.bf16.mxu0 %v5409_v21 }
  0x71   :  { %4981 = vmatpush3.bf16.msra.mxu1 %v5419_v24  ;;  %v6076_v24 = vld [vmem:[%s6785_s23 + $0x18] sm:$0xff]  }
  0x72   :  { %343 = vmatpush1.bf16.msra.mxu0 %v5411_v22  ;;  %4982 = vmatprep.subr.bf16.mxu1 %v5420_v25 }
  0x73   :  { %4994 = vmatprep.subr.bf16.mxu0 %v5865_v27 }
  0x75   :  { %361 = vmatmul.mubr.bf16.vlgmr.msra.gmra.mxu0 %v152_v10  ;;  %4983 = vmatpush3.bf16.msra.mxu1 %v5420_v25 }
  0x76   :  { %370 = vmatprep.mubr.bf16.mxu0 %v5864_v0  ;;  %4988 = vmatprep.subr.bf16.mxu1 %v5865_v27 }
  0x78   :  { %4985 = vmatmul.mubr.bf16.vlgmr.msra.gmra.mxu1 %v154_v26 }
  0x79   :  { %4990 = vmatprep.mubr.msk.bf16.mxu1 %vm5866_vm0, %v5865_v27 }
  0x7d   :  { %371 = vmatmul.mubr.bf16.gmra.mxu0 %v154_v26 }
  0x7e   :  { %4996 = vmatprep.mubr.msk.bf16.mxu0 %vm5866_vm0, %v5865_v27 }
 0x135   :  { %v362_v28 = vpop.f32.mrf.mxu0 }
 0x137   :  { %v364_v29 = vpop.f32.mrf.mxu0 }
 0x138   :  { %v4986_v35 = vpop.f32.mrf.mxu1 }
 0x139   :  { %v366_v30 = vpop.f32.mrf.mxu0 }
 0x13a   :  { %v6032_v34 = vpack.c.bf16 %v366_v30, %v362_v28  ;;  %v415_v36 = vpop.f32.mrf.mxu1 }
 0x13b   :  { %v368_v31 = vpop.f32.mrf.mxu0 }
 0x13c   :  { %v6026_v32 = vpack.c.bf16 %v368_v31, %v364_v29  ;;  %v4987_v37 = vpop.f32.mrf.mxu1 }
 0x13d   :  { %v6041_v38 = vpack.c.bf16 %v4987_v37, %v4986_v35  ;;  %v372_v15 = vpop.f32.mrf.mxu0  ;;  %v6084_v35 = vld [vmem:[%s6785_s23 + $0x8] sm:$0xff]   ;;  %v6091_v37 = vld [vmem:[%s6785_s23] sm:$0xff]  }
 0x13e   :  { %561 = vrot.lane.b32.xlu0 %v6026_v32, %s5867_s22  ;;  %v441_v33 = vsel %vm436_vm1, %v6026_v32, 0  ;;  %v418_v39 = vpop.f32.mrf.mxu1 }
 0x13f   :  { %4989 = vmatpush3.bf16.xpose.msra.mxu1 %v441_v33  ;;  %v6043_v40 = vpack.c.bf16 %v418_v39, %v415_v36  ;;  %v6066_v16 = vpop.f32.mrf.mxu0  ;;  %v6101_v39 = vld [vmem:[%s6785_s23 + $0x10] sm:$0xff]  }
 0x140   :  { %5000 = vmatprep.subr.bf16.mxu1 %v5865_v27 }
 0x141   :  { %4995 = vmatpush3.bf16.msra.mxu0 %v6043_v40  ;;  %v376_v17 = vpop.f32.mrf.mxu0 }
 0x142   :  { %558 = vrot.lane.b32.xlu0 %v6032_v34, %s5867_s22  ;;  %5006 = vmatprep.subr.bf16.mxu0 %v5865_v27  ;;  %v6068_v18 = vpack.c.bf16 %v376_v17, %v372_v15 }
 0x146   :  { %4991 = vmatmul.mubr.msk.bf16.vlgmr.msra.gmra.mxu1 %vm436_vm1, %v6032_v34 }
 0x147   :  { %5002 = vmatprep.mubr.msk.bf16.mxu1 %vm5866_vm0, %v5865_v27 }
 0x1b0   :  { %v562_v41 = vpop.permute.xlu0 %561 }
 0x1b1   :  { %v567_v42 = vsel %vm436_vm1, %v562_v41, 0  ;;  %v6105_v41 = vpop.f32.mrf.mxu0 }
 0x1b2   :  { %5001 = vmatpush3.bf16.xpose.msra.mxu1 %v567_v42 }
 0x1b3   :  { %5012 = vmatprep.subr.bf16.mxu1 %v5865_v27 }
 0x1b4   :  { %v559_v43 = vpop.permute.xlu0 %558 }
 0x1b9   :  { %5003 = vmatmul.mubr.msk.bf16.vlgmr.msra.gmra.mxu1 %vm436_vm1, %v559_v43 }
 0x1ba   :  { %5016 = vmatprep.mubr.msk.bf16.mxu1 %vm5866_vm0, %v5865_v27  ;;  %5013 = vmatpush3.bf16.msra.mxu1 %v6076_v24 }
 0x1bb   :  { %5014 = vmatprep.subr.bf16.mxu1 %v5865_v27 }
 0x1be   :  { %5015 = vmatpush3.bf16.msra.mxu1 %v6101_v39 }
 0x1bf   :  { %5028 = vmatprep.subr.bf16.mxu1 %v5865_v27 }
 0x206   :  { %v477_v44 = vpop.f32.mrf.mxu1 }
 0x207   :  { %v485_v45 = vsel %vm484_vm2, %v477_v44, -inf }
 0x208   :  { %486 = vmax.xlane.f32.xlu1 %v485_v45  ;;  %v4992_v46 = vpop.f32.mrf.mxu1 }
 0x20a   :  { %v480_v47 = vpop.f32.mrf.mxu1 }
 0x20b   :  { %v488_v48 = vsel %vm484_vm2, %v480_v47, -inf }
 0x20c   :  { %489 = vmax.xlane.f32.xlu1 %v488_v48  ;;  %v4993_v49 = vpop.f32.mrf.mxu1 }
 0x279   :  { %v603_v50 = vpop.f32.mrf.mxu1 }
 0x27a   :  { %v610_v51 = vsel %vm484_vm2, %v603_v50, -inf }
 0x27b   :  { %611 = vmax.xlane.f32.xlu0 %v610_v51  ;;  %v5004_v52 = vpop.f32.mrf.mxu1 }
 0x27d   :  { %v606_v53 = vpop.f32.mrf.mxu1 }
 0x27e   :  { %v613_v54 = vsel %vm484_vm2, %v606_v53, -inf }
 0x27f   :  { %614 = vmax.xlane.f32.xlu1 %v613_v54  ;;  %v5005_v55 = vpop.f32.mrf.mxu1 }
 0x291   :  { %v487_v56 = vpop.xlane.xlu1 %486  ;;  %800 = vrot.lane.b32.xlu0 %v6026_v32, %s5853_s27 }
 0x292   :  { %v491_v57 = vsub.f32 %v477_v44, %v487_v56 }
 0x294   :  { %v493_v58 = vmul.f32 1.442695, %v491_v57 }
 0x295   :  { %v490_v59 = vpop.xlane.xlu1 %489 }
 0x296   :  { %5548 = vpow2.f32 %v493_v58  ;;  %v492_v60 = vsub.f32 %v480_v47, %v490_v59 }
 0x298   :  { %v495_v61 = vmul.f32 1.442695, %v492_v60 }
 0x29a   :  { %5550 = vpow2.f32 %v495_v61 }
 0x2a3   :  { %v5549_v62 = vpop.eup %5548 }
 0x2a4   :  { %v497_v63 = vsel %vm484_vm2, %v5549_v62, 0.0 }
 0x2a5   :  { %498 = vadd.xlane.f32.xlu1 %v497_v63 }
 0x2a7   :  { %v5551_v1 = vpop.eup %5550 }
 0x2a8   :  { %v500_v2 = vsel %vm484_vm2, %v5551_v1, 0.0 }
 0x2a9   :  { %501 = vadd.xlane.f32.xlu1 %v500_v2 }
 0x304   :  { %v612_v3 = vpop.xlane.xlu0 %611 }
 0x305   :  { %v616_v4 = vsub.f32 %v603_v50, %v612_v3 }
 0x307   :  { %v618_v5 = vmul.f32 1.442695, %v616_v4 }
 0x308   :  { %v615_v6 = vpop.xlane.xlu1 %614  ;;  %v801_v49 = vpop.permute.xlu0 %800 }
 0x309   :  { %5552 = vpow2.f32 %v618_v5  ;;  %v617_v7 = vsub.f32 %v606_v53, %v615_v6  ;;  %v806_v53 = vsel %vm436_vm1, %v801_v49, 0 }
 0x30b   :  { %v620_v8 = vmul.f32 1.442695, %v617_v7 }
 0x30d   :  { %5554 = vpow2.f32 %v620_v8 }
 0x316   :  { %v5553_v9 = vpop.eup %5552 }
 0x317   :  { %v622_v10 = vsel %vm484_vm2, %v5553_v9, 0.0 }
 0x318   :  { %623 = vadd.xlane.f32.xlu1 %v622_v10 }
 0x31a   :  { %v5555_v11 = vpop.eup %5554 }
 0x31b   :  { %v625_v12 = vsel %vm484_vm2, %v5555_v11, 0.0 }
 0x31c   :  { %626 = vadd.xlane.f32.xlu1 %v625_v12 }
 0x32d   :  { %634 = vrot.lane.b32.xlu1 %v6043_v40, %s5867_s22 }
 0x32e   :  { %v499_v13 = vpop.xlane.xlu1 %498 }
 0x32f   :  { %5556 = vrcp.f32 %v499_v13 }
 0x331   :  { %798 = vrot.lane.b32.xlu1 %v6032_v34, %s5853_s27 }
 0x332   :  { %v502_v14 = vpop.xlane.xlu1 %501 }
 0x333   :  { %5558 = vrcp.f32 %v502_v14 }
 0x33c   :  { %v5557_v19 = vpop.eup %5556 }
 0x33d   :  { %v505_v21 = vmul.f32 %v5557_v19, %v5549_v62 }
 0x340   :  { %v5559_v20 = vpop.eup %5558 }
 0x341   :  { %v506_v22 = vmul.f32 %v5559_v20, %v5551_v1 }
 0x343   :  { %v507_v23 = vpack.c.bf16 %v506_v22, %v505_v21 }
 0x345   :  { %4997 = vmatmul.mubr.msk.bf16.vlgmr.msra.gmra.mxu0 %vm484_vm2, %v507_v23 }
 0x346   :  { %5008 = vmatprep.mubr.msk.bf16.mxu0 %vm5866_vm0, %v5865_v27 }
 0x3a1   :  { %v624_v25 = vpop.xlane.xlu1 %623 }
 0x3a2   :  { %5560 = vrcp.f32 %v624_v25 }
 0x3a5   :  { %v627_v26 = vpop.xlane.xlu1 %626 }
 0x3a6   :  { %5562 = vrcp.f32 %v627_v26 }
 0x3a9   :  { %v635_v28 = vpop.permute.xlu1 %634 }
 0x3aa   :  { %5007 = vmatpush3.bf16.msra.mxu0 %v635_v28 }
 0x3ab   :  { %5020 = vmatprep.subr.bf16.mxu0 %v5865_v27 }
 0x3ad   :  { %v799_v54 = vpop.permute.xlu1 %798 }
 0x3af   :  { %v5561_v29 = vpop.eup %5560 }
 0x3b0   :  { %v630_v31 = vmul.f32 %v5561_v29, %v5553_v9 }
 0x3b3   :  { %v5563_v30 = vpop.eup %5562 }
 0x3b4   :  { %v631_v33 = vmul.f32 %v5563_v30, %v5555_v11  ;;  %v6155_v30 = vld [vmem:[%s6785_s23 + $0x20] sm:$0xff]  }
 0x3b6   :  { %v632_v36 = vpack.c.bf16 %v631_v33, %v630_v31 }
 0x3b8   :  { %5009 = vmatmul.mubr.msk.bf16.vlgmr.msra.gmra.mxu0 %vm484_vm2, %v632_v36 }
 0x3b9   :  { %5021 = vmatpush3.bf16.msra.mxu0 %v6084_v35  ;;  %5024 = vmatprep.mubr.msk.bf16.mxu0 %vm5866_vm0, %v5865_v27 }
 0x3ba   :  { %5022 = vmatprep.subr.bf16.mxu0 %v5865_v27 }
 0x3bd   :  { %5023 = vmatpush3.bf16.msra.mxu0 %v6091_v37 }
 0x3be   :  { %5034 = vmatprep.subr.bf16.mxu0 %v5865_v27 }
 0x405   :  { %v545_v42 = vpop.f32.mrf.mxu0 }
 0x407   :  { %v4998_v43 = vpop.f32.mrf.mxu0 }
 0x409   :  { %v548_v44 = vpop.f32.mrf.mxu0 }
 0x40a   :  { %v552_v45 = vpack.c.bf16 %v548_v44, %v545_v42 }
 0x40b   :  { %v4999_v46 = vpop.f32.mrf.mxu0 }
 0x40c   :  { %5025 = vmatmul.mubr.msk.bf16.vlgmr.msra.gmra.mxu0 %vm436_vm1, %v552_v45 }
 0x40d   :  { %5036 = vmatprep.mubr.msk.bf16.mxu0 %vm5866_vm0, %v5865_v27 }
 0x478   :  { %v674_v47 = vpop.f32.mrf.mxu0 }
 0x47a   :  { %v5010_v48 = vpop.f32.mrf.mxu0 }
 0x47c   :  { %v677_v50 = vpop.f32.mrf.mxu0 }
 0x47d   :  { %v681_v51 = vpack.c.bf16 %v677_v50, %v674_v47 }
 0x47e   :  { %v5011_v52 = vpop.f32.mrf.mxu0 }
 0x47f   :  { %5017 = vmatmul.mubr.msk.bf16.vlgmr.msra.gmra.mxu1 %vm436_vm1, %v681_v51 }
 0x480   :  { %5029 = vmatpush3.bf16.xpose.msra.mxu1 %v806_v53  ;;  %5030 = vmatprep.mubr.msk.bf16.mxu1 %vm5866_vm0, %v5865_v27 }
 0x481   :  { %5040 = vmatprep.subr.bf16.mxu1 %v5865_v27 }
 0x487   :  { %5031 = vmatmul.mubr.msk.bf16.vlgmr.msra.gmra.mxu1 %vm436_vm1, %v799_v54 }
 0x488   :  { %5044 = vmatprep.mubr.msk.bf16.mxu1 %vm5866_vm0, %v5865_v27 }
 0x4cc   :  { %v6118_v55 = vpop.f32.mrf.mxu0 }
 0x4ce   :  { %v5026_v56 = vpop.f32.mrf.mxu0 }
 0x4d0   :  { %v6120_v57 = vpop.f32.mrf.mxu0 }
 0x4d2   :  { %v5027_v58 = vpop.f32.mrf.mxu0 }
 0x53f   :  { %v6122_v59 = vpop.f32.mrf.mxu1 }
 0x541   :  { %v5018_v60 = vpop.f32.mrf.mxu1 }
 0x543   :  { %v6124_v61 = vpop.f32.mrf.mxu1 }
 0x545   :  { %v5019_v62 = vpop.f32.mrf.mxu1 }
 0x547   :  { %v842_v63 = vpop.f32.mrf.mxu1 }
 0x548   :  { %v849_v1 = vsel %vm484_vm2, %v842_v63, -inf }
 0x549   :  { %850 = vmax.xlane.f32.xlu1 %v849_v1  ;;  %v5032_v2 = vpop.f32.mrf.mxu1  ;;  %v6173_v1 = vpack.c.bf16 %v6105_v41, %v6066_v16  ;;  %v6188_v16 = vld [vmem:[%s6785_s23 + $0x38] sm:$0xff]  }
 0x54a   :  { %v792_v2 = vadd.f32 %v6118_v55, %v6122_v59 }
 0x54b   :  { %v845_v3 = vpop.f32.mrf.mxu1 }
 0x54c   :  { %v852_v4 = vsel %vm484_vm2, %v845_v3, -inf }
 0x54d   :  { %853 = vmax.xlane.f32.xlu0 %v852_v4  ;;  %v5033_v5 = vpop.f32.mrf.mxu1 }
 0x563   :  { %872 = vrot.lane.b32.xlu0 %v6043_v40, %s5853_s27 }
 0x5d2   :  { %v851_v6 = vpop.xlane.xlu1 %850 }
 0x5d3   :  { %v855_v7 = vsub.f32 %v842_v63, %v851_v6  ;;  %v795_v6 = vadd.f32 %v6120_v57, %v6124_v61 }
 0x5d5   :  { %v857_v8 = vmul.f32 1.442695, %v855_v7 }
 0x5d6   :  { %v854_v9 = vpop.xlane.xlu0 %853 }
 0x5d7   :  { %5564 = vpow2.f32 %v857_v8  ;;  %v856_v10 = vsub.f32 %v845_v3, %v854_v9 }
 0x5d9   :  { %v859_v11 = vmul.f32 1.442695, %v856_v10 }
 0x5da   :  { %v873_v12 = vpop.permute.xlu0 %872 }
 0x5db   :  { %5566 = vpow2.f32 %v859_v11  ;;  %5035 = vmatpush3.bf16.msra.mxu0 %v873_v12  ;;  %v1170_v12 = vsel %vm436_vm1, %v6173_v1, 0 }
 0x5dc   :  { %5048 = vmatprep.subr.bf16.mxu0 %v5865_v27 }
 0x5e4   :  { %v5565_v13 = vpop.eup %5564 }
 0x5e5   :  { %v861_v14 = vsel %vm484_vm2, %v5565_v13, 0.0 }
 0x5e6   :  { %862 = vadd.xlane.f32.xlu1 %v861_v14 }
 0x5e8   :  { %v5567_v15 = vpop.eup %5566 }
 0x5e9   :  { %v864_v17 = vsel %vm484_vm2, %v5567_v15, 0.0 }
 0x5ea   :  { %865 = vadd.xlane.f32.xlu1 %v864_v17  ;;  %v6214_v17 = vld [vmem:[%s6785_s23 + $0x30] sm:$0xff]  }
 0x5fb   :  { %984 = vrot.lane.b32.xlu1 %v6026_v32, %s5868_s26 }
 0x5ff   :  { %982 = vrot.lane.b32.xlu1 %v6032_v34, %s5868_s26  ;;  %v6148_v34 = vld [vmem:[%s6785_s23 + $0x28] sm:$0xff]  }
 0x600   :  { %5041 = vmatpush3.bf16.msra.mxu1 %v6148_v34 }
 0x601   :  { %5042 = vmatprep.subr.bf16.mxu1 %v5865_v27 }
 0x604   :  { %5043 = vmatpush3.bf16.msra.mxu1 %v6155_v30 }
 0x605   :  { %5054 = vmatprep.subr.bf16.mxu1 %v5865_v27 }
 0x66f   :  { %v863_v19 = vpop.xlane.xlu1 %862 }
 0x670   :  { %5568 = vrcp.f32 %v863_v19 }
 0x673   :  { %v866_v20 = vpop.xlane.xlu1 %865 }
 0x674   :  { %5570 = vrcp.f32 %v866_v20 }
 0x677   :  { %v985_v26 = vpop.permute.xlu1 %984 }
 0x678   :  { %v990_v29 = vsel %vm436_vm1, %v985_v26, 0 }
 0x67b   :  { %v983_v32 = vpop.permute.xlu1 %982 }
 0x67d   :  { %v5569_v21 = vpop.eup %5568 }
 0x67e   :  { %v869_v23 = vmul.f32 %v5569_v21, %v5565_v13 }
 0x681   :  { %v5571_v22 = vpop.eup %5570 }
 0x682   :  { %v870_v25 = vmul.f32 %v5571_v22, %v5567_v15 }
 0x684   :  { %v871_v28 = vpack.c.bf16 %v870_v25, %v869_v23 }
 0x686   :  { %5037 = vmatmul.mubr.msk.bf16.vlgmr.msra.gmra.mxu0 %vm484_vm2, %v871_v28 }
 0x687   :  { %5049 = vmatpush3.bf16.xpose.msra.mxu0 %v990_v29  ;;  %5050 = vmatprep.mubr.msk.bf16.mxu0 %vm5866_vm0, %v5865_v27 }
 0x688   :  { %5060 = vmatprep.subr.bf16.mxu0 %v5865_v27 }
 0x68e   :  { %5051 = vmatmul.mubr.msk.bf16.vlgmr.msra.gmra.mxu0 %vm436_vm1, %v983_v32 }
 0x68f   :  { %5064 = vmatprep.mubr.msk.bf16.mxu0 %vm5866_vm0, %v5865_v27  ;;  %5061 = vmatpush3.bf16.msra.mxu0 %v6188_v16 }
 0x690   :  { %5062 = vmatprep.subr.bf16.mxu0 %v5865_v27 }
 0x693   :  { %5063 = vmatpush3.bf16.msra.mxu0 %v6214_v17 }
 0x694   :  { %5074 = vmatprep.subr.bf16.mxu0 %v5865_v27 }
 0x746   :  { %v912_v31 = vpop.f32.mrf.mxu0 }
 0x748   :  { %v5038_v33 = vpop.f32.mrf.mxu0 }
 0x74a   :  { %v915_v36 = vpop.f32.mrf.mxu0 }
 0x74b   :  { %v919_v42 = vpack.c.bf16 %v915_v36, %v912_v31 }
 0x74c   :  { %v5039_v43 = vpop.f32.mrf.mxu0 }
 0x74d   :  { %5045 = vmatmul.mubr.msk.bf16.vlgmr.msra.gmra.mxu1 %vm436_vm1, %v919_v42 }
 0x74e   :  { %v1026_v44 = vpop.f32.mrf.mxu0  ;;  %5056 = vmatprep.mubr.msk.bf16.mxu1 %vm5866_vm0, %v5865_v27 }
 0x74f   :  { %v1033_v45 = vsel %vm484_vm2, %v1026_v44, -inf }
 0x750   :  { %1034 = vmax.xlane.f32.xlu0 %v1033_v45  ;;  %v5052_v46 = vpop.f32.mrf.mxu0 }
 0x752   :  { %v1029_v47 = vpop.f32.mrf.mxu0 }
 0x753   :  { %v1036_v48 = vsel %vm484_vm2, %v1029_v47, -inf }
 0x754   :  { %1037 = vmax.xlane.f32.xlu1 %v1036_v48  ;;  %v5053_v49 = vpop.f32.mrf.mxu0 }
 0x765   :  { %1056 = vrot.lane.b32.xlu1 %v6043_v40, %s5868_s26 }
 0x769   :  { %1282 = vrot.lane.b32.xlu1 %v6068_v18, %s5867_s22 }
 0x7d9   :  { %v1035_v50 = vpop.xlane.xlu0 %1034 }
 0x7da   :  { %v1039_v51 = vsub.f32 %v1026_v44, %v1035_v50 }
 0x7dc   :  { %v1041_v52 = vmul.f32 1.442695, %v1039_v51 }
 0x7dd   :  { %v1038_v53 = vpop.xlane.xlu1 %1037 }
 0x7de   :  { %5572 = vpow2.f32 %v1041_v52  ;;  %v1040_v54 = vsub.f32 %v1029_v47, %v1038_v53 }
 0x7e0   :  { %v1043_v56 = vmul.f32 1.442695, %v1040_v54 }
 0x7e1   :  { %v1057_v58 = vpop.permute.xlu1 %1056 }
 0x7e2   :  { %5574 = vpow2.f32 %v1043_v56  ;;  %5055 = vmatpush3.bf16.msra.mxu1 %v1057_v58 }
 0x7e3   :  { %5068 = vmatprep.subr.bf16.mxu1 %v5865_v27 }
 0x7e5   :  { %v1283_v15 = vpop.permute.xlu1 %1282 }
 0x7eb   :  { %v5573_v60 = vpop.eup %5572 }
 0x7ec   :  { %v1045_v62 = vsel %vm484_vm2, %v5573_v60, 0.0 }
 0x7ed   :  { %1046 = vadd.xlane.f32.xlu0 %v1045_v62 }
 0x7ef   :  { %v5575_v40 = vpop.eup %5574 }
 0x7f0   :  { %v1048_v63 = vsel %vm484_vm2, %v5575_v40, 0.0 }
 0x7f1   :  { %1049 = vadd.xlane.f32.xlu0 %v1048_v63 }
 0x807   :  { %1285 = vrot.lane.b32.xlu0 %v6173_v1, %s5867_s22 }
 0x80d   :  { %v973_v3 = vpop.f32.mrf.mxu1 }
 0x80e   :  { %v6179_v4 = vadd.f32 %v973_v3, %v792_v2 }
 0x80f   :  { %v5046_v5 = vpop.f32.mrf.mxu1 }
 0x811   :  { %v976_v7 = vpop.f32.mrf.mxu1 }
 0x812   :  { %v6183_v8 = vadd.f32 %v976_v7, %v795_v6 }
 0x813   :  { %v5047_v9 = vpop.f32.mrf.mxu1 }
 0x876   :  { %v1047_v41 = vpop.xlane.xlu0 %1046 }
 0x877   :  { %5576 = vrcp.f32 %v1047_v41 }
 0x87a   :  { %v1050_v55 = vpop.xlane.xlu0 %1049 }
 0x87b   :  { %5578 = vrcp.f32 %v1050_v55 }
 0x87e   :  { %v1286_v13 = vpop.permute.xlu0 %1285 }
 0x87f   :  { %v1291_v14 = vsel %vm436_vm1, %v1286_v13, 0 }
 0x884   :  { %v5577_v59 = vpop.eup %5576 }
 0x885   :  { %v1053_v57 = vmul.f32 %v5577_v59, %v5573_v60 }
 0x888   :  { %v5579_v10 = vpop.eup %5578 }
 0x889   :  { %v1054_v61 = vmul.f32 %v5579_v10, %v5575_v40 }
 0x88b   :  { %v1055_v11 = vpack.c.bf16 %v1054_v61, %v1053_v57 }
 0x88d   :  { %5057 = vmatmul.mubr.msk.bf16.vlgmr.msra.gmra.mxu1 %vm484_vm2, %v1055_v11 }
 0x88e   :  { %5069 = vmatpush3.bf16.xpose.msra.mxu1 %v1170_v12  ;;  %5070 = vmatprep.mubr.msk.bf16.mxu1 %vm5866_vm0, %v5865_v27 }
 0x88f   :  { %5080 = vmatprep.subr.bf16.mxu1 %v5865_v27 }
 0x895   :  { %5071 = vmatmul.mubr.msk.bf16.vlgmr.msra.gmra.mxu1 %vm436_vm1, %v6068_v18 }
 0x896   :  { %5081 = vmatpush3.bf16.xpose.msra.mxu1 %v1291_v14  ;;  %5082 = vmatprep.mubr.msk.bf16.mxu1 %vm5866_vm0, %v5865_v27 }
 0x897   :  { %5092 = vmatprep.subr.bf16.mxu1 %v5865_v27 }
 0x89d   :  { %5083 = vmatmul.mubr.msk.bf16.vlgmr.msra.gmra.mxu1 %vm436_vm1, %v1283_v15 }
 0x89e   :  { %5093 = vmatpush3.bf16.msra.mxu1 %v6076_v24  ;;  %5096 = vmatprep.mubr.msk.bf16.mxu1 %vm5866_vm0, %v5865_v27 }
 0x89f   :  { %5094 = vmatprep.subr.bf16.mxu1 %v5865_v27 }
 0x8a2   :  { %5095 = vmatpush3.bf16.msra.mxu1 %v6101_v39 }
 0x8a3   :  { %5108 = vmatprep.subr.bf16.mxu1 %v5865_v27 }
 0x94d   :  { %v1096_v19 = vpop.f32.mrf.mxu1 }
 0x94f   :  { %v5058_v24 = vpop.f32.mrf.mxu1 }
 0x951   :  { %v1099_v20 = vpop.f32.mrf.mxu1 }
 0x952   :  { %v1103_v21 = vpack.c.bf16 %v1099_v20, %v1096_v19 }
 0x953   :  { %v5059_v22 = vpop.f32.mrf.mxu1 }
 0x954   :  { %5065 = vmatmul.mubr.msk.bf16.vlgmr.msra.gmra.mxu0 %vm436_vm1, %v1103_v21 }
 0x955   :  { %5075 = vmatpush3.bf16.msra.mxu0 %v6041_v38  ;;  %v1206_v39 = vpop.f32.mrf.mxu1  ;;  %5076 = vmatprep.mubr.msk.bf16.mxu0 %vm5866_vm0, %v5865_v27 }
 0x956   :  { %v1213_v23 = vsel %vm484_vm2, %v1206_v39, -inf  ;;  %5086 = vmatprep.subr.bf16.mxu0 %v5865_v27 }
 0x957   :  { %1214 = vmax.xlane.f32.xlu1 %v1213_v23  ;;  %v5072_v25 = vpop.f32.mrf.mxu1 }
 0x959   :  { %v1209_v26 = vpop.f32.mrf.mxu1 }
 0x95a   :  { %v1216_v28 = vsel %vm484_vm2, %v1209_v26, -inf }
 0x95b   :  { %1217 = vmax.xlane.f32.xlu0 %v1216_v28  ;;  %v5073_v29 = vpop.f32.mrf.mxu1 }
 0x95d   :  { %v1327_v32 = vpop.f32.mrf.mxu1 }
 0x95e   :  { %v1334_v31 = vsel %vm484_vm2, %v1327_v32, -inf }
 0x95f   :  { %1335 = vmax.xlane.f32.xlu0 %v1334_v31  ;;  %v5084_v33 = vpop.f32.mrf.mxu1 }
 0x961   :  { %v1330_v36 = vpop.f32.mrf.mxu1 }
 0x962   :  { %v1337_v42 = vsel %vm484_vm2, %v1330_v36, -inf }
 0x963   :  { %1338 = vmax.xlane.f32.xlu1 %v1337_v42  ;;  %v5085_v43 = vpop.f32.mrf.mxu1 }
 0x9e0   :  { %v1215_v44 = vpop.xlane.xlu1 %1214 }
 0x9e1   :  { %v1219_v45 = vsub.f32 %v1206_v39, %v1215_v44 }
 0x9e3   :  { %v1221_v46 = vmul.f32 1.442695, %v1219_v45 }
 0x9e4   :  { %v1218_v47 = vpop.xlane.xlu0 %1217 }
 0x9e5   :  { %5580 = vpow2.f32 %v1221_v46  ;;  %v1220_v48 = vsub.f32 %v1209_v26, %v1218_v47 }
 0x9e7   :  { %v1223_v49 = vmul.f32 1.442695, %v1220_v48 }
 0x9e8   :  { %v1336_v50 = vpop.xlane.xlu0 %1335 }
 0x9e9   :  { %5582 = vpow2.f32 %v1223_v49  ;;  %v1340_v51 = vsub.f32 %v1327_v32, %v1336_v50 }
 0x9eb   :  { %v1342_v52 = vmul.f32 1.442695, %v1340_v51 }
 0x9ec   :  { %v1339_v53 = vpop.xlane.xlu1 %1338 }
 0x9ed   :  { %5584 = vpow2.f32 %v1342_v52  ;;  %v1341_v54 = vsub.f32 %v1330_v36, %v1339_v53 }
 0x9ef   :  { %v1344_v56 = vmul.f32 1.442695, %v1341_v54 }
 0x9f1   :  { %5586 = vpow2.f32 %v1344_v56 }
 0x9f2   :  { %v5581_v58 = vpop.eup %5580 }
 0x9f3   :  { %v1225_v60 = vsel %vm484_vm2, %v5581_v58, 0.0 }
 0x9f4   :  { %1226 = vadd.xlane.f32.xlu0 %v1225_v60 }
 0x9f6   :  { %v5583_v62 = vpop.eup %5582 }
 0x9f7   :  { %v1228_v40 = vsel %vm484_vm2, %v5583_v62, 0.0 }
 0x9f8   :  { %1229 = vadd.xlane.f32.xlu1 %v1228_v40 }
 0x9fa   :  { %v5585_v63 = vpop.eup %5584 }
 0x9fb   :  { %v1346_v2 = vsel %vm484_vm2, %v5585_v63, 0.0 }
 0x9fc   :  { %1347 = vadd.xlane.f32.xlu0 %v1346_v2 }
 0x9fe   :  { %v5587_v3 = vpop.eup %5586 }
 0x9ff   :  { %v1349_v5 = vsel %vm484_vm2, %v5587_v3, 0.0 }
 0xa00   :  { %1350 = vadd.xlane.f32.xlu1 %v1349_v5 }
 0xa11   :  { %1496 = vrot.lane.b32.xlu1 %v6173_v1, %s5853_s27 }
 0xa12   :  { %1358 = vrot.lane.b32.xlu0 %v6041_v38, %s5867_s22 }
 0xa14   :  { %v1157_v6 = vpop.f32.mrf.mxu0 }
 0xa15   :  { %v6236_v7 = vadd.f32 %v1157_v6, %v6179_v4  ;;  %1494 = vrot.lane.b32.xlu1 %v6068_v18, %s5853_s27 }
 0xa16   :  { %v5066_v9 = vpop.f32.mrf.mxu0 }
 0xa18   :  { %v1160_v41 = vpop.f32.mrf.mxu0 }
 0xa19   :  { %v6241_v55 = vadd.f32 %v1160_v41, %v6183_v8 }
 0xa1a   :  { %v5067_v59 = vpop.f32.mrf.mxu0 }
 0xa7d   :  { %v1227_v10 = vpop.xlane.xlu0 %1226 }
 0xa7e   :  { %5588 = vrcp.f32 %v1227_v10 }
 0xa81   :  { %v1230_v57 = vpop.xlane.xlu1 %1229 }
 0xa82   :  { %5590 = vrcp.f32 %v1230_v57 }
 0xa85   :  { %v1348_v61 = vpop.xlane.xlu0 %1347 }
 0xa86   :  { %5592 = vrcp.f32 %v1348_v61 }
 0xa89   :  { %v1351_v11 = vpop.xlane.xlu1 %1350  ;;  %v1359_v19 = vpop.permute.xlu0 %1358 }
 0xa8a   :  { %5594 = vrcp.f32 %v1351_v11 }
 0xa8b   :  { %v5589_v12 = vpop.eup %5588 }
 0xa8c   :  { %v1233_v13 = vmul.f32 %v5589_v12, %v5581_v58 }
 0xa8d   :  { %v1497_v32 = vpop.permute.xlu1 %1496 }
 0xa8f   :  { %v5591_v4 = vpop.eup %5590 }
 0xa90   :  { %v1234_v14 = vmul.f32 %v5591_v4, %v5583_v62 }
 0xa91   :  { %v1495_v42 = vpop.permute.xlu1 %1494 }
 0xa92   :  { %v1235_v15 = vpack.c.bf16 %v1234_v14, %v1233_v13 }
 0xa93   :  { %v5593_v24 = vpop.eup %5592 }
 0xa94   :  { %5077 = vmatmul.mubr.msk.bf16.vlgmr.msra.gmra.mxu0 %vm484_vm2, %v1235_v15  ;;  %v1354_v20 = vmul.f32 %v5593_v24, %v5585_v63 }
 0xa95   :  { %5087 = vmatpush3.bf16.msra.mxu0 %v1359_v19  ;;  %5088 = vmatprep.mubr.msk.bf16.mxu0 %vm5866_vm0, %v5865_v27 }
 0xa96   :  { %5100 = vmatprep.subr.bf16.mxu0 %v5865_v27 }
 0xa97   :  { %v5595_v8 = vpop.eup %5594 }
 0xa98   :  { %v1355_v21 = vmul.f32 %v5595_v8, %v5587_v3 }
 0xa9a   :  { %v1356_v22 = vpack.c.bf16 %v1355_v21, %v1354_v20 }
 0xa9c   :  { %5089 = vmatmul.mubr.msk.bf16.vlgmr.msra.gmra.mxu0 %vm484_vm2, %v1356_v22 }
 0xa9d   :  { %5101 = vmatpush3.bf16.msra.mxu0 %v6084_v35  ;;  %5104 = vmatprep.mubr.msk.bf16.mxu0 %vm5866_vm0, %v5865_v27 }
 0xa9e   :  { %5102 = vmatprep.subr.bf16.mxu0 %v5865_v27 }
 0xaa1   :  { %5103 = vmatpush3.bf16.msra.mxu0 %v6091_v37  ;;  %v1502_v37 = vsel %vm436_vm1, %v1497_v32, 0 }
 0xaa2   :  { %5114 = vmatprep.subr.bf16.mxu0 %v5865_v27 }
 0xb54   :  { %v1273_v39 = vpop.f32.mrf.mxu0 }
 0xb56   :  { %v5078_v23 = vpop.f32.mrf.mxu0 }
 0xb58   :  { %v1276_v25 = vpop.f32.mrf.mxu0 }
 0xb59   :  { %v1280_v26 = vpack.c.bf16 %v1276_v25, %v1273_v39 }
 0xb5a   :  { %v5079_v28 = vpop.f32.mrf.mxu0 }
 0xb5b   :  { %5105 = vmatmul.mubr.msk.bf16.vlgmr.msra.gmra.mxu0 %vm436_vm1, %v1280_v26 }
 0xb5c   :  { %v1398_v29 = vpop.f32.mrf.mxu0  ;;  %5116 = vmatprep.mubr.msk.bf16.mxu0 %vm5866_vm0, %v5865_v27 }
 0xb5e   :  { %v5090_v35 = vpop.f32.mrf.mxu0 }
 0xb60   :  { %v1401_v31 = vpop.f32.mrf.mxu0 }
 0xb61   :  { %v1405_v33 = vpack.c.bf16 %v1401_v31, %v1398_v29 }
 0xb62   :  { %v5091_v36 = vpop.f32.mrf.mxu0 }
 0xb63   :  { %5097 = vmatmul.mubr.msk.bf16.vlgmr.msra.gmra.mxu1 %vm436_vm1, %v1405_v33  ;;  %v6303_v33 = vld [vmem:[%s6786_s5] ss:$0 sm:$0xff] }
 0xb64   :  { %5109 = vmatpush3.bf16.xpose.msra.mxu1 %v1502_v37  ;;  %5110 = vmatprep.mubr.msk.bf16.mxu1 %vm5866_vm0, %v5865_v27 }
 0xb65   :  { %5120 = vmatprep.subr.bf16.mxu1 %v5865_v27 }
 0xb6b   :  { %5111 = vmatmul.mubr.msk.bf16.vlgmr.msra.gmra.mxu1 %vm436_vm1, %v1495_v42  ;;  %v1837_v42 = vadd.f32 %v6303_v33, %v6236_v7 }
 0xb6c   :  { %5121 = vmatpush3.bf16.msra.mxu1 %v6148_v34  ;;  %5124 = vmatprep.mubr.msk.bf16.mxu1 %vm5866_vm0, %v5865_v27 }
 0xb6d   :  { %5122 = vmatprep.subr.bf16.mxu1 %v5865_v27 }
 0xb70   :  { %5123 = vmatpush3.bf16.msra.mxu1 %v6155_v30 }
 0xb71   :  { %5134 = vmatprep.subr.bf16.mxu1 %v5865_v27 }
 0xc1b   :  { %v1487_v43 = vpop.f32.mrf.mxu0 }
 0xc1d   :  { %v5106_v44 = vpop.f32.mrf.mxu0 }
 0xc1f   :  { %v1490_v45 = vpop.f32.mrf.mxu0 }
 0xc21   :  { %v5107_v46 = vpop.f32.mrf.mxu0 }
 0xc22   :  { %v1838_v46 = vadd.f32 %v6303_v33, %v6241_v55 }
 0xc23   :  { %v1443_v47 = vpop.f32.mrf.mxu1 }
 0xc24   :  { %v6269_v48 = vadd.f32 %v1487_v43, %v1443_v47  ;;  %v5700_v43 = vld [vmem:[%s6784_s3] sm:$0xff]  }
 0xc25   :  { %v5098_v49 = vpop.f32.mrf.mxu1  ;;  %v1841_v44 = vunpack.c.l.bf16 %v5700_v43 }
 0xc26   :  { %v1842_v49 = vunpack.c.h.bf16 %v5700_v43 }
 0xc27   :  { %v1446_v50 = vpop.f32.mrf.mxu1  ;;  %v6314_v47 = vadd.f32 %v1841_v44, %v1837_v42 }
 0xc28   :  { %v6271_v51 = vadd.f32 %v1490_v45, %v1446_v50  ;;  %v6317_v50 = vadd.f32 %v1842_v49, %v1838_v46 }
 0xc29   :  { %v5099_v34 = vpop.f32.mrf.mxu1 }
 0xc2b   :  { %v1538_v52 = vpop.f32.mrf.mxu1 }
 0xc2c   :  { %v1545_v53 = vsel %vm484_vm2, %v1538_v52, -inf }
 0xc2d   :  { %1546 = vmax.xlane.f32.xlu0 %v1545_v53  ;;  %v5112_v54 = vpop.f32.mrf.mxu1 }
 0xc2f   :  { %v1541_v30 = vpop.f32.mrf.mxu1 }
 0xc30   :  { %v1548_v56 = vsel %vm484_vm2, %v1541_v30, -inf }
 0xc31   :  { %1549 = vmax.xlane.f32.xlu1 %v1548_v56  ;;  %v5113_v58 = vpop.f32.mrf.mxu1 }
 0xc42   :  { %1568 = vrot.lane.b32.xlu1 %v6041_v38, %s5853_s27 }
 0xc46   :  { %1662 = vrot.lane.b32.xlu1 %v6068_v18, %s5868_s26 }
 0xcb6   :  { %v1547_v60 = vpop.xlane.xlu0 %1546 }
 0xcb7   :  { %v1551_v62 = vsub.f32 %v1538_v52, %v1547_v60 }
 0xcb9   :  { %v1553_v40 = vmul.f32 1.442695, %v1551_v62 }
 0xcba   :  { %v1550_v63 = vpop.xlane.xlu1 %1549 }
 0xcbb   :  { %5596 = vpow2.f32 %v1553_v40  ;;  %v1552_v2 = vsub.f32 %v1541_v30, %v1550_v63 }
 0xcbd   :  { %v1555_v3 = vmul.f32 1.442695, %v1552_v2  ;;  %v5433_v2 = vld [vmem:[%s6759_s8 + $0x30] sm:$0xff]  }
 0xcbe   :  { %v1569_v5 = vpop.permute.xlu1 %1568 }
 0xcbf   :  { %5598 = vpow2.f32 %v1555_v3  ;;  %5115 = vmatpush3.bf16.msra.mxu0 %v1569_v5  ;;  %v5435_v3 = vld [vmem:[%s6759_s8 + $0x28] sm:$0xff]   ;;  %v5437_v5 = vld [vmem:[%s6759_s8 + $0x20] sm:$0xff]  }
 0xcc0   :  { %5128 = vmatprep.subr.bf16.mxu0 %v5865_v27 }
 0xcc8   :  { %v5597_v6 = vpop.eup %5596 }
 0xcc9   :  { %v1557_v9 = vsel %vm484_vm2, %v5597_v6, 0.0 }
 0xcca   :  { %1558 = vadd.xlane.f32.xlu0 %v1557_v9  ;;  %v5441_v9 = vld [vmem:[%s6759_s8 + $0x10] sm:$0xff]  }
 0xccc   :  { %v5599_v41 = vpop.eup %5598 }
 0xccd   :  { %v1560_v59 = vsel %vm484_vm2, %v5599_v41, 0.0 }
 0xcce   :  { %1561 = vadd.xlane.f32.xlu0 %v1560_v59  ;;  %v5445_v59 = vld [vmem:[%s6759_s8] sm:$0xff]  }
 0xce4   :  { %1664 = vrot.lane.b32.xlu0 %v6173_v1, %s5868_s26  ;;  %v1663_v1 = vpop.permute.xlu1 %1662 }
 0xd53   :  { %v1559_v18 = vpop.xlane.xlu0 %1558 }
 0xd54   :  { %5600 = vrcp.f32 %v1559_v18  ;;  %v5448_v18 = vld [vmem:[%s6787_s25] sm:$0xff]  }
 0xd57   :  { %v1562_v10 = vpop.xlane.xlu0 %1561 }
 0xd58   :  { %5602 = vrcp.f32 %v1562_v10  ;;  %v5449_v10 = vld [vmem:[%s6787_s25 + $0x8] sm:$0xff]  }
 0xd5b   :  { %v1665_v4 = vpop.permute.xlu0 %1664 }
 0xd5c   :  { %v1670_v14 = vsel %vm436_vm1, %v1665_v4, 0 }
 0xd61   :  { %v5601_v57 = vpop.eup %5600 }
 0xd62   :  { %v1565_v11 = vmul.f32 %v5601_v57, %v5597_v6  ;;  %v5439_v6 = vld [vmem:[%s6759_s8 + $0x18] sm:$0xff]  }
 0xd65   :  { %v5603_v61 = vpop.eup %5602 }
 0xd66   :  { %v1566_v12 = vmul.f32 %v5603_v61, %v5599_v41  ;;  %v5443_v41 = vld [vmem:[%s6759_s8 + $0x8] sm:$0xff]  }
 0xd68   :  { %v1567_v13 = vpack.c.bf16 %v1566_v12, %v1565_v11  ;;  %v5446_v12 = vld [vmem:[%s6788_s17] sm:$0xff]  }
 0xd6a   :  { %5117 = vmatmul.mubr.msk.bf16.vlgmr.msra.gmra.mxu0 %vm484_vm2, %v1567_v13  ;;  %v5432_v13 = vld [vmem:[#allocation5 + $0x30] sm:$0xff]  }
 0xd6b   :  { %5129 = vmatpush3.bf16.xpose.msra.mxu0 %v1670_v14  ;;  %5130 = vmatprep.mubr.msk.bf16.mxu0 %vm5866_vm0, %v5865_v27 }
 0xd6c   :  { %5140 = vmatprep.subr.bf16.mxu0 %v5865_v27 }
 0xd72   :  { %5131 = vmatmul.mubr.msk.bf16.vlgmr.msra.gmra.mxu0 %vm436_vm1, %v1663_v1  ;;  %v5434_v1 = vld [vmem:[#allocation5 + $0x28] sm:$0xff]  }
 0xd73   :  { %5141 = vmatpush3.bf16.msra.mxu0 %v6188_v16  ;;  %5144 = vmatprep.mubr.msk.bf16.mxu0 %vm5866_vm0, %v5865_v27 }
 0xd74   :  { %5142 = vmatprep.subr.bf16.mxu0 %v5865_v27 }
 0xd77   :  { %5143 = vmatpush3.bf16.msra.mxu0 %v6214_v17 }
 0xe2a   :  { %v1608_v15 = vpop.f32.mrf.mxu0 }
 0xe2c   :  { %v5118_v19 = vpop.f32.mrf.mxu0 }
 0xe2d   :  { %v5438_v19 = vld [vmem:[#allocation5 + $0x18] sm:$0xff]  }
 0xe2e   :  { %v1611_v24 = vpop.f32.mrf.mxu0 }
 0xe2f   :  { %v1615_v8 = vpack.c.bf16 %v1611_v24, %v1608_v15  ;;  %v5436_v15 = vld [vmem:[#allocation5 + $0x20] sm:$0xff]   ;;  %v5440_v24 = vld [vmem:[#allocation5 + $0x10] sm:$0xff]  }
 0xe30   :  { %v5119_v20 = vpop.f32.mrf.mxu0 }
 0xe31   :  { %5125 = vmatmul.mubr.msk.bf16.vlgmr.msra.gmra.mxu1 %vm436_vm1, %v1615_v8  ;;  %v5442_v8 = vld [vmem:[#allocation5 + $0x8] sm:$0xff]   ;;  %v5444_v20 = vld [vmem:[#allocation5] sm:$0xff]  }
 0xe32   :  { %v1706_v21 = vpop.f32.mrf.mxu0  ;;  %5136 = vmatprep.mubr.msk.bf16.mxu1 %vm5866_vm0, %v5865_v27 }
 0xe33   :  { %v1713_v16 = vsel %vm484_vm2, %v1706_v21, -inf }
 0xe34   :  { %1714 = vmax.xlane.f32.xlu1 %v1713_v16  ;;  %v5132_v22 = vpop.f32.mrf.mxu0 }
 0xe36   :  { %v1709_v39 = vpop.f32.mrf.mxu0 }
 0xe37   :  { %v1716_v23 = vsel %vm484_vm2, %v1709_v39, -inf }
 0xe38   :  { %1717 = vmax.xlane.f32.xlu0 %v1716_v23  ;;  %v5133_v17 = vpop.f32.mrf.mxu0 }
 0xebd   :  { %v1715_v25 = vpop.xlane.xlu1 %1714 }
 0xebe   :  { %v1719_v26 = vsub.f32 %v1706_v21, %v1715_v25  ;;  %v5447_v21 = vld [vmem:[%s6788_s17 + $0x8] sm:$0xff]  }
 0xec0   :  { %v1721_v28 = vmul.f32 1.442695, %v1719_v26 }
 0xec1   :  { %v1718_v29 = vpop.xlane.xlu0 %1717 }
 0xec2   :  { %5604 = vpow2.f32 %v1721_v28  ;;  %v1720_v35 = vsub.f32 %v1709_v39, %v1718_v29  ;;  %v5701_v28 = vld [vmem:[%s6784_s3 + $0x8] sm:$0xff]  }
 0xec3   :  { %v1843_v29 = vunpack.c.l.bf16 %v5701_v28  ;;  %v1844_v43 = vunpack.c.h.bf16 %v5701_v28 }
 0xec4   :  { %v1723_v32 = vmul.f32 1.442695, %v1720_v35 }
 0xec6   :  { %5606 = vpow2.f32 %v1723_v32 }
 0xecf   :  { %v5605_v31 = vpop.eup %5604 }
 0xed0   :  { %v1725_v36 = vsel %vm484_vm2, %v5605_v31, 0.0 }
 0xed1   :  { %1726 = vadd.xlane.f32.xlu0 %v1725_v36 }
 0xed3   :  { %v5607_v37 = vpop.eup %5606 }
 0xed4   :  { %v1728_v45 = vsel %vm484_vm2, %v5607_v37, 0.0 }
 0xed5   :  { %1729 = vadd.xlane.f32.xlu1 %v1728_v45 }
 0xed9   :  { %1849 = vadd.xlane.f32.xlu1 %v6314_v47 }
 0xedd   :  { %1851 = vadd.xlane.f32.xlu1 %v6317_v50 }
 0xee7   :  { %1736 = vrot.lane.b32.xlu0 %v6041_v38, %s5868_s26 }
 0xef1   :  { %v1653_v7 = vpop.f32.mrf.mxu1 }
 0xef2   :  { %v6323_v34 = vadd.f32 %v1653_v7, %v6269_v48  ;;  %v5430_v48 = vld [vmem:[#allocation5 + $0x38] sm:$0xff]  }
 0xef3   :  { %v5126_v52 = vpop.f32.mrf.mxu1  ;;  %5168 = vmatprep.subr.bf16.mxu0 %v5430_v48 }
 0xef5   :  { %v1656_v53 = vpop.f32.mrf.mxu1 }
 0xef6   :  { %v6326_v55 = vadd.f32 %v1656_v53, %v6271_v51  ;;  %v5431_v51 = vld [vmem:[%s6759_s8 + $0x38] sm:$0xff]  }
 0xef7   :  { %v5127_v54 = vpop.f32.mrf.mxu1 }
 0xf5a   :  { %v1727_v30 = vpop.xlane.xlu0 %1726 }
 0xf5b   :  { %5608 = vrcp.f32 %v1727_v30 }
 0xf5e   :  { %v1730_v56 = vpop.xlane.xlu1 %1729  ;;  %v1737_v58 = vpop.permute.xlu0 %1736 }
 0xf5f   :  { %5610 = vrcp.f32 %v1730_v56  ;;  %5135 = vmatpush3.bf16.msra.mxu1 %v1737_v58 }
 0xf60   :  { %5148 = vmatprep.subr.bf16.mxu1 %v5431_v51 }
 0xf62   :  { %v1850_v17 = vpop.xlane.xlu1 %1849 }
 0xf63   :  { %v1858_v36 = vmul.f32 0.0078125, %v1850_v17 }
 0xf65   :  { %v1862_v49 = vsub.f32 %v6314_v47, %v1858_v36 }
 0xf66   :  { %v1852_v44 = vpop.xlane.xlu1 %1851 }
 0xf67   :  { %v1859_v7 = vmul.f32 0.0078125, %v1852_v44  ;;  %v1866_v53 = vmul.f32 %v1862_v49, %v1862_v49 }
 0xf68   :  { %v5609_v60 = vpop.eup %5608 }
 0xf69   :  { %v1733_v40 = vmul.f32 %v5609_v60, %v5605_v31  ;;  %v1863_v52 = vsub.f32 %v6317_v50, %v1859_v7 }
 0xf6b   :  { %v1867_v54 = vmul.f32 %v1863_v52, %v1863_v52 }
 0xf6c   :  { %v5611_v62 = vpop.eup %5610 }
 0xf6d   :  { %v1734_v38 = vmul.f32 %v5611_v62, %v5607_v37 }
 0xf6f   :  { %v1735_v63 = vpack.c.bf16 %v1734_v38, %v1733_v40  ;;  %v5450_v40 = vld [vmem:[#allocation7 + $0x38] sm:$0xff]  }
 0xf71   :  { %5137 = vmatmul.mubr.msk.bf16.vlgmr.msra.gmra.mxu1 %vm484_vm2, %v1735_v63 }
 0xf72   :  { %5149 = vmatpush3.bf16.msra.mxu1 %v5431_v51  ;;  %5164 = vmatprep.mubr.bf16.mxu1 %v5448_v18 }
 0xf73   :  { %5150 = vmatprep.subr.bf16.mxu1 %v5433_v2 }
 0xf76   :  { %5151 = vmatpush3.bf16.msra.mxu1 %v5433_v2 }
 0xf77   :  { %5152 = vmatprep.subr.bf16.mxu1 %v5435_v3 }
 0xf7a   :  { %5153 = vmatpush3.bf16.msra.mxu1 %v5435_v3 }
 0xf7b   :  { %5154 = vmatprep.subr.bf16.mxu1 %v5437_v5 }
 0xf7e   :  { %5155 = vmatpush3.bf16.msra.mxu1 %v5437_v5 }
 0xf7f   :  { %5156 = vmatprep.subr.bf16.mxu1 %v5439_v6 }
 0xf82   :  { %5157 = vmatpush3.bf16.msra.mxu1 %v5439_v6 }
 0xf83   :  { %5158 = vmatprep.subr.bf16.mxu1 %v5441_v9 }
 0xf86   :  { %5159 = vmatpush3.bf16.msra.mxu1 %v5441_v9 }
 0xf87   :  { %5160 = vmatprep.subr.bf16.mxu1 %v5443_v41 }
 0xf8a   :  { %5161 = vmatpush3.bf16.msra.mxu1 %v5443_v41 }
 0xf8b   :  { %5162 = vmatprep.subr.bf16.mxu1 %v5445_v59 }
 0xf8e   :  { %5163 = vmatpush3.bf16.msra.mxu1 %v5445_v59 }
 0xf8f   :  { %5188 = vmatprep.subr.bf16.mxu1 %v5450_v40 }
 0xf91   :  { %5165 = vmatmul.mubr.bf16.vlgmr.msra.gmra.mxu1 %v5449_v10 }
 0xf92   :  { %5189 = vmatpush3.bf16.msra.mxu1 %v5450_v40 }
0x1031   :  { %v1776_v57 = vpop.f32.mrf.mxu1 }
0x1033   :  { %v5138_v61 = vpop.f32.mrf.mxu1 }
0x1034   :  { %v5451_v61 = vld [vmem:[#allocation7 + $0x30] sm:$0xff]  }
0x1035   :  { %v1779_v11 = vpop.f32.mrf.mxu1  ;;  %5190 = vmatprep.subr.bf16.mxu1 %v5451_v61 }
0x1036   :  { %v1783_v4 = vpack.c.bf16 %v1779_v11, %v1776_v57  ;;  %5191 = vmatpush3.bf16.msra.mxu1 %v5451_v61  ;;  %v5452_v11 = vld [vmem:[#allocation7 + $0x28] sm:$0xff]  }
0x1037   :  { %v5139_v14 = vpop.f32.mrf.mxu1  ;;  %5192 = vmatprep.subr.bf16.mxu1 %v5452_v11 }
0x1038   :  { %5145 = vmatmul.mubr.msk.bf16.vlgmr.msra.gmra.mxu0 %vm436_vm1, %v1783_v4 }
0x1039   :  { %5169 = vmatpush3.bf16.msra.mxu0 %v5430_v48  ;;  %5184 = vmatprep.mubr.bf16.mxu0 %v5446_v12  ;;  %v5453_v12 = vld [vmem:[#allocation7 + $0x20] sm:$0xff]  }
0x103a   :  { %5170 = vmatprep.subr.bf16.mxu0 %v5432_v13  ;;  %5193 = vmatpush3.bf16.msra.mxu1 %v5452_v11 }
0x103b   :  { %5194 = vmatprep.subr.bf16.mxu1 %v5453_v12 }
0x103d   :  { %5171 = vmatpush3.bf16.msra.mxu0 %v5432_v13  ;;  %v5454_v13 = vld [vmem:[#allocation7 + $0x18] sm:$0xff]  }
0x103e   :  { %5172 = vmatprep.subr.bf16.mxu0 %v5434_v1  ;;  %5195 = vmatpush3.bf16.msra.mxu1 %v5453_v12 }
0x103f   :  { %5196 = vmatprep.subr.bf16.mxu1 %v5454_v13 }
0x1041   :  { %5173 = vmatpush3.bf16.msra.mxu0 %v5434_v1  ;;  %v4628_v1 = vld [vmem:[%s6757_s6] ss:$0 sm:$0xff] }
0x1042   :  { %5174 = vmatprep.subr.bf16.mxu0 %v5436_v15  ;;  %5197 = vmatpush3.bf16.msra.mxu1 %v5454_v13 }
0x1045   :  { %5175 = vmatpush3.bf16.msra.mxu0 %v5436_v15 }
0x1046   :  { %5176 = vmatprep.subr.bf16.mxu0 %v5438_v19 }
0x1049   :  { %5177 = vmatpush3.bf16.msra.mxu0 %v5438_v19  ;;  %v5455_v19 = vld [vmem:[#allocation7 + $0x10] sm:$0xff]  }
0x104a   :  { %5178 = vmatprep.subr.bf16.mxu0 %v5440_v24  ;;  %5198 = vmatprep.subr.bf16.mxu1 %v5455_v19 }
0x104b   :  { %5199 = vmatpush3.bf16.msra.mxu1 %v5455_v19 }
0x104d   :  { %5179 = vmatpush3.bf16.msra.mxu0 %v5440_v24 }
0x104e   :  { %5180 = vmatprep.subr.bf16.mxu0 %v5442_v8 }
0x1051   :  { %5181 = vmatpush3.bf16.msra.mxu0 %v5442_v8  ;;  %v5166_v16 = vpop.f32.mrf.mxu1 }
0x1052   :  { %5182 = vmatprep.subr.bf16.mxu0 %v5444_v20 }
0x1053   :  { %v2030_v22 = vpop.f32.mrf.mxu1 }
0x1055   :  { %5183 = vmatpush3.bf16.msra.mxu0 %v5444_v20  ;;  %v5167_v39 = vpop.f32.mrf.mxu1  ;;  %v4629_v20 = vld [vmem:[%s6758_s7] ss:$0 sm:$0xff] }
0x1056   :  { %5208 = vmatprep.subr.bf16.mxu0 %v5865_v27  ;;  %v6369_v23 = vpack.c.bf16 %v5167_v39, %v5166_v16  ;;  %v5456_v16 = vld [vmem:[#allocation7 + $0x8] sm:$0xff]  }
0x1057   :  { %v2033_v47 = vpop.f32.mrf.mxu1  ;;  %5200 = vmatprep.subr.bf16.mxu1 %v5456_v16 }
0x1058   :  { %5185 = vmatmul.mubr.bf16.vlgmr.msra.gmra.mxu0 %v5447_v21  ;;  %v6387_v50 = vpack.c.bf16 %v2033_v47, %v2030_v22  ;;  %5201 = vmatpush3.bf16.msra.mxu1 %v5456_v16 }
0x1059   :  { %5210 = vmatprep.mubr.msk.bf16.mxu0 %vm5866_vm0, %v5865_v27 }
0x10f8   :  { %v1821_v25 = vpop.f32.mrf.mxu0 }
0x10f9   :  { %v1828_v26 = vadd.f32 %v1821_v25, %v6323_v34  ;;  %v5457_v25 = vld [vmem:[#allocation7] sm:$0xff]  }
0x10fa   :  { %v5146_v35 = vpop.f32.mrf.mxu0  ;;  %5202 = vmatprep.subr.bf16.mxu1 %v5457_v25 }
0x10fb   :  { %v1839_v32 = vadd.f32 %v6303_v33, %v1828_v26  ;;  %5203 = vmatpush3.bf16.msra.mxu1 %v5457_v25 }
0x10fc   :  { %v1824_v31 = vpop.f32.mrf.mxu0  ;;  %5232 = vmatprep.subr.bf16.mxu1 %v5865_v27 }
0x10fd   :  { %v1829_v37 = vadd.f32 %v1824_v31, %v6326_v55  ;;  %v1847_v42 = vadd.f32 %v1843_v29, %v1839_v32 }
0x10fe   :  { %v5147_v45 = vpop.f32.mrf.mxu0 }
0x10ff   :  { %v1840_v46 = vadd.f32 %v6303_v33, %v1829_v37  ;;  %1853 = vadd.xlane.f32.xlu1 %v1847_v42 }
0x1101   :  { %v1848_v34 = vadd.f32 %v1844_v43, %v1840_v46 }
0x1103   :  { %1855 = vadd.xlane.f32.xlu1 %v1848_v34 }
0x1107   :  { %1870 = vadd.xlane.f32.xlu1 %v1866_v53 }
0x110b   :  { %1872 = vadd.xlane.f32.xlu1 %v1867_v54 }
0x1118   :  { %v5186_v30 = vpop.f32.mrf.mxu0 }
0x111a   :  { %v2159_v55 = vpop.f32.mrf.mxu0 }
0x111c   :  { %v5187_v56 = vpop.f32.mrf.mxu0 }
0x111d   :  { %v6380_v58 = vpack.c.bf16 %v5187_v56, %v5186_v30 }
0x111e   :  { %v2162_v60 = vpop.f32.mrf.mxu0 }
0x111f   :  { %v6382_v62 = vpack.c.bf16 %v2162_v60, %v2159_v55 }
0x1121   :  { %v2299_v33 = vsel %vm436_vm1, %v6382_v62, 0 }
0x1122   :  { %5209 = vmatpush3.bf16.xpose.msra.mxu0 %v2299_v33 }
0x1123   :  { %5214 = vmatprep.subr.bf16.mxu0 %v5865_v27 }
0x1129   :  { %5211 = vmatmul.mubr.msk.bf16.vlgmr.msra.gmra.mxu0 %vm436_vm1, %v6387_v50 }
0x112a   :  { %5216 = vmatprep.mubr.msk.bf16.mxu0 %vm5866_vm0, %v5865_v27 }
0x1188   :  { %v1854_v38 = vpop.xlane.xlu1 %1853 }
0x1189   :  { %v1860_v63 = vmul.f32 0.0078125, %v1854_v38 }
0x118b   :  { %v6393_v48 = vsub.f32 %v1847_v42, %v1860_v63 }
0x118c   :  { %v1856_v51 = vpop.xlane.xlu1 %1855 }
0x118d   :  { %v1861_v2 = vmul.f32 0.0078125, %v1856_v51  ;;  %v1868_v3 = vmul.f32 %v6393_v48, %v6393_v48 }
0x118f   :  { %v6397_v5 = vsub.f32 %v1848_v34, %v1861_v2  ;;  %1874 = vadd.xlane.f32.xlu0 %v1868_v3 }
0x1190   :  { %v1871_v6 = vpop.xlane.xlu1 %1870 }
0x1191   :  { %v1878_v9 = vmul.f32 0.0078125, %v1871_v6  ;;  %v1869_v41 = vmul.f32 %v6397_v5, %v6397_v5 }
0x1193   :  { %v1882_v59 = vadd.f32 1e-05, %v1878_v9  ;;  %1876 = vadd.xlane.f32.xlu1 %v1869_v41 }
0x1194   :  { %v1873_v18 = vpop.xlane.xlu1 %1872 }
0x1195   :  { %5612 = vrsqrt.f32 %v1882_v59  ;;  %v1879_v10 = vmul.f32 0.0078125, %v1873_v18 }
0x1197   :  { %v1883_v57 = vadd.f32 1e-05, %v1879_v10 }
0x1199   :  { %5614 = vrsqrt.f32 %v1883_v57 }
0x11a2   :  { %v5613_v4 = vpop.eup %5612 }
0x11a3   :  { %v1890_v14 = vmul.f32 %v5613_v4, %v1862_v49 }
0x11a5   :  { %2415 = vrot.lane.b32.xlu0 %v6387_v50, %s5867_s22  ;;  %v1901_v8 = vmul.f32 %v4628_v1, %v1890_v14 }
0x11a6   :  { %v5615_v15 = vpop.eup %5614 }
0x11a7   :  { %v1891_v24 = vmul.f32 %v5615_v15, %v1863_v52  ;;  %v6409_v22 = vadd.f32 %v4629_v20, %v1901_v8 }
0x11a9   :  { %v1902_v21 = vmul.f32 %v4628_v1, %v1891_v24 }
0x11ab   :  { %v6411_v39 = vadd.f32 %v4629_v20, %v1902_v21 }
0x11ad   :  { %v2174_v17 = vpack.c.bf16 %v6411_v39, %v6409_v22 }
0x11af   :  { %5204 = vmatprep.mubr.bf16.mxu1 %v2174_v17 }
0x11e9   :  { %v2335_v26 = vpop.f32.mrf.mxu0 }
0x11ea   :  { %v2342_v28 = vsel %vm484_vm2, %v2335_v26, -inf }
0x11eb   :  { %2343 = vmax.xlane.f32.xlu1 %v2342_v28  ;;  %v5212_v29 = vpop.f32.mrf.mxu0 }
0x11ed   :  { %v2338_v35 = vpop.f32.mrf.mxu0 }
0x11ee   :  { %v2345_v32 = vsel %vm484_vm2, %v2338_v35, -inf }
0x11ef   :  { %2346 = vmax.xlane.f32.xlu1 %v2345_v32  ;;  %v5213_v31 = vpop.f32.mrf.mxu0 }
0x1218   :  { %v1875_v36 = vpop.xlane.xlu0 %1874 }
0x1219   :  { %v1880_v37 = vmul.f32 0.0078125, %v1875_v36 }
0x121b   :  { %v1884_v42 = vadd.f32 1e-05, %v1880_v37 }
0x121c   :  { %v1877_v43 = vpop.xlane.xlu1 %1876 }
0x121d   :  { %5616 = vrsqrt.f32 %v1884_v42  ;;  %v1881_v44 = vmul.f32 0.0078125, %v1877_v43 }
0x121f   :  { %v1885_v45 = vadd.f32 1e-05, %v1881_v44 }
0x1221   :  { %5618 = vrsqrt.f32 %v1885_v45 }
0x122a   :  { %v5617_v46 = vpop.eup %5616 }
0x122b   :  { %v1892_v49 = vmul.f32 %v5617_v46, %v6393_v48 }
0x122d   :  { %v1903_v52 = vmul.f32 %v4628_v1, %v1892_v49  ;;  %v6457_v49 = vld [vmem:[#allocation8 + $0x18] sm:$0xff]  }
0x122e   :  { %v5619_v7 = vpop.eup %5618 }
0x122f   :  { %v1893_v34 = vmul.f32 %v5619_v7, %v6397_v5  ;;  %v6420_v54 = vadd.f32 %v4629_v20, %v1903_v52 }
0x1231   :  { %v1904_v53 = vmul.f32 %v4628_v1, %v1893_v34  ;;  %v2416_v1 = vpop.permute.xlu0 %2415 }
0x1233   :  { %v6422_v30 = vadd.f32 %v4629_v20, %v1904_v53 }
0x1235   :  { %v2175_v55 = vpack.c.bf16 %v6422_v30, %v6420_v54 }
0x1237   :  { %5205 = vmatmul.mubr.bf16.vlgmr.msra.gmra.mxu1 %v2175_v55 }
0x1238   :  { %5236 = vmatprep.mubr.msk.bf16.mxu1 %vm5866_vm0, %v5865_v27  ;;  %5233 = vmatpush3.bf16.msra.mxu1 %v6457_v49 }
0x1239   :  { %5234 = vmatprep.subr.bf16.mxu1 %v5865_v27 }
0x1274   :  { %v2344_v56 = vpop.xlane.xlu1 %2343 }
0x1275   :  { %v2348_v60 = vsub.f32 %v2335_v26, %v2344_v56 }
0x1277   :  { %v2350_v33 = vmul.f32 1.442695, %v2348_v60  ;;  %v6461_v60 = vld [vmem:[#allocation8 + $0x8] sm:$0xff]  }
0x1278   :  { %v2347_v47 = vpop.xlane.xlu1 %2346 }
0x1279   :  { %5620 = vpow2.f32 %v2350_v33  ;;  %v2349_v40 = vsub.f32 %v2338_v35, %v2347_v47  ;;  %v6465_v47 = vld [vmem:[#allocation8] sm:$0xff]  }
0x127b   :  { %v2352_v38 = vmul.f32 1.442695, %v2349_v40  ;;  %v6475_v40 = vld [vmem:[#allocation8 + $0x10] sm:$0xff]  }
0x127c   :  { %5235 = vmatpush3.bf16.msra.mxu1 %v6475_v40 }
0x127d   :  { %5622 = vpow2.f32 %v2352_v38  ;;  %5248 = vmatprep.subr.bf16.mxu1 %v5865_v27 }
0x1286   :  { %v5621_v63 = vpop.eup %5620 }
0x1287   :  { %v2354_v48 = vsel %vm484_vm2, %v5621_v63, 0.0 }
0x1288   :  { %2355 = vadd.xlane.f32.xlu1 %v2354_v48 }
0x128a   :  { %v5623_v51 = vpop.eup %5622 }
0x128b   :  { %v2357_v2 = vsel %vm484_vm2, %v5623_v51, 0.0 }
0x128c   :  { %2358 = vadd.xlane.f32.xlu1 %v2357_v2 }
0x129d   :  { %2418 = vrot.lane.b32.xlu1 %v6382_v62, %s5867_s22 }
0x12f7   :  { %v5206_v3 = vpop.f32.mrf.mxu1 }
0x12f9   :  { %v2274_v5 = vpop.f32.mrf.mxu1 }
0x12fb   :  { %v5207_v6 = vpop.f32.mrf.mxu1 }
0x12fc   :  { %v6432_v9 = vpack.c.bf16 %v5207_v6, %v5206_v3 }
0x12fd   :  { %v2277_v41 = vpop.f32.mrf.mxu1 }
0x12fe   :  { %v6434_v59 = vpack.c.bf16 %v2277_v41, %v2274_v5 }
0x1300   :  { %5215 = vmatpush3.bf16.msra.mxu0 %v6434_v59 }
0x1301   :  { %5220 = vmatprep.subr.bf16.mxu0 %v5865_v27 }
0x1311   :  { %v2356_v18 = vpop.xlane.xlu1 %2355 }
0x1312   :  { %5624 = vrcp.f32 %v2356_v18 }
0x1315   :  { %v2359_v10 = vpop.xlane.xlu1 %2358 }
0x1316   :  { %5626 = vrcp.f32 %v2359_v10 }
0x1319   :  { %v2419_v4 = vpop.permute.xlu1 %2418 }
0x131a   :  { %v2424_v14 = vsel %vm436_vm1, %v2419_v4, 0 }
0x131f   :  { %v5625_v57 = vpop.eup %5624 }
0x1320   :  { %v2362_v11 = vmul.f32 %v5625_v57, %v5621_v63 }
0x1323   :  { %v5627_v61 = vpop.eup %5626 }
0x1324   :  { %v2363_v12 = vmul.f32 %v5627_v61, %v5623_v51 }
0x1326   :  { %v2364_v13 = vpack.c.bf16 %v2363_v12, %v2362_v11 }
0x1328   :  { %5217 = vmatmul.mubr.msk.bf16.vlgmr.msra.gmra.mxu0 %vm484_vm2, %v2364_v13 }
0x1329   :  { %5221 = vmatpush3.bf16.xpose.msra.mxu0 %v2424_v14  ;;  %5222 = vmatprep.mubr.msk.bf16.mxu0 %vm5866_vm0, %v5865_v27 }
0x132a   :  { %5226 = vmatprep.subr.bf16.mxu0 %v5865_v27 }
0x1330   :  { %5223 = vmatmul.mubr.msk.bf16.vlgmr.msra.gmra.mxu0 %vm436_vm1, %v2416_v1 }
0x1331   :  { %5228 = vmatprep.mubr.msk.bf16.mxu0 %vm5866_vm0, %v5865_v27 }
0x13e8   :  { %v2402_v15 = vpop.f32.mrf.mxu0 }
0x13ea   :  { %v5218_v19 = vpop.f32.mrf.mxu0 }
0x13ec   :  { %v2405_v24 = vpop.f32.mrf.mxu0 }
0x13ed   :  { %v2409_v8 = vpack.c.bf16 %v2405_v24, %v2402_v15 }
0x13ee   :  { %v5219_v20 = vpop.f32.mrf.mxu0 }
0x13f0   :  { %v2460_v21 = vpop.f32.mrf.mxu0 }
0x13f1   :  { %v2467_v16 = vsel %vm484_vm2, %v2460_v21, -inf }
0x13f2   :  { %2468 = vmax.xlane.f32.xlu1 %v2467_v16  ;;  %v5224_v17 = vpop.f32.mrf.mxu0 }
0x13f4   :  { %v2463_v25 = vpop.f32.mrf.mxu0 }
0x13f5   :  { %v2470_v26 = vsel %vm484_vm2, %v2463_v25, -inf }
0x13f6   :  { %2471 = vmax.xlane.f32.xlu0 %v2470_v26  ;;  %v5225_v28 = vpop.f32.mrf.mxu0 }
0x140c   :  { %2491 = vrot.lane.b32.xlu0 %v6434_v59, %s5867_s22 }
0x147b   :  { %v2469_v29 = vpop.xlane.xlu1 %2468 }
0x147c   :  { %v2473_v35 = vsub.f32 %v2460_v21, %v2469_v29 }
0x147e   :  { %v2475_v32 = vmul.f32 1.442695, %v2473_v35 }
0x147f   :  { %v2472_v31 = vpop.xlane.xlu0 %2471 }
0x1480   :  { %5628 = vpow2.f32 %v2475_v32  ;;  %v2474_v36 = vsub.f32 %v2463_v25, %v2472_v31 }
0x1482   :  { %v2477_v37 = vmul.f32 1.442695, %v2474_v36 }
0x1483   :  { %v2492_v42 = vpop.permute.xlu0 %2491 }
0x1484   :  { %5630 = vpow2.f32 %v2477_v37  ;;  %5227 = vmatpush3.bf16.msra.mxu0 %v2492_v42 }
0x1485   :  { %5240 = vmatprep.subr.bf16.mxu0 %v5865_v27 }
0x148d   :  { %v5629_v43 = vpop.eup %5628 }
0x148e   :  { %v2479_v44 = vsel %vm484_vm2, %v5629_v43, 0.0 }
0x148f   :  { %2480 = vadd.xlane.f32.xlu1 %v2479_v44 }
0x1491   :  { %v5631_v45 = vpop.eup %5630 }
0x1492   :  { %v2482_v46 = vsel %vm484_vm2, %v5631_v45, 0.0 }
0x1493   :  { %2483 = vadd.xlane.f32.xlu1 %v2482_v46 }
0x14a4   :  { %2657 = vrot.lane.b32.xlu1 %v6382_v62, %s5853_s27 }
0x14a8   :  { %2655 = vrot.lane.b32.xlu1 %v6387_v50, %s5853_s27 }
0x1518   :  { %v2481_v7 = vpop.xlane.xlu1 %2480 }
0x1519   :  { %5632 = vrcp.f32 %v2481_v7  ;;  %v6514_v7 = vld [vmem:[#allocation8 + $0x28] sm:$0xff]  }
0x151c   :  { %v2484_v34 = vpop.xlane.xlu1 %2483 }
0x151d   :  { %5634 = vrcp.f32 %v2484_v34  ;;  %v6518_v34 = vld [vmem:[#allocation8 + $0x20] sm:$0xff]  }
0x1520   :  { %v2658_v48 = vpop.permute.xlu1 %2657 }
0x1521   :  { %v2663_v5 = vsel %vm436_vm1, %v2658_v48, 0 }
0x1524   :  { %v2656_v10 = vpop.permute.xlu1 %2655 }
0x1526   :  { %v5633_v52 = vpop.eup %5632 }
0x1527   :  { %v2487_v55 = vmul.f32 %v5633_v52, %v5629_v43 }
0x152a   :  { %v5635_v53 = vpop.eup %5634 }
0x152b   :  { %v2488_v56 = vmul.f32 %v5635_v53, %v5631_v45 }
0x152d   :  { %v2489_v33 = vpack.c.bf16 %v2488_v56, %v2487_v55 }
0x152f   :  { %5229 = vmatmul.mubr.msk.bf16.vlgmr.msra.gmra.mxu0 %vm484_vm2, %v2489_v33 }
0x1530   :  { %5241 = vmatpush3.bf16.msra.mxu0 %v6461_v60  ;;  %5244 = vmatprep.mubr.msk.bf16.mxu0 %vm5866_vm0, %v5865_v27 }
0x1531   :  { %5242 = vmatprep.subr.bf16.mxu0 %v5865_v27 }
0x1534   :  { %5243 = vmatpush3.bf16.msra.mxu0 %v6465_v47 }
0x1535   :  { %5254 = vmatprep.subr.bf16.mxu0 %v5865_v27 }
0x1537   :  { %5245 = vmatmul.mubr.msk.bf16.vlgmr.msra.gmra.mxu0 %vm436_vm1, %v2409_v8 }
0x1538   :  { %5256 = vmatprep.mubr.msk.bf16.mxu0 %vm5866_vm0, %v5865_v27 }
0x15ef   :  { %v2531_v38 = vpop.f32.mrf.mxu0 }
0x15f1   :  { %v5230_v63 = vpop.f32.mrf.mxu0 }
0x15f3   :  { %v2534_v51 = vpop.f32.mrf.mxu0 }
0x15f4   :  { %v2538_v2 = vpack.c.bf16 %v2534_v51, %v2531_v38 }
0x15f5   :  { %v5231_v3 = vpop.f32.mrf.mxu0 }
0x15f6   :  { %5237 = vmatmul.mubr.msk.bf16.vlgmr.msra.gmra.mxu1 %vm436_vm1, %v2538_v2 }
0x15f7   :  { %5249 = vmatpush3.bf16.xpose.msra.mxu1 %v2663_v5  ;;  %v6481_v6 = vpop.f32.mrf.mxu0  ;;  %5250 = vmatprep.mubr.msk.bf16.mxu1 %vm5866_vm0, %v5865_v27 }
0x15f8   :  { %5260 = vmatprep.subr.bf16.mxu1 %v5865_v27 }
0x15f9   :  { %v5246_v41 = vpop.f32.mrf.mxu0 }
0x15fb   :  { %v6486_v18 = vpop.f32.mrf.mxu0 }
0x15fd   :  { %v5247_v57 = vpop.f32.mrf.mxu0 }
0x15fe   :  { %5251 = vmatmul.mubr.msk.bf16.vlgmr.msra.gmra.mxu1 %vm436_vm1, %v2656_v10 }
0x15ff   :  { %5264 = vmatprep.mubr.msk.bf16.mxu1 %vm5866_vm0, %v5865_v27  ;;  %5261 = vmatpush3.bf16.msra.mxu1 %v6514_v7 }
0x1600   :  { %5262 = vmatprep.subr.bf16.mxu1 %v5865_v27 }
0x1603   :  { %5263 = vmatpush3.bf16.msra.mxu1 %v6518_v34 }
0x1604   :  { %5274 = vmatprep.subr.bf16.mxu1 %v5865_v27 }
0x16b6   :  { %v6491_v61 = vpop.f32.mrf.mxu1 }
0x16b8   :  { %v5238_v11 = vpop.f32.mrf.mxu1 }
0x16ba   :  { %v6493_v12 = vpop.f32.mrf.mxu1 }
0x16bc   :  { %v5239_v4 = vpop.f32.mrf.mxu1 }
0x16be   :  { %v2699_v13 = vpop.f32.mrf.mxu1 }
0x16bf   :  { %v2706_v14 = vsel %vm484_vm2, %v2699_v13, -inf }
0x16c0   :  { %2707 = vmax.xlane.f32.xlu1 %v2706_v14  ;;  %v5252_v1 = vpop.f32.mrf.mxu1 }
0x16c2   :  { %v2702_v15 = vpop.f32.mrf.mxu1 }
0x16c3   :  { %v2709_v19 = vsel %vm484_vm2, %v2702_v15, -inf }
0x16c4   :  { %2710 = vmax.xlane.f32.xlu0 %v2709_v19  ;;  %v5253_v24 = vpop.f32.mrf.mxu1  ;;  %v2649_v19 = vadd.f32 %v6481_v6, %v6491_v61 }
0x16d1   :  { %2729 = vrot.lane.b32.xlu1 %v6434_v59, %s5853_s27 }
0x16d5   :  { %2839 = vrot.lane.b32.xlu1 %v6387_v50, %s5868_s26 }
0x1749   :  { %v2708_v8 = vpop.xlane.xlu1 %2707 }
0x174a   :  { %v2712_v20 = vsub.f32 %v2699_v13, %v2708_v8 }
0x174c   :  { %v2714_v21 = vmul.f32 1.442695, %v2712_v20 }
0x174d   :  { %v2730_v16 = vpop.permute.xlu1 %2729  ;;  %v2711_v17 = vpop.xlane.xlu0 %2710 }
0x174e   :  { %5636 = vpow2.f32 %v2714_v21  ;;  %v2713_v25 = vsub.f32 %v2702_v15, %v2711_v17  ;;  %5255 = vmatpush3.bf16.msra.mxu0 %v2730_v16  ;;  %v2652_v21 = vadd.f32 %v6486_v18, %v6493_v12 }
0x174f   :  { %5268 = vmatprep.subr.bf16.mxu0 %v5865_v27 }
0x1750   :  { %v2716_v26 = vmul.f32 1.442695, %v2713_v25 }
0x1752   :  { %5638 = vpow2.f32 %v2716_v26  ;;  %v6543_v26 = vld [vmem:[#allocation8 + $0x38] sm:$0xff]  }
0x175b   :  { %v5637_v28 = vpop.eup %5636 }
0x175c   :  { %v2718_v29 = vsel %vm484_vm2, %v5637_v28, 0.0 }
0x175d   :  { %2719 = vadd.xlane.f32.xlu0 %v2718_v29 }
0x175f   :  { %v5639_v35 = vpop.eup %5638 }
0x1760   :  { %v2721_v32 = vsel %vm484_vm2, %v5639_v35, 0.0 }
0x1761   :  { %2722 = vadd.xlane.f32.xlu0 %v2721_v32  ;;  %v3027_v32 = vsel %vm436_vm1, %v6380_v58, 0 }
0x1777   :  { %2841 = vrot.lane.b32.xlu0 %v6382_v62, %s5868_s26  ;;  %v2840_v62 = vpop.permute.xlu1 %2839 }
0x17e6   :  { %v2720_v50 = vpop.xlane.xlu0 %2719 }
0x17e7   :  { %5640 = vrcp.f32 %v2720_v50 }
0x17ea   :  { %v2723_v31 = vpop.xlane.xlu0 %2722 }
0x17eb   :  { %5642 = vrcp.f32 %v2723_v31 }
0x17ee   :  { %v2842_v44 = vpop.permute.xlu0 %2841 }
0x17ef   :  { %v2847_v46 = vsel %vm436_vm1, %v2842_v44, 0 }
0x17f4   :  { %v5641_v36 = vpop.eup %5640 }
0x17f5   :  { %v2726_v42 = vmul.f32 %v5641_v36, %v5637_v28 }
0x17f8   :  { %v5643_v37 = vpop.eup %5642 }
0x17f9   :  { %v2727_v43 = vmul.f32 %v5643_v37, %v5639_v35  ;;  %v6567_v37 = vld [vmem:[#allocation8 + $0x30] sm:$0xff]  }
0x17fb   :  { %v2728_v45 = vpack.c.bf16 %v2727_v43, %v2726_v42 }
0x17fd   :  { %5257 = vmatmul.mubr.msk.bf16.vlgmr.msra.gmra.mxu0 %vm484_vm2, %v2728_v45 }
0x17fe   :  { %5269 = vmatpush3.bf16.xpose.msra.mxu0 %v2847_v46  ;;  %5270 = vmatprep.mubr.msk.bf16.mxu0 %vm5866_vm0, %v5865_v27 }
0x17ff   :  { %5280 = vmatprep.subr.bf16.mxu0 %v5865_v27 }
0x1805   :  { %5271 = vmatmul.mubr.msk.bf16.vlgmr.msra.gmra.mxu0 %vm436_vm1, %v2840_v62 }
0x1806   :  { %5284 = vmatprep.mubr.msk.bf16.mxu0 %vm5866_vm0, %v5865_v27  ;;  %5281 = vmatpush3.bf16.msra.mxu0 %v6543_v26 }
0x1807   :  { %5282 = vmatprep.subr.bf16.mxu0 %v5865_v27 }
0x180a   :  { %5283 = vmatpush3.bf16.msra.mxu0 %v6567_v37 }
0x180b   :  { %5294 = vmatprep.subr.bf16.mxu0 %v5865_v27 }
0x18bd   :  { %v2769_v52 = vpop.f32.mrf.mxu0 }
0x18bf   :  { %v5258_v53 = vpop.f32.mrf.mxu0 }
0x18c1   :  { %v2772_v55 = vpop.f32.mrf.mxu0 }
0x18c2   :  { %v2776_v56 = vpack.c.bf16 %v2772_v55, %v2769_v52 }
0x18c3   :  { %v5259_v33 = vpop.f32.mrf.mxu0 }
0x18c4   :  { %5265 = vmatmul.mubr.msk.bf16.vlgmr.msra.gmra.mxu1 %vm436_vm1, %v2776_v56 }
0x18c5   :  { %v2883_v38 = vpop.f32.mrf.mxu0  ;;  %5276 = vmatprep.mubr.msk.bf16.mxu1 %vm5866_vm0, %v5865_v27 }
0x18c6   :  { %v2890_v63 = vsel %vm484_vm2, %v2883_v38, -inf }
0x18c7   :  { %2891 = vmax.xlane.f32.xlu1 %v2890_v63  ;;  %v5272_v48 = vpop.f32.mrf.mxu0 }
0x18c9   :  { %v2886_v51 = vpop.f32.mrf.mxu0 }
0x18ca   :  { %v2893_v2 = vsel %vm484_vm2, %v2886_v51, -inf }
0x18cb   :  { %2894 = vmax.xlane.f32.xlu0 %v2893_v2  ;;  %v5273_v3 = vpop.f32.mrf.mxu0 }
0x1950   :  { %v2892_v5 = vpop.xlane.xlu1 %2891 }
0x1951   :  { %v2896_v41 = vsub.f32 %v2883_v38, %v2892_v5 }
0x1953   :  { %v2898_v10 = vmul.f32 1.442695, %v2896_v41 }
0x1954   :  { %v2895_v57 = vpop.xlane.xlu0 %2894 }
0x1955   :  { %5644 = vpow2.f32 %v2898_v10  ;;  %v2897_v11 = vsub.f32 %v2886_v51, %v2895_v57 }
0x1957   :  { %v2900_v4 = vmul.f32 1.442695, %v2897_v11 }
0x1959   :  { %5646 = vpow2.f32 %v2900_v4 }
0x1962   :  { %v5645_v13 = vpop.eup %5644 }
0x1963   :  { %v2902_v14 = vsel %vm484_vm2, %v5645_v13, 0.0 }
0x1964   :  { %2903 = vadd.xlane.f32.xlu0 %v2902_v14 }
0x1966   :  { %v5647_v1 = vpop.eup %5646 }
0x1967   :  { %v2905_v15 = vsel %vm484_vm2, %v5647_v1, 0.0 }
0x1968   :  { %2906 = vadd.xlane.f32.xlu1 %v2905_v15 }
0x1979   :  { %3142 = vrot.lane.b32.xlu1 %v6380_v58, %s5867_s22 }
0x197a   :  { %2913 = vrot.lane.b32.xlu0 %v6434_v59, %s5868_s26 }
0x197d   :  { %3139 = vrot.lane.b32.xlu1 %v6369_v23, %s5867_s22 }
0x1984   :  { %v2830_v24 = vpop.f32.mrf.mxu1 }
0x1985   :  { %v6537_v8 = vadd.f32 %v2830_v24, %v2649_v19 }
0x1986   :  { %v5266_v20 = vpop.f32.mrf.mxu1 }
0x1988   :  { %v2833_v16 = vpop.f32.mrf.mxu1 }
0x1989   :  { %v6541_v17 = vadd.f32 %v2833_v16, %v2652_v21 }
0x198a   :  { %v5267_v25 = vpop.f32.mrf.mxu1 }
0x19ed   :  { %v2904_v59 = vpop.xlane.xlu0 %2903 }
0x19ee   :  { %5648 = vrcp.f32 %v2904_v59 }
0x19f1   :  { %v2907_v6 = vpop.xlane.xlu1 %2906  ;;  %v2914_v61 = vpop.permute.xlu0 %2913 }
0x19f2   :  { %5650 = vrcp.f32 %v2907_v6  ;;  %5275 = vmatpush3.bf16.msra.mxu1 %v2914_v61 }
0x19f3   :  { %5288 = vmatprep.subr.bf16.mxu1 %v5865_v27 }
0x19f5   :  { %v3143_v50 = vpop.permute.xlu1 %3142 }
0x19f6   :  { %v3148_v31 = vsel %vm436_vm1, %v3143_v50, 0 }
0x19f9   :  { %v3140_v36 = vpop.permute.xlu1 %3139 }
0x19fb   :  { %v5649_v28 = vpop.eup %5648 }
0x19fc   :  { %v2910_v12 = vmul.f32 %v5649_v28, %v5645_v13 }
0x19ff   :  { %v5651_v18 = vpop.eup %5650 }
0x1a00   :  { %v2911_v29 = vmul.f32 %v5651_v18, %v5647_v1 }
0x1a02   :  { %v2912_v35 = vpack.c.bf16 %v2911_v29, %v2910_v12 }
0x1a04   :  { %5277 = vmatmul.mubr.msk.bf16.vlgmr.msra.gmra.mxu1 %vm484_vm2, %v2912_v35 }
0x1a05   :  { %5289 = vmatpush3.bf16.xpose.msra.mxu1 %v3027_v32  ;;  %5290 = vmatprep.mubr.msk.bf16.mxu1 %vm5866_vm0, %v5865_v27 }
0x1a06   :  { %5300 = vmatprep.subr.bf16.mxu1 %v5865_v27 }
0x1a0c   :  { %5291 = vmatmul.mubr.msk.bf16.vlgmr.msra.gmra.mxu1 %vm436_vm1, %v6369_v23 }
0x1a0d   :  { %5301 = vmatpush3.bf16.xpose.msra.mxu1 %v3148_v31  ;;  %5302 = vmatprep.mubr.msk.bf16.mxu1 %vm5866_vm0, %v5865_v27 }
0x1a0e   :  { %5312 = vmatprep.subr.bf16.mxu1 %v5865_v27 }
0x1a14   :  { %5303 = vmatmul.mubr.msk.bf16.vlgmr.msra.gmra.mxu1 %vm436_vm1, %v3140_v36 }
0x1a15   :  { %5313 = vmatpush3.bf16.msra.mxu1 %v6457_v49  ;;  %5316 = vmatprep.mubr.msk.bf16.mxu1 %vm5866_vm0, %v5865_v27 }
0x1a16   :  { %5314 = vmatprep.subr.bf16.mxu1 %v5865_v27 }
0x1a19   :  { %5315 = vmatpush3.bf16.msra.mxu1 %v6475_v40 }
0x1a1a   :  { %5328 = vmatprep.subr.bf16.mxu1 %v5865_v27 }
0x1ac4   :  { %v2953_v42 = vpop.f32.mrf.mxu1 }
0x1ac6   :  { %v5278_v43 = vpop.f32.mrf.mxu1 }
0x1ac8   :  { %v2956_v44 = vpop.f32.mrf.mxu1 }
0x1ac9   :  { %v2960_v45 = vpack.c.bf16 %v2956_v44, %v2953_v42 }
0x1aca   :  { %v5279_v49 = vpop.f32.mrf.mxu1 }
0x1acb   :  { %5285 = vmatmul.mubr.msk.bf16.vlgmr.msra.gmra.mxu0 %vm436_vm1, %v2960_v45 }
0x1acc   :  { %5295 = vmatpush3.bf16.msra.mxu0 %v6432_v9  ;;  %v3063_v46 = vpop.f32.mrf.mxu1  ;;  %5296 = vmatprep.mubr.msk.bf16.mxu0 %vm5866_vm0, %v5865_v27 }
0x1acd   :  { %v3070_v40 = vsel %vm484_vm2, %v3063_v46, -inf  ;;  %5306 = vmatprep.subr.bf16.mxu0 %v5865_v27 }
0x1ace   :  { %3071 = vmax.xlane.f32.xlu1 %v3070_v40  ;;  %v5292_v62 = vpop.f32.mrf.mxu1 }
0x1ad0   :  { %v3066_v52 = vpop.f32.mrf.mxu1 }
0x1ad1   :  { %v3073_v53 = vsel %vm484_vm2, %v3066_v52, -inf }
0x1ad2   :  { %3074 = vmax.xlane.f32.xlu0 %v3073_v53  ;;  %v5293_v55 = vpop.f32.mrf.mxu1 }
0x1ad4   :  { %v3184_v56 = vpop.f32.mrf.mxu1 }
0x1ad5   :  { %v3191_v33 = vsel %vm484_vm2, %v3184_v56, -inf }
0x1ad6   :  { %3192 = vmax.xlane.f32.xlu0 %v3191_v33  ;;  %v5304_v38 = vpop.f32.mrf.mxu1 }
0x1ad8   :  { %v3187_v63 = vpop.f32.mrf.mxu1 }
0x1ad9   :  { %v3194_v48 = vsel %vm484_vm2, %v3187_v63, -inf }
0x1ada   :  { %3195 = vmax.xlane.f32.xlu0 %v3194_v48  ;;  %v5305_v51 = vpop.f32.mrf.mxu1 }
0x1b57   :  { %v3072_v2 = vpop.xlane.xlu1 %3071 }
0x1b58   :  { %v3076_v3 = vsub.f32 %v3063_v46, %v3072_v2 }
0x1b5a   :  { %v3078_v5 = vmul.f32 1.442695, %v3076_v3 }
0x1b5b   :  { %v3075_v41 = vpop.xlane.xlu0 %3074 }
0x1b5c   :  { %5652 = vpow2.f32 %v3078_v5  ;;  %v3077_v10 = vsub.f32 %v3066_v52, %v3075_v41 }
0x1b5e   :  { %v3080_v57 = vmul.f32 1.442695, %v3077_v10 }
0x1b5f   :  { %v3193_v11 = vpop.xlane.xlu0 %3192 }
0x1b60   :  { %5654 = vpow2.f32 %v3080_v57  ;;  %v3197_v4 = vsub.f32 %v3184_v56, %v3193_v11 }
0x1b62   :  { %v3199_v13 = vmul.f32 1.442695, %v3197_v4 }
0x1b63   :  { %v3196_v14 = vpop.xlane.xlu0 %3195 }
0x1b64   :  { %5656 = vpow2.f32 %v3199_v13  ;;  %v3198_v1 = vsub.f32 %v3187_v63, %v3196_v14 }
0x1b66   :  { %v3201_v15 = vmul.f32 1.442695, %v3198_v1 }
0x1b68   :  { %5658 = vpow2.f32 %v3201_v15 }
0x1b69   :  { %v5653_v19 = vpop.eup %5652 }
0x1b6a   :  { %v3082_v24 = vsel %vm484_vm2, %v5653_v19, 0.0 }
0x1b6b   :  { %3083 = vadd.xlane.f32.xlu1 %v3082_v24 }
0x1b6d   :  { %v5655_v20 = vpop.eup %5654 }
0x1b6e   :  { %v3085_v21 = vsel %vm484_vm2, %v5655_v20, 0.0 }
0x1b6f   :  { %3086 = vadd.xlane.f32.xlu0 %v3085_v21 }
0x1b71   :  { %v5657_v16 = vpop.eup %5656 }
0x1b72   :  { %v3203_v25 = vsel %vm484_vm2, %v5657_v16, 0.0 }
0x1b73   :  { %3204 = vadd.xlane.f32.xlu1 %v3203_v25 }
0x1b75   :  { %v5659_v59 = vpop.eup %5658 }
0x1b76   :  { %v3206_v6 = vsel %vm484_vm2, %v5659_v59, 0.0 }
0x1b77   :  { %3207 = vadd.xlane.f32.xlu0 %v3206_v6 }
0x1b84   :  { %3215 = vrot.lane.b32.xlu1 %v6432_v9, %s5867_s22 }
0x1b88   :  { %3351 = vrot.lane.b32.xlu1 %v6369_v23, %s5853_s27 }
0x1b8b   :  { %v3014_v61 = vpop.f32.mrf.mxu0 }
0x1b8c   :  { %v6589_v28 = vadd.f32 %v3014_v61, %v6537_v8 }
0x1b8d   :  { %3353 = vrot.lane.b32.xlu0 %v6380_v58, %s5853_s27  ;;  %v5286_v18 = vpop.f32.mrf.mxu0 }
0x1b8f   :  { %v3017_v12 = vpop.f32.mrf.mxu0 }
0x1b90   :  { %v6594_v29 = vadd.f32 %v3017_v12, %v6541_v17 }
0x1b91   :  { %v5287_v35 = vpop.f32.mrf.mxu0 }
0x1bf4   :  { %v3084_v32 = vpop.xlane.xlu1 %3083 }
0x1bf5   :  { %5660 = vrcp.f32 %v3084_v32 }
0x1bf8   :  { %v3087_v50 = vpop.xlane.xlu0 %3086 }
0x1bf9   :  { %5662 = vrcp.f32 %v3087_v50 }
0x1bfc   :  { %v3205_v31 = vpop.xlane.xlu1 %3204 }
0x1bfd   :  { %5664 = vrcp.f32 %v3205_v31 }
0x1c00   :  { %v3208_v36 = vpop.xlane.xlu0 %3207  ;;  %v3216_v49 = vpop.permute.xlu1 %3215 }
0x1c01   :  { %5666 = vrcp.f32 %v3208_v36 }
0x1c02   :  { %v5661_v42 = vpop.eup %5660 }
0x1c03   :  { %v3090_v43 = vmul.f32 %v5661_v42, %v5653_v19 }
0x1c04   :  { %v3354_v48 = vpop.permute.xlu0 %3353  ;;  %v3352_v5 = vpop.permute.xlu1 %3351 }
0x1c06   :  { %v5663_v8 = vpop.eup %5662 }
0x1c07   :  { %v3091_v44 = vmul.f32 %v5663_v8, %v5655_v20 }
0x1c09   :  { %v3092_v45 = vpack.c.bf16 %v3091_v44, %v3090_v43 }
0x1c0a   :  { %v5665_v46 = vpop.eup %5664 }
0x1c0b   :  { %5297 = vmatmul.mubr.msk.bf16.vlgmr.msra.gmra.mxu0 %vm484_vm2, %v3092_v45  ;;  %v3211_v40 = vmul.f32 %v5665_v46, %v5657_v16 }
0x1c0c   :  { %5307 = vmatpush3.bf16.msra.mxu0 %v3216_v49  ;;  %5308 = vmatprep.mubr.msk.bf16.mxu0 %vm5866_vm0, %v5865_v27 }
0x1c0d   :  { %5320 = vmatprep.subr.bf16.mxu0 %v5865_v27 }
0x1c0e   :  { %v5667_v17 = vpop.eup %5666 }
0x1c0f   :  { %v3212_v62 = vmul.f32 %v5667_v17, %v5659_v59 }
0x1c11   :  { %v3213_v52 = vpack.c.bf16 %v3212_v62, %v3211_v40 }
0x1c13   :  { %5309 = vmatmul.mubr.msk.bf16.vlgmr.msra.gmra.mxu0 %vm484_vm2, %v3213_v52 }
0x1c14   :  { %5321 = vmatpush3.bf16.msra.mxu0 %v6461_v60  ;;  %5324 = vmatprep.mubr.msk.bf16.mxu0 %vm5866_vm0, %v5865_v27 }
0x1c15   :  { %5322 = vmatprep.subr.bf16.mxu0 %v5865_v27 }
0x1c18   :  { %5323 = vmatpush3.bf16.msra.mxu0 %v6465_v47  ;;  %v3359_v47 = vsel %vm436_vm1, %v3354_v48, 0 }
0x1c19   :  { %5334 = vmatprep.subr.bf16.mxu0 %v5865_v27 }
0x1ccb   :  { %v3130_v53 = vpop.f32.mrf.mxu0 }
0x1ccd   :  { %v5298_v55 = vpop.f32.mrf.mxu0 }
0x1ccf   :  { %v3133_v56 = vpop.f32.mrf.mxu0 }
0x1cd0   :  { %v3137_v33 = vpack.c.bf16 %v3133_v56, %v3130_v53 }
0x1cd1   :  { %v5299_v38 = vpop.f32.mrf.mxu0 }
0x1cd2   :  { %5325 = vmatmul.mubr.msk.bf16.vlgmr.msra.gmra.mxu0 %vm436_vm1, %v3137_v33 }
0x1cd3   :  { %v3255_v63 = vpop.f32.mrf.mxu0  ;;  %5336 = vmatprep.mubr.msk.bf16.mxu0 %vm5866_vm0, %v5865_v27 }
0x1cd5   :  { %v5310_v60 = vpop.f32.mrf.mxu0 }
0x1cd7   :  { %v3258_v51 = vpop.f32.mrf.mxu0 }
0x1cd8   :  { %v3262_v2 = vpack.c.bf16 %v3258_v51, %v3255_v63 }
0x1cd9   :  { %v5311_v3 = vpop.f32.mrf.mxu0 }
0x1cda   :  { %5317 = vmatmul.mubr.msk.bf16.vlgmr.msra.gmra.mxu1 %vm436_vm1, %v3262_v2 }
0x1cdb   :  { %5329 = vmatpush3.bf16.xpose.msra.mxu1 %v3359_v47  ;;  %5330 = vmatprep.mubr.msk.bf16.mxu1 %vm5866_vm0, %v5865_v27 }
0x1cdc   :  { %5340 = vmatprep.subr.bf16.mxu1 %v5865_v27 }
0x1ce2   :  { %5331 = vmatmul.mubr.msk.bf16.vlgmr.msra.gmra.mxu1 %vm436_vm1, %v3352_v5 }
0x1ce3   :  { %5341 = vmatpush3.bf16.msra.mxu1 %v6514_v7  ;;  %5344 = vmatprep.mubr.msk.bf16.mxu1 %vm5866_vm0, %v5865_v27 }
0x1ce4   :  { %5342 = vmatprep.subr.bf16.mxu1 %v5865_v27 }
0x1ce7   :  { %5343 = vmatpush3.bf16.msra.mxu1 %v6518_v34 }
0x1ce8   :  { %5354 = vmatprep.subr.bf16.mxu1 %v5865_v27 }
0x1d92   :  { %v3344_v41 = vpop.f32.mrf.mxu0 }
0x1d94   :  { %v5326_v10 = vpop.f32.mrf.mxu0 }
0x1d96   :  { %v3347_v57 = vpop.f32.mrf.mxu0 }
0x1d98   :  { %v5327_v11 = vpop.f32.mrf.mxu0 }
0x1d9a   :  { %v3300_v4 = vpop.f32.mrf.mxu1 }
0x1d9b   :  { %v6622_v13 = vadd.f32 %v3344_v41, %v3300_v4  ;;  %v4690_v41 = vld [vmem:[%s6763_s12] ss:$0 sm:$0xff] }
0x1d9c   :  { %v5318_v14 = vpop.f32.mrf.mxu1  ;;  %v3695_v4 = vadd.f32 %v4690_v41, %v6594_v29 }
0x1d9e   :  { %v3303_v1 = vpop.f32.mrf.mxu1 }
0x1d9f   :  { %v6624_v15 = vadd.f32 %v3347_v57, %v3303_v1  ;;  %v3699_v1 = vadd.f32 %v3695_v4, %v6411_v39  ;;  %v5504_v4 = vld [vmem:[#allocation10 + $0x24] ss:$16 sps:$4 sm:$0xff]  }
0x1da0   :  { %v5319_v7 = vpop.f32.mrf.mxu1 }
0x1da2   :  { %v3395_v19 = vpop.f32.mrf.mxu1 }
0x1da3   :  { %v3402_v24 = vsel %vm484_vm2, %v3395_v19, -inf }
0x1da4   :  { %3403 = vmax.xlane.f32.xlu1 %v3402_v24  ;;  %v5332_v20 = vpop.f32.mrf.mxu1 }
0x1da6   :  { %v3398_v34 = vpop.f32.mrf.mxu1 }
0x1da7   :  { %v3405_v21 = vsel %vm484_vm2, %v3398_v34, -inf }
0x1da8   :  { %3406 = vmax.xlane.f32.xlu0 %v3405_v21  ;;  %v5333_v16 = vpop.f32.mrf.mxu1 }
0x1e2d   :  { %v3404_v25 = vpop.xlane.xlu1 %3403 }
0x1e2e   :  { %v3408_v59 = vsub.f32 %v3395_v19, %v3404_v25 }
0x1e30   :  { %v3410_v6 = vmul.f32 1.442695, %v3408_v59 }
0x1e31   :  { %v3407_v61 = vpop.xlane.xlu0 %3406 }
0x1e32   :  { %5668 = vpow2.f32 %v3410_v6  ;;  %v3409_v18 = vsub.f32 %v3398_v34, %v3407_v61 }
0x1e34   :  { %v3412_v12 = vmul.f32 1.442695, %v3409_v18 }
0x1e36   :  { %5670 = vpow2.f32 %v3412_v12 }
0x1e3f   :  { %v5669_v35 = vpop.eup %5668 }
0x1e40   :  { %v3414_v32 = vsel %vm484_vm2, %v5669_v35, 0.0 }
0x1e41   :  { %3415 = vadd.xlane.f32.xlu0 %v3414_v32 }
0x1e43   :  { %v5671_v50 = vpop.eup %5670 }
0x1e44   :  { %v3417_v31 = vsel %vm484_vm2, %v5671_v50, 0.0 }
0x1e45   :  { %3418 = vadd.xlane.f32.xlu1 %v3417_v31 }
0x1e56   :  { %3521 = vrot.lane.b32.xlu1 %v6380_v58, %s5868_s26 }
0x1e57   :  { %3425 = vrot.lane.b32.xlu0 %v6432_v9, %s5853_s27 }
0x1e5a   :  { %3519 = vrot.lane.b32.xlu1 %v6369_v23, %s5868_s26 }
0x1eca   :  { %v3416_v36 = vpop.xlane.xlu0 %3415 }
0x1ecb   :  { %5672 = vrcp.f32 %v3416_v36 }
0x1ece   :  { %v3419_v42 = vpop.xlane.xlu1 %3418  ;;  %v3426_v8 = vpop.permute.xlu0 %3425 }
0x1ecf   :  { %5674 = vrcp.f32 %v3419_v42  ;;  %5335 = vmatpush3.bf16.msra.mxu0 %v3426_v8 }
0x1ed0   :  { %5348 = vmatprep.subr.bf16.mxu0 %v5865_v27 }
0x1ed2   :  { %v3522_v46 = vpop.permute.xlu1 %3521 }
0x1ed3   :  { %v3527_v17 = vsel %vm436_vm1, %v3522_v46, 0 }
0x1ed6   :  { %v3520_v23 = vpop.permute.xlu1 %3519 }
0x1ed8   :  { %v5673_v43 = vpop.eup %5672 }
0x1ed9   :  { %v3422_v45 = vmul.f32 %v5673_v43, %v5669_v35 }
0x1edc   :  { %v5675_v44 = vpop.eup %5674 }
0x1edd   :  { %v3423_v49 = vmul.f32 %v5675_v44, %v5671_v50 }
0x1edf   :  { %v3424_v58 = vpack.c.bf16 %v3423_v49, %v3422_v45 }
0x1ee1   :  { %5337 = vmatmul.mubr.msk.bf16.vlgmr.msra.gmra.mxu0 %vm484_vm2, %v3424_v58 }
0x1ee2   :  { %5349 = vmatpush3.bf16.xpose.msra.mxu0 %v3527_v17  ;;  %5350 = vmatprep.mubr.msk.bf16.mxu0 %vm5866_vm0, %v5865_v27 }
0x1ee3   :  { %5360 = vmatprep.subr.bf16.mxu0 %v5865_v27 }
0x1ee9   :  { %5351 = vmatmul.mubr.msk.bf16.vlgmr.msra.gmra.mxu0 %vm436_vm1, %v3520_v23 }
0x1eea   :  { %5361 = vmatpush3.bf16.msra.mxu0 %v6543_v26  ;;  %5364 = vmatprep.mubr.msk.bf16.mxu0 %vm5866_vm0, %v5865_v27 }
0x1eeb   :  { %5362 = vmatprep.subr.bf16.mxu0 %v5865_v27 }
0x1eee   :  { %5363 = vmatpush3.bf16.msra.mxu0 %v6567_v37 }
0x1fa1   :  { %v3465_v40 = vpop.f32.mrf.mxu0 }
0x1fa3   :  { %v5338_v62 = vpop.f32.mrf.mxu0 }
0x1fa5   :  { %v3468_v52 = vpop.f32.mrf.mxu0 }
0x1fa6   :  { %v3472_v53 = vpack.c.bf16 %v3468_v52, %v3465_v40  ;;  %v5468_v52 = vld [vmem:[#allocation10 + $0xe4] ss:$16 sps:$4 sm:$0xff]  }
0x1fa7   :  { %v5339_v55 = vpop.f32.mrf.mxu0 }
0x1fa8   :  { %5345 = vmatmul.mubr.msk.bf16.vlgmr.msra.gmra.mxu1 %vm436_vm1, %v3472_v53  ;;  %v5471_v53 = vld [vmem:[#allocation10 + $0xec] ss:$16 sps:$4 sm:$0xff]   ;;  %v5466_v55 = vld [vmem:[#allocation10 + $0xe0] ss:$16 sps:$4 sm:$0xff]  }
0x1fa9   :  { %v3563_v56 = vpop.f32.mrf.mxu0  ;;  %5356 = vmatprep.mubr.msk.bf16.mxu1 %vm5866_vm0, %v5865_v27  ;;  %4037 = vmatprep.subr.bf16.mxu0 %v5471_v53  ;;  %v5521_v53 = vld [vmem:[#allocation11 + $0xb0] sm:$0xff]  }
0x1faa   :  { %v3570_v26 = vsel %vm484_vm2, %v3563_v56, -inf }
0x1fab   :  { %3571 = vmax.xlane.f32.xlu1 %v3570_v26  ;;  %v5352_v33 = vpop.f32.mrf.mxu0  ;;  %v5477_v26 = vld [vmem:[#allocation10 + $0xcc] ss:$16 sps:$4 sm:$0xff]  }
0x1fac   :  { %v5472_v33 = vld [vmem:[#allocation10 + $0xc0] ss:$16 sps:$4 sm:$0xff]  }
0x1fad   :  { %v3566_v38 = vpop.f32.mrf.mxu0 }
0x1fae   :  { %v3573_v63 = vsel %vm484_vm2, %v3566_v38, -inf }
0x1faf   :  { %3574 = vmax.xlane.f32.xlu0 %v3573_v63  ;;  %v5353_v37 = vpop.f32.mrf.mxu0  ;;  %v5483_v63 = vld [vmem:[#allocation10 + $0xac] ss:$16 sps:$4 sm:$0xff]  }
0x1fb0   :  { %v5478_v37 = vld [vmem:[#allocation10 + $0xa0] ss:$16 sps:$4 sm:$0xff]  }
0x1fbc   :  { %3593 = vrot.lane.b32.xlu1 %v6432_v9, %s5868_s26  ;;  %v3694_v9 = vadd.f32 %v4690_v41, %v6589_v28 }
0x1fbe   :  { %v3698_v14 = vadd.f32 %v3694_v9, %v6409_v22  ;;  %v5496_v9 = vld [vmem:[#allocation10 + $0x40] ss:$16 sps:$4 sm:$0xff]  }
0x2034   :  { %v3572_v60 = vpop.xlane.xlu1 %3571 }
0x2035   :  { %v3576_v48 = vsub.f32 %v3563_v56, %v3572_v60  ;;  %v5474_v56 = vld [vmem:[#allocation10 + $0xc4] ss:$16 sps:$4 sm:$0xff]   ;;  %v5481_v60 = vld [vmem:[#allocation10 + $0xa8] ss:$16 sps:$4 sm:$0xff]  }
0x2037   :  { %v3578_v51 = vmul.f32 1.442695, %v3576_v48  ;;  %v5484_v48 = vld [vmem:[#allocation10 + $0x80] ss:$16 sps:$4 sm:$0xff]  }
0x2038   :  { %v3594_v2 = vpop.permute.xlu1 %3593  ;;  %v3575_v3 = vpop.xlane.xlu0 %3574 }
0x2039   :  { %5676 = vpow2.f32 %v3578_v51  ;;  %v3577_v47 = vsub.f32 %v3566_v38, %v3575_v3  ;;  %5355 = vmatpush3.bf16.msra.mxu1 %v3594_v2  ;;  %v5475_v38 = vld [vmem:[#allocation10 + $0xc8] ss:$16 sps:$4 sm:$0xff]   ;;  %v5486_v51 = vld [vmem:[#allocation10 + $0x84] ss:$16 sps:$4 sm:$0xff]   ;;  %v5489_v3 = vld [vmem:[#allocation10 + $0x8c] ss:$16 sps:$4 sm:$0xff]  }
0x203a   :  { %3984 = vmatprep.subr.bf16.mxu1 %v5468_v52  ;;  %v5487_v2 = vld [vmem:[#allocation10 + $0x88] ss:$16 sps:$4 sm:$0xff]   ;;  %v5520_v52 = vld [vmem:[#allocation11 + $0x30] sm:$0xff]  }
0x203b   :  { %v3580_v27 = vmul.f32 1.442695, %v3577_v47  ;;  %v5492_v47 = vld [vmem:[#allocation10 + $0x64] ss:$16 sps:$4 sm:$0xff]  }
0x203d   :  { %5678 = vpow2.f32 %v3580_v27  ;;  %v5495_v27 = vld [vmem:[#allocation10 + $0x6c] ss:$16 sps:$4 sm:$0xff]  }
0x2046   :  { %v5677_v5 = vpop.eup %5676 }
0x2047   :  { %v3582_v10 = vsel %vm484_vm2, %v5677_v5, 0.0 }
0x2048   :  { %3583 = vadd.xlane.f32.xlu0 %v3582_v10  ;;  %v5498_v10 = vld [vmem:[#allocation10 + $0x44] ss:$16 sps:$4 sm:$0xff]  }
0x204a   :  { %v5679_v57 = vpop.eup %5678 }
0x204b   :  { %v3585_v11 = vsel %vm484_vm2, %v5679_v57, 0.0 }
0x204c   :  { %3586 = vadd.xlane.f32.xlu0 %v3585_v11  ;;  %v5499_v11 = vld [vmem:[#allocation10 + $0x48] ss:$16 sps:$4 sm:$0xff]  }
0x2050   :  { %3702 = vadd.xlane.f32.xlu0 %v3698_v14 }
0x2054   :  { %3704 = vadd.xlane.f32.xlu0 %v3699_v1 }
0x2068   :  { %v3510_v7 = vpop.f32.mrf.mxu1 }
0x2069   :  { %v3517_v19 = vadd.f32 %v3510_v7, %v6622_v13  ;;  %v5505_v7 = vld [vmem:[#allocation10 + $0x28] ss:$16 sps:$4 sm:$0xff]  }
0x206a   :  { %v5346_v24 = vpop.f32.mrf.mxu1 }
0x206b   :  { %v5513_v24 = vld [vmem:[#allocation10 + $0xc] ss:$16 sps:$4 sm:$0xff]  }
0x206c   :  { %v3513_v20 = vpop.f32.mrf.mxu1 }
0x206d   :  { %v3518_v34 = vadd.f32 %v3513_v20, %v6624_v15  ;;  %v5508_v20 = vld [vmem:[#allocation10] ss:$16 sps:$4 sm:$0xff]  }
0x206e   :  { %v5347_v21 = vpop.f32.mrf.mxu1 }
0x20d1   :  { %v3584_v28 = vpop.xlane.xlu0 %3583 }
0x20d2   :  { %5680 = vrcp.f32 %v3584_v28 }
0x20d5   :  { %v3587_v16 = vpop.xlane.xlu0 %3586 }
0x20d6   :  { %5682 = vrcp.f32 %v3587_v16 }
0x20d9   :  { %v3703_v25 = vpop.xlane.xlu0 %3702 }
0x20da   :  { %v3710_v29 = vmul.f32 0.0078125, %v3703_v25 }
0x20dc   :  { %v6666_v59 = vsub.f32 %v3698_v14, %v3710_v29  ;;  %v5507_v14 = vld [vmem:[#allocation10 + $0x2c] ss:$16 sps:$4 sm:$0xff]  }
0x20dd   :  { %v3705_v42 = vpop.xlane.xlu0 %3704 }
0x20de   :  { %v3718_v22 = vmul.f32 %v6666_v59, %v6666_v59  ;;  %v3711_v45 = vmul.f32 0.0078125, %v3705_v42 }
0x20df   :  { %v5681_v39 = vpop.eup %5680 }
0x20e0   :  { %3722 = vadd.xlane.f32.xlu1 %v3718_v22  ;;  %v3590_v13 = vmul.f32 %v5681_v39, %v5677_v5  ;;  %v6678_v23 = vsub.f32 %v3699_v1, %v3711_v45  ;;  %v5490_v5 = vld [vmem:[#allocation10 + $0x60] ss:$16 sps:$4 sm:$0xff]  }
0x20e1   :  { %v5502_v1 = vld [vmem:[#allocation10 + $0x20] ss:$16 sps:$4 sm:$0xff]  }
0x20e2   :  { %v3719_v62 = vmul.f32 %v6678_v23, %v6678_v23 }
0x20e3   :  { %v5683_v6 = vpop.eup %5682 }
0x20e4   :  { %v3591_v61 = vmul.f32 %v5683_v6, %v5679_v57  ;;  %v5501_v57 = vld [vmem:[#allocation10 + $0x4c] ss:$16 sps:$4 sm:$0xff]  }
0x20e6   :  { %v3592_v18 = vpack.c.bf16 %v3591_v61, %v3590_v13 }
0x20e8   :  { %5357 = vmatmul.mubr.msk.bf16.vlgmr.msra.gmra.mxu1 %vm484_vm2, %v3592_v18 }
0x20e9   :  { %4016 = vmatprep.mubr.bf16.mxu1 %v5864_v0  ;;  %3985 = vmatpush1.bf16.msra.mxu1 %v5466_v55  ;;  %v5522_v55 = vld [vmem:[#allocation11 + $0x68] sm:$0xff]  }
0x20ea   :  { %3986 = vmatprep.subr.bf16.mxu1 %v5474_v56  ;;  %v5524_v56 = vld [vmem:[#allocation11 + $0x28] sm:$0xff]  }
0x20ed   :  { %3987 = vmatpush1.bf16.msra.mxu1 %v5472_v33  ;;  %v5527_v33 = vld [vmem:[#allocation11 + $0xe0] sm:$0xff]  }
0x2169   :  { %v3723_v21 = vpop.xlane.xlu1 %3722 }
0x216a   :  { %v3730_v28 = vmul.f32 0.0078125, %v3723_v21 }
0x216c   :  { %v3734_v29 = vadd.f32 1e-05, %v3730_v28 }
0x216e   :  { %5684 = vrsqrt.f32 %v3734_v29 }
0x21a8   :  { %v3633_v15 = vpop.f32.mrf.mxu1 }
0x21aa   :  { %v5358_v12 = vpop.f32.mrf.mxu1 }
0x21ac   :  { %v3636_v35 = vpop.f32.mrf.mxu1 }
0x21ad   :  { %v3640_v32 = vpack.c.bf16 %v3636_v35, %v3633_v15 }
0x21ae   :  { %v5359_v50 = vpop.f32.mrf.mxu1 }
0x21af   :  { %5365 = vmatmul.mubr.msk.bf16.vlgmr.msra.gmra.mxu0 %vm436_vm1, %v3640_v32  ;;  %v5685_v32 = vpop.eup %5684 }
0x21b0   :  { %4069 = vmatprep.mubr.bf16.mxu0 %v5864_v0  ;;  %v3742_v50 = vmul.f32 %v5685_v32, %v6666_v59  ;;  %v3802_v32 = vld [vmem:[%s6767_s16] sm:$0xf] }
0x226f   :  { %v3678_v31 = vpop.f32.mrf.mxu0 }
0x2270   :  { %v3685_v36 = vadd.f32 %v3678_v31, %v3517_v19  ;;  %v5510_v19 = vld [vmem:[#allocation10 + $0x4] ss:$16 sps:$4 sm:$0xff]   ;;  %v6700_v31 = vld [vmem:[%s6764_s13] ss:$0 sm:$0xff] }
0x2271   :  { %v5366_v8 = vpop.f32.mrf.mxu0 }
0x2272   :  { %v3696_v43 = vadd.f32 %v4690_v41, %v3685_v36  ;;  %v3753_v8 = vmul.f32 %v6700_v31, %v3742_v50 }
0x2273   :  { %v3681_v44 = vpop.f32.mrf.mxu0 }
0x2274   :  { %v3686_v49 = vadd.f32 %v3681_v44, %v3518_v34  ;;  %v6675_v46 = vadd.f32 %v3696_v43, %v6420_v54  ;;  %v5469_v54 = vld [vmem:[#allocation10 + $0xe8] ss:$16 sps:$4 sm:$0xff]   ;;  %v6707_v43 = vld [vmem:[%s6765_s14] ss:$0 sm:$0xff] }
0x2275   :  { %v5367_v58 = vpop.f32.mrf.mxu0  ;;  %4038 = vmatpush1.bf16.msra.mxu0 %v5469_v54  ;;  %v5511_v34 = vld [vmem:[#allocation10 + $0x8] ss:$16 sps:$4 sm:$0xff]   ;;  %v6711_v45 = vadd.f32 %v6707_v43, %v3753_v8 }
0x2276   :  { %v3697_v17 = vadd.f32 %v4690_v41, %v3686_v49  ;;  %3706 = vadd.xlane.f32.xlu0 %v6675_v46  ;;  %4039 = vmatprep.subr.bf16.mxu0 %v5477_v26  ;;  %v5493_v41 = vld [vmem:[#allocation10 + $0x68] ss:$16 sps:$4 sm:$0xff]   ;;  %v5526_v26 = vld [vmem:[#allocation11 + $0x60] sm:$0xff]  }
0x2277   :  { %v5515_v58 = vld [vmem:[#allocation11 + $0xf8] sm:$0xff]   ;;  %v5523_v54 = vld [vmem:[#allocation11 + $0xe8] sm:$0xff]  }
0x2278   :  { %v6681_v40 = vadd.f32 %v3697_v17, %v6422_v30  ;;  %v5480_v30 = vld [vmem:[#allocation10 + $0xa4] ss:$16 sps:$4 sm:$0xff]   ;;  %v5516_v17 = vld [vmem:[#allocation11 + $0x38] sm:$0xff]  }
0x2279   :  { %4040 = vmatpush1.bf16.msra.mxu0 %v5475_v38  ;;  %3988 = vmatprep.subr.bf16.mxu1 %v5480_v30  ;;  %v5528_v38 = vld [vmem:[#allocation11 + $0x20] sm:$0xff]  }
0x227a   :  { %3708 = vadd.xlane.f32.xlu0 %v6681_v40  ;;  %4041 = vmatprep.subr.bf16.mxu0 %v5483_v63  ;;  %v5529_v30 = vld [vmem:[#allocation11 + $0xa0] sm:$0xff]   ;;  %v5530_v63 = vld [vmem:[#allocation11 + $0x58] sm:$0xff]  }
0x227b   :  { %3989 = vmatpush1.bf16.msra.mxu1 %v5478_v37  ;;  %v5531_v37 = vld [vmem:[#allocation11 + $0xd8] sm:$0xff]  }
0x227c   :  { %3990 = vmatprep.subr.bf16.mxu1 %v5486_v51  ;;  %v5534_v51 = vld [vmem:[#allocation11 + $0x50] sm:$0xff]  }
0x227d   :  { %4042 = vmatpush1.bf16.msra.mxu0 %v5481_v60  ;;  %v5532_v60 = vld [vmem:[#allocation11 + $0x18] sm:$0xff]  }
0x227e   :  { %3724 = vadd.xlane.f32.xlu0 %v3719_v62  ;;  %4043 = vmatprep.subr.bf16.mxu0 %v5489_v3  ;;  %v5519_v62 = vld [vmem:[#allocation11 + $0xf0] sm:$0xff]  }
0x227f   :  { %3991 = vmatpush1.bf16.msra.mxu1 %v5484_v48  ;;  %v5533_v48 = vld [vmem:[#allocation11 + $0x98] sm:$0xff]   ;;  %v5536_v3 = vld [vmem:[#allocation11 + $0x10] sm:$0xff]  }
0x2280   :  { %3992 = vmatprep.subr.bf16.mxu1 %v5492_v47  ;;  %v5537_v47 = vld [vmem:[#allocation11 + $0x90] sm:$0xff]  }
0x2281   :  { %4044 = vmatpush1.bf16.msra.mxu0 %v5487_v2  ;;  %v5535_v2 = vld [vmem:[#allocation11 + $0xd0] sm:$0xff]  }
0x2282   :  { %4045 = vmatprep.subr.bf16.mxu0 %v5495_v27  ;;  %v5538_v27 = vld [vmem:[#allocation11 + $0x48] sm:$0xff]  }
0x2283   :  { %3993 = vmatpush1.bf16.msra.mxu1 %v5490_v5  ;;  %v5539_v5 = vld [vmem:[#allocation11 + $0xc8] sm:$0xff]  }
0x2284   :  { %3994 = vmatprep.subr.bf16.mxu1 %v5498_v10  ;;  %v5541_v10 = vld [vmem:[#allocation11 + $0x88] sm:$0xff]  }
0x2285   :  { %4046 = vmatpush1.bf16.msra.mxu0 %v5493_v41  ;;  %v5540_v41 = vld [vmem:[#allocation11 + $0x8] sm:$0xff]  }
0x2286   :  { %4047 = vmatprep.subr.bf16.mxu0 %v5501_v57  ;;  %v5542_v57 = vld [vmem:[#allocation11 + $0x40] sm:$0xff]  }
0x2287   :  { %3995 = vmatpush1.bf16.msra.mxu1 %v5496_v9  ;;  %v5543_v9 = vld [vmem:[#allocation11 + $0xc0] sm:$0xff]  }
0x2288   :  { %3996 = vmatprep.subr.bf16.mxu1 %v5504_v4  ;;  %v5545_v4 = vld [vmem:[#allocation11 + $0x80] sm:$0xff]  }
0x2289   :  { %4048 = vmatpush1.bf16.msra.mxu0 %v5499_v11  ;;  %v5544_v11 = vld [vmem:[#allocation11] sm:$0xff]  }
0x228a   :  { %4049 = vmatprep.subr.bf16.mxu0 %v5507_v14 }
0x228b   :  { %3997 = vmatpush1.bf16.msra.mxu1 %v5502_v1 }
0x228c   :  { %3998 = vmatprep.subr.bf16.mxu1 %v5510_v19 }
0x228d   :  { %4050 = vmatpush1.bf16.msra.mxu0 %v5505_v7 }
0x228e   :  { %4051 = vmatprep.subr.bf16.mxu0 %v5513_v24 }
0x228f   :  { %3999 = vmatpush1.bf16.msra.mxu1 %v5508_v20 }
0x2291   :  { %4052 = vmatpush1.bf16.msra.mxu0 %v5511_v34 }
0x2292   :  { %4940 = vmatprep.subr.bf16.mxu0 %v5515_v58 }
0x22ff   :  { %v3707_v16 = vpop.xlane.xlu0 %3706 }
0x2300   :  { %v3712_v25 = vmul.f32 0.0078125, %v3707_v16 }
0x2302   :  { %v6687_v22 = vsub.f32 %v6675_v46, %v3712_v25  ;;  %v5514_v46 = vld [vmem:[#allocation11 + $0x78] sm:$0xff]  }
0x2303   :  { %v3709_v39 = vpop.xlane.xlu0 %3708  ;;  %4912 = vmatprep.subr.bf16.mxu1 %v5514_v46 }
0x2304   :  { %v3713_v6 = vmul.f32 0.0078125, %v3709_v39  ;;  %v3720_v13 = vmul.f32 %v6687_v22, %v6687_v22 }
0x2306   :  { %v6692_v61 = vsub.f32 %v6681_v40, %v3713_v6  ;;  %3726 = vadd.xlane.f32.xlu0 %v3720_v13  ;;  %v5518_v40 = vld [vmem:[#allocation11 + $0x70] sm:$0xff]  }
0x2307   :  { %v3725_v18 = vpop.xlane.xlu0 %3724 }
0x2308   :  { %v3731_v15 = vmul.f32 0.0078125, %v3725_v18  ;;  %v3721_v12 = vmul.f32 %v6692_v61, %v6692_v61  ;;  %v3804_v18 = vlaneseq }
0x230a   :  { %v3735_v35 = vadd.f32 1e-05, %v3731_v15  ;;  %3728 = vadd.xlane.f32.xlu0 %v3721_v12 }
0x230c   :  { %5686 = vrsqrt.f32 %v3735_v35 }
0x2319   :  { %v5687_v36 = vpop.eup %5686 }
0x231a   :  { %v3743_v42 = vmul.f32 %v5687_v36, %v6678_v23  ;;  %v5517_v23 = vld [vmem:[#allocation11 + $0xb8] sm:$0xff]  }
0x231c   :  { %v3754_v44 = vmul.f32 %v6700_v31, %v3743_v42 }
0x231e   :  { %v6714_v59 = vadd.f32 %v6707_v43, %v3754_v44 }
0x2320   :  { %v3768_v49 = vpack.c.bf16 %v6714_v59, %v6711_v45 }
0x2322   :  { %4017 = vmatmul.mubr.bf16.vlgmr.msra.gmra.mxu1 %v3768_v49  ;;  %4070 = vmatmul.mubr.bf16.vlgmr.msra.gmra.mxu0 %v3768_v49 }
0x2323   :  { %4026 = vmatprep.mubr.bf16.mxu1 %v5864_v0  ;;  %4079 = vmatprep.mubr.bf16.mxu0 %v5864_v0  ;;  %v5525_v0 = vld [vmem:[#allocation11 + $0xa8] sm:$0xff]  }
0x2324   :  { %4913 = vmatpush3.bf16.msra.mxu1 %v5516_v17  ;;  %4941 = vmatpush3.bf16.msra.mxu0 %v5517_v23 }
0x2325   :  { %4914 = vmatprep.subr.bf16.mxu1 %v5518_v40  ;;  %4942 = vmatprep.subr.bf16.mxu0 %v5519_v62 }
0x2328   :  { %4915 = vmatpush3.bf16.msra.mxu1 %v5520_v52  ;;  %4943 = vmatpush3.bf16.msra.mxu0 %v5521_v53 }
0x2329   :  { %4916 = vmatprep.subr.bf16.mxu1 %v5522_v55  ;;  %4944 = vmatprep.subr.bf16.mxu0 %v5523_v54 }
0x232c   :  { %4917 = vmatpush3.bf16.msra.mxu1 %v5524_v56  ;;  %4945 = vmatpush3.bf16.msra.mxu0 %v5525_v0 }
0x232d   :  { %4918 = vmatprep.subr.bf16.mxu1 %v5526_v26  ;;  %4946 = vmatprep.subr.bf16.mxu0 %v5527_v33 }
0x2330   :  { %4919 = vmatpush3.bf16.msra.mxu1 %v5528_v38  ;;  %4947 = vmatpush3.bf16.msra.mxu0 %v5529_v30 }
0x2331   :  { %4920 = vmatprep.subr.bf16.mxu1 %v5530_v63  ;;  %4948 = vmatprep.subr.bf16.mxu0 %v5531_v37 }
0x2334   :  { %4921 = vmatpush3.bf16.msra.mxu1 %v5532_v60  ;;  %4949 = vmatpush3.bf16.msra.mxu0 %v5533_v48 }
0x2335   :  { %4922 = vmatprep.subr.bf16.mxu1 %v5534_v51  ;;  %4950 = vmatprep.subr.bf16.mxu0 %v5535_v2 }
0x2338   :  { %4923 = vmatpush3.bf16.msra.mxu1 %v5536_v3  ;;  %4951 = vmatpush3.bf16.msra.mxu0 %v5537_v47 }
0x2339   :  { %4924 = vmatprep.subr.bf16.mxu1 %v5538_v27  ;;  %4952 = vmatprep.subr.bf16.mxu0 %v5539_v5 }
0x233c   :  { %4925 = vmatpush3.bf16.msra.mxu1 %v5540_v41  ;;  %4953 = vmatpush3.bf16.msra.mxu0 %v5541_v10 }
0x233d   :  { %4926 = vmatprep.subr.bf16.mxu1 %v5542_v57  ;;  %4954 = vmatprep.subr.bf16.mxu0 %v5543_v9 }
0x2340   :  { %4927 = vmatpush3.bf16.msra.mxu1 %v5544_v11  ;;  %4955 = vmatpush3.bf16.msra.mxu0 %v5545_v4 }
0x238f   :  { %v3727_v14 = vpop.xlane.xlu0 %3726 }
0x2390   :  { %v3732_v1 = vmul.f32 0.0078125, %v3727_v14 }
0x2392   :  { %v3736_v7 = vadd.f32 1e-05, %v3732_v1 }
0x2393   :  { %v3729_v19 = vpop.xlane.xlu0 %3728 }
0x2394   :  { %5688 = vrsqrt.f32 %v3736_v7  ;;  %v3733_v24 = vmul.f32 0.0078125, %v3729_v19 }
0x2396   :  { %v3737_v20 = vadd.f32 1e-05, %v3733_v24 }
0x2398   :  { %5690 = vrsqrt.f32 %v3737_v20 }
0x23a1   :  { %v5689_v34 = vpop.eup %5688 }
0x23a2   :  { %v3744_v21 = vmul.f32 %v5689_v34, %v6687_v22  ;;  %v3805_v22 = vshrl.u32 %v3804_v18, 7 }
0x23a4   :  { %v3755_v25 = vmul.f32 %v6700_v31, %v3744_v21  ;;  %v3810_v15 = vsub.s32 1, %v3805_v22  ;;  %v3818_v12 = vsub.s32 3, %v3805_v22  ;;  %v3814_v35 = vsub.s32 2, %v3805_v22 }
0x23a5   :  { %v5691_v28 = vpop.eup %5690 }
0x23a6   :  { %v3745_v16 = vmul.f32 %v5691_v28, %v6692_v61  ;;  %v6725_v39 = vadd.f32 %v6707_v43, %v3755_v25  ;;  %v3806_v61 = vsub.s32 0, %v3805_v22  ;;  %v3811_v36 = vrot.slane %v3802_v32, %v3810_v15 }
0x23a7   :  { %v3819_v42 = vrot.slane %v3802_v32, %v3818_v12 }
0x23a8   :  { %v3756_v29 = vmul.f32 %v6700_v31, %v3745_v16  ;;  %v3807_v8 = vrot.slane %v3802_v32, %v3806_v61 }
0x23aa   :  { %v6728_v6 = vadd.f32 %v6707_v43, %v3756_v29  ;;  %v3815_v43 = vrot.slane %v3802_v32, %v3814_v35 }
0x23ac   :  { %v3769_v13 = vpack.c.bf16 %v6728_v6, %v6725_v39 }
0x23ae   :  { %4027 = vmatmul.mubr.bf16.gmra.mxu1 %v3769_v13  ;;  %4080 = vmatmul.mubr.bf16.gmra.mxu0 %v3769_v13 }
0x23e2   :  { %v4018_v50 = vpop.f32.mrf.mxu1  ;;  %v4071_v31 = vpop.f32.mrf.mxu0 }
0x23e3   :  { %v4019_v52 = vadd.f32 %v4018_v50, %v3807_v8  ;;  %v4072_v53 = vadd.f32 %v4071_v31, %v3815_v43 }
0x23e4   :  { %v4020_v44 = vpop.f32.mrf.mxu1  ;;  %v4073_v49 = vpop.f32.mrf.mxu0 }
0x23e5   :  { %v4021_v17 = vadd.f32 %v4020_v44, %v3811_v36  ;;  %v4074_v23 = vadd.f32 %v4073_v49, %v3819_v42  ;;  %v4090_v60 = vmax.f32 %v4019_v52, 0.0  ;;  %v4092_v48 = vmax.f32 %v4072_v53, 0.0 }
0x23e6   :  { %v4022_v46 = vpop.f32.mrf.mxu1  ;;  %v4075_v58 = vpop.f32.mrf.mxu0 }
0x23e7   :  { %v4023_v40 = vadd.f32 %v4022_v46, %v3807_v8  ;;  %v4076_v62 = vadd.f32 %v4075_v58, %v3815_v43  ;;  %v4091_v38 = vmax.f32 %v4021_v17, 0.0  ;;  %v4093_v30 = vmax.f32 %v4074_v23, 0.0 }
0x23e8   :  { %v4024_v55 = vpop.f32.mrf.mxu1  ;;  %v4077_v54 = vpop.f32.mrf.mxu0 }
0x23e9   :  { %v4025_v56 = vadd.f32 %v4024_v55, %v3811_v36  ;;  %v4078_v0 = vadd.f32 %v4077_v54, %v3819_v42  ;;  %v4094_v26 = vmax.f32 %v4023_v40, 0.0  ;;  %v4096_v33 = vmax.f32 %v4076_v62, 0.0 }
0x23eb   :  { %v4095_v63 = vmax.f32 %v4025_v56, 0.0  ;;  %v4097_v37 = vmax.f32 %v4078_v0, 0.0  ;;  %v4106_v3 = vpack.c.bf16 %v4094_v26, %v4090_v60  ;;  %v4108_v47 = vpack.c.bf16 %v4096_v33, %v4092_v48 }
0x23ed   :  { %v4107_v51 = vpack.c.bf16 %v4095_v63, %v4091_v38  ;;  %v4109_v2 = vpack.c.bf16 %v4097_v37, %v4093_v30 }
0x23ef   :  { %4409 = vmatprep.mubr.bf16.mxu1 %v4107_v51  ;;  %4458 = vmatprep.mubr.bf16.mxu0 %v4109_v2 }
0x23f0   :  { %4410 = vmatmul.mubr.bf16.vlgmr.msra.gmra.mxu1 %v4106_v3  ;;  %4459 = vmatmul.mubr.bf16.vlgmr.msra.gmra.mxu0 %v4108_v47 }
0x246e   :  { %v4028_v27 = vpop.f32.mrf.mxu1  ;;  %v4081_v5 = vpop.f32.mrf.mxu0 }
0x246f   :  { %v4029_v7 = vadd.f32 %v4028_v27, %v3807_v8  ;;  %v4082_v19 = vadd.f32 %v4081_v5, %v3815_v43 }
0x2470   :  { %v4030_v41 = vpop.f32.mrf.mxu1  ;;  %v4083_v10 = vpop.f32.mrf.mxu0 }
0x2471   :  { %v4031_v11 = vadd.f32 %v4030_v41, %v3811_v36  ;;  %v4084_v4 = vadd.f32 %v4083_v10, %v3819_v42  ;;  %v4098_v22 = vmax.f32 %v4029_v7, 0.0  ;;  %v4100_v15 = vmax.f32 %v4082_v19, 0.0 }
0x2472   :  { %v4032_v57 = vpop.f32.mrf.mxu1  ;;  %v4085_v9 = vpop.f32.mrf.mxu0 }
0x2473   :  { %v4033_v14 = vadd.f32 %v4032_v57, %v3807_v8  ;;  %v4086_v1 = vadd.f32 %v4085_v9, %v3815_v43  ;;  %v4099_v25 = vmax.f32 %v4031_v11, 0.0  ;;  %v4101_v29 = vmax.f32 %v4084_v4, 0.0 }
0x2474   :  { %v4034_v24 = vpop.f32.mrf.mxu1  ;;  %v4087_v20 = vpop.f32.mrf.mxu0 }
0x2475   :  { %v4035_v34 = vadd.f32 %v4034_v24, %v3811_v36  ;;  %v4088_v21 = vadd.f32 %v4087_v20, %v3819_v42  ;;  %v4102_v28 = vmax.f32 %v4033_v14, 0.0  ;;  %v4104_v16 = vmax.f32 %v4086_v1, 0.0  ;;  %v4725_v36 = vld [vmem:[%s6769_s18] ss:$0 sm:$0xff] }
0x2477   :  { %v4103_v13 = vmax.f32 %v4035_v34, 0.0  ;;  %v4105_v18 = vmax.f32 %v4088_v21, 0.0  ;;  %v4110_v35 = vpack.c.bf16 %v4102_v28, %v4098_v22  ;;  %v4112_v32 = vpack.c.bf16 %v4104_v16, %v4100_v15 }
0x2479   :  { %v4111_v12 = vpack.c.bf16 %v4103_v13, %v4099_v25  ;;  %v4113_v61 = vpack.c.bf16 %v4105_v18, %v4101_v29 }
0x247b   :  { %4417 = vmatprep.mubr.bf16.mxu1 %v4111_v12  ;;  %4466 = vmatprep.mubr.bf16.mxu0 %v4113_v61  ;;  %v4758_v12 = vld [vmem:[%s6770_s19] ss:$0 sm:$0xff]  ;;  %s5869_s19 = smov [#allocation13]  }
0x247c   :  { %4418 = vmatmul.mubr.bf16.gmra.mxu1 %v4110_v35  ;;  %4467 = vmatmul.mubr.bf16.gmra.mxu0 %v4112_v32  ;;  %v4759_v35 = vld [vmem:[%s6771_s20] ss:$0 sm:$0xff]  ;;  %s4554_s20 = sshll.u32 %s5869_s19, 4  ;;  %s4555_s20 = int_to_ptr.vmem [resolvable:$true] %s4554_s20 }
0x247d   :  { %s5822_s25 = scalar_lea.vmem %s4555_s20, 512  ;;  %p5827_p3 = scmp.lt.s32.totalorder %s4555_s20, %s4555_s20 }
0x247e   :  { %p5823_p2 = scmp.ne.s32.totalorder %s4555_s20, %s5822_s25  ;;  %p5828_p4 = scmp.lt.s32.totalorder %s5822_s25, %s5822_s25 }
0x2480   :  { %p5829_p5 = por %p5828_p4, %p5827_p3 }
0x2482   :  { %p5830_p6 = pnand %p5829_p5, %p5823_p2 }
0x24b0   :  { %v4928_v50 = vpop.f32.mrf.mxu1  ;;  %v4956_v31 = vpop.f32.mrf.mxu0 }
0x24b2   :  { %v4929_v42 = vpop.f32.mrf.mxu1  ;;  %v4957_v8 = vpop.f32.mrf.mxu0 }
0x24b3   :  { %v4930_v43 = vadd.f32 %v4929_v42, %v4928_v50  ;;  %v4958_v58 = vadd.f32 %v4957_v8, %v4956_v31 }
0x24b4   :  { %v4931_v44 = vpop.f32.mrf.mxu1  ;;  %v4959_v49 = vpop.f32.mrf.mxu0 }
0x24b5   :  { %v4412_v46 = vadd.f32 %v4930_v43, %v4725_v36 }
0x24b6   :  { %v4932_v17 = vpop.f32.mrf.mxu1  ;;  %v4960_v23 = vpop.f32.mrf.mxu0 }
0x24b7   :  { %v4461_v40 = vadd.f32 %v4958_v58, %v4412_v46  ;;  %v4933_v62 = vadd.f32 %v4932_v17, %v4931_v44  ;;  %v4961_v53 = vadd.f32 %v4960_v23, %v4959_v49 }
0x24b9   :  { %v4415_v52 = vadd.f32 %v4933_v62, %v4725_v36  ;;  %v4475_v55 = vadd.f32 %v4461_v40, %v6711_v45 }
0x24bb   :  { %v4464_v54 = vadd.f32 %v4961_v53, %v4415_v52  ;;  %4479 = vadd.xlane.f32.xlu0 %v4475_v55 }
0x24bd   :  { %v4476_v56 = vadd.f32 %v4464_v54, %v6714_v59 }
0x24bf   :  { %4481 = vadd.xlane.f32.xlu0 %v4476_v56 }
0x253c   :  { %v4934_v0 = vpop.f32.mrf.mxu1  ;;  %v4962_v26 = vpop.f32.mrf.mxu0 }
0x253e   :  { %v4935_v33 = vpop.f32.mrf.mxu1  ;;  %v4963_v38 = vpop.f32.mrf.mxu0 }
0x253f   :  { %v4936_v30 = vadd.f32 %v4935_v33, %v4934_v0  ;;  %v4964_v48 = vadd.f32 %v4963_v38, %v4962_v26 }
0x2540   :  { %v4937_v63 = vpop.f32.mrf.mxu1  ;;  %v4965_v37 = vpop.f32.mrf.mxu0 }
0x2541   :  { %v4420_v60 = vadd.f32 %v4936_v30, %v4725_v36 }
0x2542   :  { %v4938_v51 = vpop.f32.mrf.mxu1  ;;  %v4966_v2 = vpop.f32.mrf.mxu0 }
0x2543   :  { %v4469_v3 = vadd.f32 %v4964_v48, %v4420_v60  ;;  %v4939_v47 = vadd.f32 %v4938_v51, %v4937_v63  ;;  %v4967_v5 = vadd.f32 %v4966_v2, %v4965_v37 }
0x2544   :  { %v4480_v27 = vpop.xlane.xlu0 %4479 }
0x2545   :  { %v4423_v45 = vadd.f32 %v4939_v47, %v4725_v36  ;;  %v4487_v41 = vmul.f32 0.0078125, %v4480_v27  ;;  %v4477_v59 = vadd.f32 %v4469_v3, %v6725_v39 }
0x2547   :  { %v4472_v10 = vadd.f32 %v4967_v5, %v4423_v45  ;;  %4483 = vadd.xlane.f32.xlu0 %v4477_v59  ;;  %v4491_v9 = vsub.f32 %v4475_v55, %v4487_v41 }
0x2548   :  { %v4482_v57 = vpop.xlane.xlu0 %4481 }
0x2549   :  { %v4488_v11 = vmul.f32 0.0078125, %v4482_v57  ;;  %v4478_v4 = vadd.f32 %v4472_v10, %v6728_v6  ;;  %v4495_v1 = vmul.f32 %v4491_v9, %v4491_v9 }
0x254b   :  { %4485 = vadd.xlane.f32.xlu0 %v4478_v4  ;;  %v4492_v14 = vsub.f32 %v4476_v56, %v4488_v11 }
0x254d   :  { %v4496_v7 = vmul.f32 %v4492_v14, %v4492_v14 }
0x254f   :  { %4499 = vadd.xlane.f32.xlu0 %v4495_v1 }
0x2553   :  { %4501 = vadd.xlane.f32.xlu0 %v4496_v7 }
0x25d0   :  { %v4484_v19 = vpop.xlane.xlu0 %4483 }
0x25d1   :  { %v4489_v24 = vmul.f32 0.0078125, %v4484_v19 }
0x25d3   :  { %v4493_v20 = vsub.f32 %v4477_v59, %v4489_v24 }
0x25d4   :  { %v4486_v34 = vpop.xlane.xlu0 %4485 }
0x25d5   :  { %v4490_v21 = vmul.f32 0.0078125, %v4486_v34  ;;  %v4497_v28 = vmul.f32 %v4493_v20, %v4493_v20 }
0x25d7   :  { %v4494_v39 = vsub.f32 %v4478_v4, %v4490_v21  ;;  %4503 = vadd.xlane.f32.xlu1 %v4497_v28 }
0x25d8   :  { %v4500_v16 = vpop.xlane.xlu0 %4499 }
0x25d9   :  { %v4507_v25 = vmul.f32 0.0078125, %v4500_v16  ;;  %v4498_v29 = vmul.f32 %v4494_v39, %v4494_v39 }
0x25db   :  { %v4511_v13 = vadd.f32 1e-05, %v4507_v25  ;;  %4505 = vadd.xlane.f32.xlu0 %v4498_v29 }
0x25dc   :  { %v4502_v6 = vpop.xlane.xlu0 %4501 }
0x25dd   :  { %5692 = vrsqrt.f32 %v4511_v13  ;;  %v4508_v18 = vmul.f32 0.0078125, %v4502_v6 }
0x25df   :  { %v4512_v22 = vadd.f32 1e-05, %v4508_v18 }
0x25e1   :  { %5694 = vrsqrt.f32 %v4512_v22 }
0x25ea   :  { %v5693_v15 = vpop.eup %5692 }
0x25eb   :  { %v4519_v61 = vmul.f32 %v5693_v15, %v4491_v9 }
0x25ed   :  { %v4530_v32 = vmul.f32 %v4758_v12, %v4519_v61 }
0x25ee   :  { %v5695_v50 = vpop.eup %5694 }
0x25ef   :  { %v4520_v31 = vmul.f32 %v5695_v50, %v4492_v14  ;;  %v4541_v36 = vadd.f32 %v4759_v35, %v4530_v32 }
0x25f1   :  { %v4531_v42 = vmul.f32 %v4758_v12, %v4520_v31  ;;  %4545 = vst [vmem:[#allocation13] sm:$0xff] %v4541_v36 }
0x25f3   :  { %v4542_v8 = vadd.f32 %v4759_v35, %v4531_v42 }
0x25f5   :  { %4546 = vst [vmem:[#allocation13 + $0x8] sm:$0xff] %v4542_v8 }
0x2660   :  { %v4504_v43 = vpop.xlane.xlu1 %4503 }
0x2661   :  { %v4509_v44 = vmul.f32 0.0078125, %v4504_v43 }
0x2663   :  { %v4513_v49 = vadd.f32 1e-05, %v4509_v44 }
0x2664   :  { %v4506_v46 = vpop.xlane.xlu0 %4505 }
0x2665   :  { %5696 = vrsqrt.f32 %v4513_v49  ;;  %v4510_v58 = vmul.f32 0.0078125, %v4506_v46 }
0x2667   :  { %v4514_v17 = vadd.f32 1e-05, %v4510_v58 }
0x2669   :  { %5698 = vrsqrt.f32 %v4514_v17 }
0x2672   :  { %v5697_v23 = vpop.eup %5696 }
0x2673   :  { %v4521_v40 = vmul.f32 %v5697_v23, %v4493_v20 }
0x2675   :  { %v4532_v62 = vmul.f32 %v4758_v12, %v4521_v40 }
0x2676   :  { %v5699_v52 = vpop.eup %5698 }
0x2677   :  { %v4522_v53 = vmul.f32 %v5699_v52, %v4494_v39  ;;  %v4543_v55 = vadd.f32 %v4759_v35, %v4532_v62 }
0x2679   :  { %v4533_v54 = vmul.f32 %v4758_v12, %v4522_v53  ;;  %4547 = vst [vmem:[#allocation13 + $0x10] sm:$0xff] %v4543_v55 }
0x267b   :  { %v4544_v56 = vadd.f32 %v4759_v35, %v4533_v54 }
0x267d   :  { %4548 = vst [vmem:[#allocation13 + $0x18] sm:$0xff] %v4544_v56 }
0x267e   :  { %5833 = shalt.err (!%p5830_p6)
}
0x267f   :  { %s5870_s28 = smov 128   ;;  %s5871_s10 = smov 8  }
0x2680   :  { %4560 = dma.vmem_to_hbm [thread:$0]  %s4555_s20, 512, %s6772_s21, [#allocation4], %s5870_s28, %s5870_s28, %s5871_s10  }
0x2681   :  { %5850 = dma.done.wait [#allocation4], 512  }
0x2682   :  { %5851 = vsyncadd [#allocation4], 4294966784 }
0x2683   :  { %4564 = vsyncpa [#allocation3], 1 }
0x2684   :  { %4565 = vsyncpa [#allocation6], 1 }
0x2685   :  { %4566 = vsyncpa [#allocation9], 1 }
0x2686   :  { %4567 = vsyncpa [#allocation12], 1 }
0x2687   :  { %4568 = vsyncpa [#allocation4], 1 }

</bundles_post_ra>
